<compile_context>
chip_gen: v7x
topology: tpu7x:2x2x1
jax: 0.10.0
libtpu: 0.0.40
codegen_flags: <defaults>
</compile_context>

<pallas_src>
import math

import jax
import jax.numpy as jnp
from jax import lax
from jax.experimental import pallas as pl
from jax.experimental.pallas import tpu as pltpu

TIME2VEC_DIM = 3
D_MODEL = 64
NHEAD = 4
NUM_LAYERS = 2
NUM_CLASSES = 2
DIM_FF = 128
LN_EPS = 1e-5
OUT_PAD = 128          # lane-dense padded logits width
DH = D_MODEL // NHEAD  # per-head dim


def _layer_norm(x, g, b):
    mu = jnp.mean(x, axis=-1, keepdims=True)
    var = jnp.mean((x - mu) ** 2, axis=-1, keepdims=True)
    return (x - mu) * lax.rsqrt(var + LN_EPS) * g + b


def fall_kernel(x_ref, mask_ref, pool_ref, proj_ref, wqkv_ref, wo_ref,
                w1_ref, w2_ref, vec_ref, fc_ref, out_ref, qkv_ref):
    # x_ref block: (M, 4) flattened tokens of BB batch elements, M = BB * T.
    M = x_ref.shape[0]
    scale = 1.0 / math.sqrt(DH)

    x = x_ref[...]                                   # (M, 4) = [x, y, z, t]
    t = x[:, 3:4]                                    # (M, 1)

    # Time2Vec periodic part (linear part folded into proj rows host-side).
    per_w = proj_ref[7:8, 0:2]                       # (1, 2)
    per_b = proj_ref[7:8, 2:4]                       # (1, 2)
    t_per = jnp.sin(t * per_w + per_b)               # (M, 2)

    # Single K=7 input projection: [x, y, z, t, sin1, sin2, 1] with the bias
    # folded into the ones column (row 6 of the proj slab).
    ones = jnp.ones((M, 1), jnp.float32)
    xin = jnp.concatenate([x, t_per, ones], axis=-1)  # (M, 7)
    h = jnp.dot(xin, proj_ref[0:7, :], preferred_element_type=jnp.float32)

    # TransformerEncoder (post-norm, relu FFN), statically unrolled over layers.
    for l in range(NUM_LAYERS):
        # Stage QKV in VMEM scratch; head slices are read from the ref at use.
        qkv_ref[...] = (jnp.dot(h, wqkv_ref[l],
                                preferred_element_type=jnp.float32)
                        + vec_ref[l, 0:1, :])

        # Residual accumulator; concat(heads) @ Wo == sum_h (P_h V_h) @ Wo_h,
        # so each head accumulates directly and no concat is materialized.
        acc = h + vec_ref[l, 1:2, 0:D_MODEL]
        for hh in range(NHEAD):
            q_h = qkv_ref[:, hh * DH:(hh + 1) * DH]
            k_h = qkv_ref[:, D_MODEL + hh * DH:D_MODEL + (hh + 1) * DH]
            v_h = qkv_ref[:, 2 * D_MODEL + hh * DH:2 * D_MODEL + (hh + 1) * DH]

            # Contract last dims of both operands (no explicit K transpose).
            s = (lax.dot_general(q_h, k_h, (((1,), (1,)), ((), ())),
                                 preferred_element_type=jnp.float32) * scale
                 + mask_ref[...])
            s = s - jnp.max(s, axis=-1, keepdims=True)
            p = jnp.exp(s)
            p = p * pl.reciprocal(jnp.sum(p, axis=-1, keepdims=True),
                                  approx=True)
            pv = jnp.dot(p, v_h, preferred_element_type=jnp.float32)  # (M, DH)
            acc = acc + jnp.dot(pv, wo_ref[l, hh * DH:(hh + 1) * DH, :],
                                preferred_element_type=jnp.float32)
        h = _layer_norm(acc, vec_ref[l, 2:3, 0:D_MODEL],
                        vec_ref[l, 3:4, 0:D_MODEL])

        ff = jnp.maximum(
            jnp.dot(h, w1_ref[l], preferred_element_type=jnp.float32)
            + vec_ref[l, 4:5, 0:DIM_FF], 0.0)
        ff = (jnp.dot(ff, w2_ref[l], preferred_element_type=jnp.float32)
              + vec_ref[l, 5:6, 0:D_MODEL])
        h = _layer_norm(h + ff, vec_ref[l, 6:7, 0:D_MODEL],
                        vec_ref[l, 7:8, 0:D_MODEL])

    # Mean-pool over time via the precomputed (BB, M) pooling matmul.
    feats = jnp.dot(pool_ref[...], h, preferred_element_type=jnp.float32)

    # Classifier into a 128-lane padded block (lane-dense store).
    out_ref[...] = (jnp.dot(feats, fc_ref[0:D_MODEL, :],
                            preferred_element_type=jnp.float32)
                    + fc_ref[D_MODEL:D_MODEL + 1, :])


def pack_params(params):
    """Fold Time2Vec linear into the projection and pack 18 arrays into 7 slabs."""
    (t2v_w, t2v_b, wp, bp, wqkv, bqkv, wo, bo,
     ln1g, ln1b, w1, b1, w2, b2, ln2g, ln2b, wfc, bfc) = params
    lin_w = t2v_w[0, 0]
    lin_b = t2v_b[0, 0]
    per_w = t2v_w[0, 1:]
    per_b = t2v_b[0, 1:]

    # proj slab (8, D): rows 0..3 weights for [x,y,z,t(lin folded)], rows 4..5
    # weights for sin columns, row 6 effective bias (hit by the ones column),
    # row 7 holds per_w/per_b.
    proj = jnp.zeros((8, D_MODEL), jnp.float32)
    proj = proj.at[0:3, :].set(wp[0:3, :])
    proj = proj.at[3, :].set(lin_w * wp[3, :])
    proj = proj.at[4:6, :].set(wp[4:6, :])
    proj = proj.at[6, :].set(bp[0] + lin_b * wp[3, :])
    proj = proj.at[7, 0:2].set(per_w)
    proj = proj.at[7, 2:4].set(per_b)

    # Per-layer vector slab (L, 8, 3D): biases + LN params.
    vec = jnp.zeros((NUM_LAYERS, 8, 3 * D_MODEL), jnp.float32)
    vec = vec.at[:, 0, :].set(bqkv[:, 0, :])
    vec = vec.at[:, 1, :D_MODEL].set(bo[:, 0, :])
    vec = vec.at[:, 2, :D_MODEL].set(ln1g[:, 0, :])
    vec = vec.at[:, 3, :D_MODEL].set(ln1b[:, 0, :])
    vec = vec.at[:, 4, :DIM_FF].set(b1[:, 0, :])
    vec = vec.at[:, 5, :D_MODEL].set(b2[:, 0, :])
    vec = vec.at[:, 6, :D_MODEL].set(ln2g[:, 0, :])
    vec = vec.at[:, 7, :D_MODEL].set(ln2b[:, 0, :])

    # Classifier slab (72, 128): rows 0..63 padded weights, row 64 padded bias.
    fc = jnp.zeros((72, OUT_PAD), jnp.float32)
    fc = fc.at[0:D_MODEL, 0:NUM_CLASSES].set(wfc)
    fc = fc.at[D_MODEL, 0:NUM_CLASSES].set(bfc[0])

    return (proj, wqkv, wo, w1, w2, vec, fc)


def _choose_block_b(B, T):
    # Target ~128 MXU rows per grid step (M = BB*T). For B > BB this yields
    # >= 2 grid steps so both TensorCores get work on v7x. Sweepable: on
    # v6e/v7x block_b=32 (M=256) may amortize step overhead further.
    bb = max(1, 128 // T)
    if B <= bb:
        return B                      # single grid step, full-extent blocks
    return max(8, (bb // 8) * 8)      # sublane-aligned multi-step blocks


def fall_time2vec_transformer(x, params, *, block_b=None):
    B, T, C = x.shape
    assert C == 4
    packed = pack_params(params)

    if block_b is None:
        block_b = _choose_block_b(B, T)
    if block_b >= B:
        block_b = B                   # single full-extent step
    else:
        block_b = ((block_b + 7) // 8) * 8   # keep (8,128) output-block rule
        if block_b >= B:
            block_b = B

    b_pad = ((B + block_b - 1) // block_b) * block_b
    if b_pad != B:
        x = jnp.pad(x, ((0, b_pad - B), (0, 0), (0, 0)))
    x_flat = x.reshape(b_pad * T, 4)
    m = block_b * T

    # Host-side constants (constant index_map => fetched once, VMEM-resident):
    # block-diagonal additive attention mask and mean-pool matrix.
    blk = jnp.arange(m, dtype=jnp.int32) // T
    neg_mask = jnp.where(blk[:, None] == blk[None, :],
                         0.0, -1e30).astype(jnp.float32)
    pool = jnp.where(jnp.arange(block_b, dtype=jnp.int32)[:, None] == blk[None, :],
                     1.0 / T, 0.0).astype(jnp.float32)

    def full_spec(p):
        r = p.ndim
        return pl.BlockSpec(p.shape, lambda b, _r=r: (0,) * _r)

    out = pl.pallas_call(
        fall_kernel,
        out_shape=jax.ShapeDtypeStruct((b_pad, OUT_PAD), jnp.float32),
        grid_spec=pltpu.PrefetchScalarGridSpec(
            num_scalar_prefetch=0,
            grid=(b_pad // block_b,),
            in_specs=[pl.BlockSpec((m, 4), lambda b: (b, 0)),
                      full_spec(neg_mask),
                      full_spec(pool)]
                     + [full_spec(p) for p in packed],
            out_specs=pl.BlockSpec((block_b, OUT_PAD), lambda b: (b, 0)),
            scratch_shapes=[pltpu.VMEM((m, 3 * D_MODEL), jnp.float32)]),
        compiler_params=pltpu.CompilerParams(
            dimension_semantics=("parallel",)),
    )(x_flat, neg_mask, pool, *packed)
    return out[:B, :NUM_CLASSES]


def init_params(key):
    keys = jax.random.split(key, 20)
    it = iter(keys)

    def nrm(shape, scale=0.1):
        return scale * jax.random.normal(next(it), shape, dtype=jnp.float32)

    t2v_w = nrm((1, TIME2VEC_DIM), 1.0)    # [lin_weight, per_weight...]
    t2v_b = nrm((1, TIME2VEC_DIM), 1.0)    # [lin_bias,   per_bias...]
    wp = nrm((3 + TIME2VEC_DIM, D_MODEL))
    bp = nrm((1, D_MODEL))
    wqkv = nrm((NUM_LAYERS, D_MODEL, 3 * D_MODEL))
    bqkv = nrm((NUM_LAYERS, 1, 3 * D_MODEL))
    wo = nrm((NUM_LAYERS, D_MODEL, D_MODEL))
    bo = nrm((NUM_LAYERS, 1, D_MODEL))
    ln1g = jnp.ones((NUM_LAYERS, 1, D_MODEL), jnp.float32)
    ln1b = jnp.zeros((NUM_LAYERS, 1, D_MODEL), jnp.float32)
    w1 = nrm((NUM_LAYERS, D_MODEL, DIM_FF))
    b1 = nrm((NUM_LAYERS, 1, DIM_FF))
    w2 = nrm((NUM_LAYERS, DIM_FF, D_MODEL))
    b2 = nrm((NUM_LAYERS, 1, D_MODEL))
    ln2g = jnp.ones((NUM_LAYERS, 1, D_MODEL), jnp.float32)
    ln2b = jnp.zeros((NUM_LAYERS, 1, D_MODEL), jnp.float32)
    wfc = nrm((D_MODEL, NUM_CLASSES))
    bfc = nrm((1, NUM_CLASSES))
    return (t2v_w, t2v_b, wp, bp, wqkv, bqkv, wo, bo,
            ln1g, ln1b, w1, b1, w2, b2, ln2g, ln2b, wfc, bfc)


def reference_forward(x, params):
    # Pure-JAX reference mirroring PyTorch forward (eval mode).
    (t2v_w, t2v_b, wp, bp, wqkv, bqkv, wo, bo,
     ln1g, ln1b, w1, b1, w2, b2, ln2g, ln2b, wfc, bfc) = params
    B, T, _ = x.shape
    t = x[..., 3:4]
    raw = t * t2v_w[0] + t2v_b[0]
    t_emb = jnp.concatenate([raw[..., :1], jnp.sin(raw[..., 1:])], axis=-1)
    combined = jnp.concatenate([x[..., :3], t_emb], axis=-1)
    h = combined @ wp + bp[0]
    dh = D_MODEL // NHEAD
    for l in range(NUM_LAYERS):
        qkv = h @ wqkv[l] + bqkv[l, 0]
        q = qkv[..., :D_MODEL].reshape(B, T, NHEAD, dh).transpose(0, 2, 1, 3)
        k = qkv[..., D_MODEL:2 * D_MODEL].reshape(B, T, NHEAD, dh).transpose(0, 2, 1, 3)
        v = qkv[..., 2 * D_MODEL:].reshape(B, T, NHEAD, dh).transpose(0, 2, 1, 3)
        s = jnp.einsum('bhqd,bhkd->bhqk', q, k) / math.sqrt(dh)
        p = jax.nn.softmax(s, axis=-1)
        o = jnp.einsum('bhqk,bhkd->bhqd', p, v).transpose(0, 2, 1, 3).reshape(B, T, D_MODEL)
        o = o @ wo[l] + bo[l, 0]
        h = _layer_norm(h + o, ln1g[l, 0], ln1b[l, 0])
        ff = jax.nn.relu(h @ w1[l] + b1[l, 0]) @ w2[l] + b2[l, 0]
        h = _layer_norm(h + ff, ln2g[l, 0], ln2b[l, 0])
    feats = h.mean(axis=1)
    return feats @ wfc + bfc[0]


if __name__ == "__main__":
    key = jax.random.PRNGKey(0)
    pkey, xkey1, xkey2 = jax.random.split(key, 3)
    params = init_params(pkey)

    # Tolerance loosened from 1e-4 because of the approx (EUP) reciprocal in
    # the softmax denominator; differences stay well below 2e-3.
    ATOL = RTOL = 2e-3

    # Small shape (single grid step, full-extent blocks).
    B, T = 2, 8
    x = jax.random.normal(xkey1, (B, T, 4), dtype=jnp.float32)
    out = jax.block_until_ready(fall_time2vec_transformer(x, params))
    ref = reference_forward(x, params)
    assert out.shape == (B, NUM_CLASSES)
    assert jnp.allclose(out, ref, atol=ATOL, rtol=RTOL), (out, ref)

    # Larger batch exercising batch blocking (BB=16 -> M=128), a 2-step grid
    # (both TCs on v7x) and batch padding (20 -> 32 rows, sliced off).
    B2 = 20
    x2 = jax.random.normal(xkey2, (B2, T, 4), dtype=jnp.float32)
    out2 = jax.block_until_ready(fall_time2vec_transformer(x2, params))
    ref2 = reference_forward(x2, params)
    assert out2.shape == (B2, NUM_CLASSES)
    assert jnp.allclose(out2, ref2, atol=ATOL, rtol=RTOL), (out2, ref2)

    # TODO(synk): dropout layers are identity (inference semantics); training-mode
    # stochastic dropout is not reproduced.
    print("KERNEL_OK")
</pallas_src>

<mosaic_0001>
module attributes {stable_mosaic.version = 11 : i64} {
  func.func @fall_kernel(%arg0: i32, %arg1: memref<16x4xf32, #tpu.memory_space<vmem>>, %arg2: memref<16x16xf32, #tpu.memory_space<vmem>>, %arg3: memref<2x16xf32, #tpu.memory_space<vmem>>, %arg4: memref<8x64xf32, #tpu.memory_space<vmem>>, %arg5: memref<2x64x192xf32, #tpu.memory_space<vmem>>, %arg6: memref<2x64x64xf32, #tpu.memory_space<vmem>>, %arg7: memref<2x64x128xf32, #tpu.memory_space<vmem>>, %arg8: memref<2x128x64xf32, #tpu.memory_space<vmem>>, %arg9: memref<2x8x192xf32, #tpu.memory_space<vmem>>, %arg10: memref<72x128xf32, #tpu.memory_space<vmem>>, %arg11: memref<2x128xf32, #tpu.memory_space<vmem>>, %arg12: memref<16x192xf32, #tpu.memory_space<vmem>>) attributes {dimension_semantics = [#tpu.dimension_semantics<parallel>], iteration_bounds = array<i64: 1>, scalar_prefetch = 0 : i64, scratch_operands = 1 : i64, tpu.core_type = #tpu.core_type<tc>, window_params = [{transform_indices = @transform_0, window_bounds = array<i64: 16, 4>}, {pipeline_mode = #tpu.pipeline_mode<synchronous>, transform_indices = @transform_1, window_bounds = array<i64: 16, 16>}, {pipeline_mode = #tpu.pipeline_mode<synchronous>, transform_indices = @transform_2, window_bounds = array<i64: 2, 16>}, {pipeline_mode = #tpu.pipeline_mode<synchronous>, transform_indices = @transform_3, window_bounds = array<i64: 8, 64>}, {pipeline_mode = #tpu.pipeline_mode<synchronous>, transform_indices = @transform_4, window_bounds = array<i64: 2, 64, 192>}, {pipeline_mode = #tpu.pipeline_mode<synchronous>, transform_indices = @transform_5, window_bounds = array<i64: 2, 64, 64>}, {pipeline_mode = #tpu.pipeline_mode<synchronous>, transform_indices = @transform_6, window_bounds = array<i64: 2, 64, 128>}, {pipeline_mode = #tpu.pipeline_mode<synchronous>, transform_indices = @transform_7, window_bounds = array<i64: 2, 128, 64>}, {pipeline_mode = #tpu.pipeline_mode<synchronous>, transform_indices = @transform_8, window_bounds = array<i64: 2, 8, 192>}, {pipeline_mode = #tpu.pipeline_mode<synchronous>, transform_indices = @transform_9, window_bounds = array<i64: 72, 128>}, {transform_indices = @transform_10, window_bounds = array<i64: 2, 128>}]} {
    %c0 = arith.constant 0 : index
    %c0_0 = arith.constant 0 : index
    %0 = vector.load %arg1[%c0, %c0_0] : memref<16x4xf32, #tpu.memory_space<vmem>>, vector<16x4xf32>
    %1 = vector.extract_strided_slice %0 {offsets = [0, 3], sizes = [16, 1], strides = [1, 1]} : vector<16x4xf32> to vector<16x1xf32>
    %c7 = arith.constant 7 : index
    %c0_1 = arith.constant 0 : index
    %2 = vector.load %arg4[%c7, %c0_1] : memref<8x64xf32, #tpu.memory_space<vmem>>, vector<1x2xf32>
    %c7_2 = arith.constant 7 : index
    %c2 = arith.constant 2 : index
    %3 = vector.load %arg4[%c7_2, %c2] : memref<8x64xf32, #tpu.memory_space<vmem>>, vector<1x2xf32>
    %4 = vector.broadcast %1 : vector<16x1xf32> to vector<16x2xf32>
    %5 = vector.broadcast %2 : vector<1x2xf32> to vector<16x2xf32>
    %6 = arith.mulf %4, %5 : vector<16x2xf32>
    %7 = vector.broadcast %3 : vector<1x2xf32> to vector<16x2xf32>
    %8 = arith.addf %6, %7 : vector<16x2xf32>
    %9 = math.sin %8 : vector<16x2xf32>
    %cst = arith.constant 1.000000e+00 : f32
    %10 = vector.broadcast %cst : f32 to vector<16x1xf32>
    %11 = tpu.concatenate %0, %9, %10 in 1 : vector<16x4xf32>, vector<16x2xf32>, vector<16x1xf32> -> vector<16x7xf32>
    %c0_3 = arith.constant 0 : index
    %c0_4 = arith.constant 0 : index
    %12 = vector.load %arg4[%c0_3, %c0_4] : memref<8x64xf32, #tpu.memory_space<vmem>>, vector<7x64xf32>
    %cst_5 = arith.constant dense<0.000000e+00> : vector<16x64xf32>
    %13 = tpu.matmul %11, %12, %cst_5 {dimension_numbers = #tpu.dot_dimension_numbers<[1], [0], [0], [1], [0, 0, 1, 1], [], []>} : vector<16x7xf32>, vector<7x64xf32>, vector<16x64xf32> -> vector<16x64xf32>
    %c0_6 = arith.constant 0 : index
    %c0_7 = arith.constant 0 : index
    %c0_8 = arith.constant 0 : index
    %14 = vector.load %arg5[%c0_6, %c0_7, %c0_8] : memref<2x64x192xf32, #tpu.memory_space<vmem>>, vector<1x64x192xf32>
    %15 = vector.shape_cast %14 : vector<1x64x192xf32> to vector<64x192xf32>
    %cst_9 = arith.constant dense<0.000000e+00> : vector<16x192xf32>
    %16 = tpu.matmul %13, %15, %cst_9 {dimension_numbers = #tpu.dot_dimension_numbers<[1], [0], [0], [1], [0, 0, 1, 1], [], []>} : vector<16x64xf32>, vector<64x192xf32>, vector<16x192xf32> -> vector<16x192xf32>
    %c0_10 = arith.constant 0 : index
    %c0_11 = arith.constant 0 : index
    %c0_12 = arith.constant 0 : index
    %17 = vector.load %arg9[%c0_10, %c0_11, %c0_12] : memref<2x8x192xf32, #tpu.memory_space<vmem>>, vector<1x1x192xf32>
    %18 = vector.shape_cast %17 : vector<1x1x192xf32> to vector<1x192xf32>
    %19 = vector.broadcast %18 : vector<1x192xf32> to vector<16x192xf32>
    %20 = arith.addf %16, %19 : vector<16x192xf32>
    %c0_13 = arith.constant 0 : index
    %c0_14 = arith.constant 0 : index
    %21 = vector.load %arg12[%c0_13, %c0_14] : memref<16x192xf32, #tpu.memory_space<vmem>>, vector<16x192xf32>
    tpu.vector_store %arg12[%c0_13, %c0_14], %20 {strides = array<i32>} : memref<16x192xf32, #tpu.memory_space<vmem>>, vector<16x192xf32>,
    %c0_15 = arith.constant 0 : index
    %c1 = arith.constant 1 : index
    %c0_16 = arith.constant 0 : index
    %22 = vector.load %arg9[%c0_15, %c1, %c0_16] : memref<2x8x192xf32, #tpu.memory_space<vmem>>, vector<1x1x64xf32>
    %23 = vector.shape_cast %22 : vector<1x1x64xf32> to vector<1x64xf32>
    %24 = vector.broadcast %23 : vector<1x64xf32> to vector<16x64xf32>
    %25 = arith.addf %13, %24 : vector<16x64xf32>
    %c0_17 = arith.constant 0 : index
    %c0_18 = arith.constant 0 : index
    %26 = vector.load %arg12[%c0_17, %c0_18] : memref<16x192xf32, #tpu.memory_space<vmem>>, vector<16x16xf32>
    %c0_19 = arith.constant 0 : index
    %c64 = arith.constant 64 : index
    %27 = vector.load %arg12[%c0_19, %c64] : memref<16x192xf32, #tpu.memory_space<vmem>>, vector<16x16xf32>
    %c0_20 = arith.constant 0 : index
    %c128 = arith.constant 128 : index
    %28 = vector.load %arg12[%c0_20, %c128] : memref<16x192xf32, #tpu.memory_space<vmem>>, vector<16x16xf32>
    %cst_21 = arith.constant dense<0.000000e+00> : vector<16x16xf32>
    %29 = tpu.matmul %26, %27, %cst_21 {dimension_numbers = #tpu.dot_dimension_numbers<[1], [1], [0], [0], [0, 0, 1, 0], [], []>} : vector<16x16xf32>, vector<16x16xf32>, vector<16x16xf32> -> vector<16x16xf32>
    %cst_22 = arith.constant 2.500000e-01 : f32
    %30 = vector.broadcast %cst_22 : f32 to vector<16x16xf32>
    %31 = arith.mulf %29, %30 : vector<16x16xf32>
    %c0_23 = arith.constant 0 : index
    %c0_24 = arith.constant 0 : index
    %32 = vector.load %arg2[%c0_23, %c0_24] : memref<16x16xf32, #tpu.memory_space<vmem>>, vector<16x16xf32>
    %33 = arith.addf %31, %32 : vector<16x16xf32>
    %cst_25 = arith.constant dense<0xFF800000> : vector<16xf32>
    %34 = vector.multi_reduction <maximumf>, %33, %cst_25 [1] : vector<16x16xf32> to vector<16xf32>
    %35 = vector.shape_cast %34 : vector<16xf32> to vector<16x1xf32>
    %36 = vector.broadcast %35 : vector<16x1xf32> to vector<16x16xf32>
    %37 = arith.subf %33, %36 : vector<16x16xf32>
    %38 = math.exp %37 : vector<16x16xf32>
    %cst_26 = arith.constant dense<0.000000e+00> : vector<16xf32>
    %39 = vector.multi_reduction <add>, %38, %cst_26 [1] : vector<16x16xf32> to vector<16xf32>
    %40 = vector.shape_cast %39 : vector<16xf32> to vector<16x1xf32>
    %41 = tpu.reciprocal %40 {approx = true} : vector<16x1xf32> -> vector<16x1xf32>
    %42 = vector.broadcast %41 : vector<16x1xf32> to vector<16x16xf32>
    %43 = arith.mulf %38, %42 : vector<16x16xf32>
    %cst_27 = arith.constant dense<0.000000e+00> : vector<16x16xf32>
    %44 = tpu.matmul %43, %28, %cst_27 {dimension_numbers = #tpu.dot_dimension_numbers<[1], [0], [0], [1], [0, 0, 1, 1], [], []>} : vector<16x16xf32>, vector<16x16xf32>, vector<16x16xf32> -> vector<16x16xf32>
    %c0_28 = arith.constant 0 : index
    %c0_29 = arith.constant 0 : index
    %c0_30 = arith.constant 0 : index
    %45 = vector.load %arg6[%c0_28, %c0_29, %c0_30] : memref<2x64x64xf32, #tpu.memory_space<vmem>>, vector<1x16x64xf32>
    %46 = vector.shape_cast %45 : vector<1x16x64xf32> to vector<16x64xf32>
    %cst_31 = arith.constant dense<0.000000e+00> : vector<16x64xf32>
    %47 = tpu.matmul %44, %46, %cst_31 {dimension_numbers = #tpu.dot_dimension_numbers<[1], [0], [0], [1], [0, 0, 1, 1], [], []>} : vector<16x16xf32>, vector<16x64xf32>, vector<16x64xf32> -> vector<16x64xf32>
    %48 = arith.addf %25, %47 : vector<16x64xf32>
    %c0_32 = arith.constant 0 : index
    %c16 = arith.constant 16 : index
    %49 = vector.load %arg12[%c0_32, %c16] : memref<16x192xf32, #tpu.memory_space<vmem>>, vector<16x16xf32>
    %c0_33 = arith.constant 0 : index
    %c80 = arith.constant 80 : index
    %50 = vector.load %arg12[%c0_33, %c80] : memref<16x192xf32, #tpu.memory_space<vmem>>, vector<16x16xf32>
    %c0_34 = arith.constant 0 : index
    %c144 = arith.constant 144 : index
    %51 = vector.load %arg12[%c0_34, %c144] : memref<16x192xf32, #tpu.memory_space<vmem>>, vector<16x16xf32>
    %cst_35 = arith.constant dense<0.000000e+00> : vector<16x16xf32>
    %52 = tpu.matmul %49, %50, %cst_35 {dimension_numbers = #tpu.dot_dimension_numbers<[1], [1], [0], [0], [0, 0, 1, 0], [], []>} : vector<16x16xf32>, vector<16x16xf32>, vector<16x16xf32> -> vector<16x16xf32>
    %cst_36 = arith.constant 2.500000e-01 : f32
    %53 = vector.broadcast %cst_36 : f32 to vector<16x16xf32>
    %54 = arith.mulf %52, %53 : vector<16x16xf32>
    %c0_37 = arith.constant 0 : index
    %c0_38 = arith.constant 0 : index
    %55 = vector.load %arg2[%c0_37, %c0_38] : memref<16x16xf32, #tpu.memory_space<vmem>>, vector<16x16xf32>
    %56 = arith.addf %54, %55 : vector<16x16xf32>
    %cst_39 = arith.constant dense<0xFF800000> : vector<16xf32>
    %57 = vector.multi_reduction <maximumf>, %56, %cst_39 [1] : vector<16x16xf32> to vector<16xf32>
    %58 = vector.shape_cast %57 : vector<16xf32> to vector<16x1xf32>
    %59 = vector.broadcast %58 : vector<16x1xf32> to vector<16x16xf32>
    %60 = arith.subf %56, %59 : vector<16x16xf32>
    %61 = math.exp %60 : vector<16x16xf32>
    %cst_40 = arith.constant dense<0.000000e+00> : vector<16xf32>
    %62 = vector.multi_reduction <add>, %61, %cst_40 [1] : vector<16x16xf32> to vector<16xf32>
    %63 = vector.shape_cast %62 : vector<16xf32> to vector<16x1xf32>
    %64 = tpu.reciprocal %63 {approx = true} : vector<16x1xf32> -> vector<16x1xf32>
    %65 = vector.broadcast %64 : vector<16x1xf32> to vector<16x16xf32>
    %66 = arith.mulf %61, %65 : vector<16x16xf32>
    %cst_41 = arith.constant dense<0.000000e+00> : vector<16x16xf32>
    %67 = tpu.matmul %66, %51, %cst_41 {dimension_numbers = #tpu.dot_dimension_numbers<[1], [0], [0], [1], [0, 0, 1, 1], [], []>} : vector<16x16xf32>, vector<16x16xf32>, vector<16x16xf32> -> vector<16x16xf32>
    %c0_42 = arith.constant 0 : index
    %c16_43 = arith.constant 16 : index
    %c0_44 = arith.constant 0 : index
    %68 = vector.load %arg6[%c0_42, %c16_43, %c0_44] : memref<2x64x64xf32, #tpu.memory_space<vmem>>, vector<1x16x64xf32>
    %69 = vector.shape_cast %68 : vector<1x16x64xf32> to vector<16x64xf32>
    %cst_45 = arith.constant dense<0.000000e+00> : vector<16x64xf32>
    %70 = tpu.matmul %67, %69, %cst_45 {dimension_numbers = #tpu.dot_dimension_numbers<[1], [0], [0], [1], [0, 0, 1, 1], [], []>} : vector<16x16xf32>, vector<16x64xf32>, vector<16x64xf32> -> vector<16x64xf32>
    %71 = arith.addf %48, %70 : vector<16x64xf32>
    %c0_46 = arith.constant 0 : index
    %c32 = arith.constant 32 : index
    %72 = vector.load %arg12[%c0_46, %c32] : memref<16x192xf32, #tpu.memory_space<vmem>>, vector<16x16xf32>
    %c0_47 = arith.constant 0 : index
    %c96 = arith.constant 96 : index
    %73 = vector.load %arg12[%c0_47, %c96] : memref<16x192xf32, #tpu.memory_space<vmem>>, vector<16x16xf32>
    %c0_48 = arith.constant 0 : index
    %c160 = arith.constant 160 : index
    %74 = vector.load %arg12[%c0_48, %c160] : memref<16x192xf32, #tpu.memory_space<vmem>>, vector<16x16xf32>
    %cst_49 = arith.constant dense<0.000000e+00> : vector<16x16xf32>
    %75 = tpu.matmul %72, %73, %cst_49 {dimension_numbers = #tpu.dot_dimension_numbers<[1], [1], [0], [0], [0, 0, 1, 0], [], []>} : vector<16x16xf32>, vector<16x16xf32>, vector<16x16xf32> -> vector<16x16xf32>
    %cst_50 = arith.constant 2.500000e-01 : f32
    %76 = vector.broadcast %cst_50 : f32 to vector<16x16xf32>
    %77 = arith.mulf %75, %76 : vector<16x16xf32>
    %c0_51 = arith.constant 0 : index
    %c0_52 = arith.constant 0 : index
    %78 = vector.load %arg2[%c0_51, %c0_52] : memref<16x16xf32, #tpu.memory_space<vmem>>, vector<16x16xf32>
    %79 = arith.addf %77, %78 : vector<16x16xf32>
    %cst_53 = arith.constant dense<0xFF800000> : vector<16xf32>
    %80 = vector.multi_reduction <maximumf>, %79, %cst_53 [1] : vector<16x16xf32> to vector<16xf32>
    %81 = vector.shape_cast %80 : vector<16xf32> to vector<16x1xf32>
    %82 = vector.broadcast %81 : vector<16x1xf32> to vector<16x16xf32>
    %83 = arith.subf %79, %82 : vector<16x16xf32>
    %84 = math.exp %83 : vector<16x16xf32>
    %cst_54 = arith.constant dense<0.000000e+00> : vector<16xf32>
    %85 = vector.multi_reduction <add>, %84, %cst_54 [1] : vector<16x16xf32> to vector<16xf32>
    %86 = vector.shape_cast %85 : vector<16xf32> to vector<16x1xf32>
    %87 = tpu.reciprocal %86 {approx = true} : vector<16x1xf32> -> vector<16x1xf32>
    %88 = vector.broadcast %87 : vector<16x1xf32> to vector<16x16xf32>
    %89 = arith.mulf %84, %88 : vector<16x16xf32>
    %cst_55 = arith.constant dense<0.000000e+00> : vector<16x16xf32>
    %90 = tpu.matmul %89, %74, %cst_55 {dimension_numbers = #tpu.dot_dimension_numbers<[1], [0], [0], [1], [0, 0, 1, 1], [], []>} : vector<16x16xf32>, vector<16x16xf32>, vector<16x16xf32> -> vector<16x16xf32>
    %c0_56 = arith.constant 0 : index
    %c32_57 = arith.constant 32 : index
    %c0_58 = arith.constant 0 : index
    %91 = vector.load %arg6[%c0_56, %c32_57, %c0_58] : memref<2x64x64xf32, #tpu.memory_space<vmem>>, vector<1x16x64xf32>
    %92 = vector.shape_cast %91 : vector<1x16x64xf32> to vector<16x64xf32>
    %cst_59 = arith.constant dense<0.000000e+00> : vector<16x64xf32>
    %93 = tpu.matmul %90, %92, %cst_59 {dimension_numbers = #tpu.dot_dimension_numbers<[1], [0], [0], [1], [0, 0, 1, 1], [], []>} : vector<16x16xf32>, vector<16x64xf32>, vector<16x64xf32> -> vector<16x64xf32>
    %94 = arith.addf %71, %93 : vector<16x64xf32>
    %c0_60 = arith.constant 0 : index
    %c48 = arith.constant 48 : index
    %95 = vector.load %arg12[%c0_60, %c48] : memref<16x192xf32, #tpu.memory_space<vmem>>, vector<16x16xf32>
    %c0_61 = arith.constant 0 : index
    %c112 = arith.constant 112 : index
    %96 = vector.load %arg12[%c0_61, %c112] : memref<16x192xf32, #tpu.memory_space<vmem>>, vector<16x16xf32>
    %c0_62 = arith.constant 0 : index
    %c176 = arith.constant 176 : index
    %97 = vector.load %arg12[%c0_62, %c176] : memref<16x192xf32, #tpu.memory_space<vmem>>, vector<16x16xf32>
    %cst_63 = arith.constant dense<0.000000e+00> : vector<16x16xf32>
    %98 = tpu.matmul %95, %96, %cst_63 {dimension_numbers = #tpu.dot_dimension_numbers<[1], [1], [0], [0], [0, 0, 1, 0], [], []>} : vector<16x16xf32>, vector<16x16xf32>, vector<16x16xf32> -> vector<16x16xf32>
    %cst_64 = arith.constant 2.500000e-01 : f32
    %99 = vector.broadcast %cst_64 : f32 to vector<16x16xf32>
    %100 = arith.mulf %98, %99 : vector<16x16xf32>
    %c0_65 = arith.constant 0 : index
    %c0_66 = arith.constant 0 : index
    %101 = vector.load %arg2[%c0_65, %c0_66] : memref<16x16xf32, #tpu.memory_space<vmem>>, vector<16x16xf32>
    %102 = arith.addf %100, %101 : vector<16x16xf32>
    %cst_67 = arith.constant dense<0xFF800000> : vector<16xf32>
    %103 = vector.multi_reduction <maximumf>, %102, %cst_67 [1] : vector<16x16xf32> to vector<16xf32>
    %104 = vector.shape_cast %103 : vector<16xf32> to vector<16x1xf32>
    %105 = vector.broadcast %104 : vector<16x1xf32> to vector<16x16xf32>
    %106 = arith.subf %102, %105 : vector<16x16xf32>
    %107 = math.exp %106 : vector<16x16xf32>
    %cst_68 = arith.constant dense<0.000000e+00> : vector<16xf32>
    %108 = vector.multi_reduction <add>, %107, %cst_68 [1] : vector<16x16xf32> to vector<16xf32>
    %109 = vector.shape_cast %108 : vector<16xf32> to vector<16x1xf32>
    %110 = tpu.reciprocal %109 {approx = true} : vector<16x1xf32> -> vector<16x1xf32>
    %111 = vector.broadcast %110 : vector<16x1xf32> to vector<16x16xf32>
    %112 = arith.mulf %107, %111 : vector<16x16xf32>
    %cst_69 = arith.constant dense<0.000000e+00> : vector<16x16xf32>
    %113 = tpu.matmul %112, %97, %cst_69 {dimension_numbers = #tpu.dot_dimension_numbers<[1], [0], [0], [1], [0, 0, 1, 1], [], []>} : vector<16x16xf32>, vector<16x16xf32>, vector<16x16xf32> -> vector<16x16xf32>
    %c0_70 = arith.constant 0 : index
    %c48_71 = arith.constant 48 : index
    %c0_72 = arith.constant 0 : index
    %114 = vector.load %arg6[%c0_70, %c48_71, %c0_72] : memref<2x64x64xf32, #tpu.memory_space<vmem>>, vector<1x16x64xf32>
    %115 = vector.shape_cast %114 : vector<1x16x64xf32> to vector<16x64xf32>
    %cst_73 = arith.constant dense<0.000000e+00> : vector<16x64xf32>
    %116 = tpu.matmul %113, %115, %cst_73 {dimension_numbers = #tpu.dot_dimension_numbers<[1], [0], [0], [1], [0, 0, 1, 1], [], []>} : vector<16x16xf32>, vector<16x64xf32>, vector<16x64xf32> -> vector<16x64xf32>
    %117 = arith.addf %94, %116 : vector<16x64xf32>
    %c0_74 = arith.constant 0 : index
    %c2_75 = arith.constant 2 : index
    %c0_76 = arith.constant 0 : index
    %118 = vector.load %arg9[%c0_74, %c2_75, %c0_76] : memref<2x8x192xf32, #tpu.memory_space<vmem>>, vector<1x1x64xf32>
    %119 = vector.shape_cast %118 : vector<1x1x64xf32> to vector<1x64xf32>
    %c0_77 = arith.constant 0 : index
    %c3 = arith.constant 3 : index
    %c0_78 = arith.constant 0 : index
    %120 = vector.load %arg9[%c0_77, %c3, %c0_78] : memref<2x8x192xf32, #tpu.memory_space<vmem>>, vector<1x1x64xf32>
    %121 = vector.shape_cast %120 : vector<1x1x64xf32> to vector<1x64xf32>
    %cst_79 = arith.constant dense<0.000000e+00> : vector<16xf32>
    %122 = vector.multi_reduction <add>, %117, %cst_79 [1] : vector<16x64xf32> to vector<16xf32>
    %123 = vector.shape_cast %122 : vector<16xf32> to vector<16x1xf32>
    %cst_80 = arith.constant 6.400000e+01 : f32
    %124 = vector.broadcast %cst_80 : f32 to vector<16x1xf32>
    %125 = arith.divf %123, %124 : vector<16x1xf32>
    %126 = vector.broadcast %125 : vector<16x1xf32> to vector<16x64xf32>
    %127 = arith.subf %117, %126 : vector<16x64xf32>
    %128 = arith.mulf %127, %127 : vector<16x64xf32>
    %cst_81 = arith.constant dense<0.000000e+00> : vector<16xf32>
    %129 = vector.multi_reduction <add>, %128, %cst_81 [1] : vector<16x64xf32> to vector<16xf32>
    %130 = vector.shape_cast %129 : vector<16xf32> to vector<16x1xf32>
    %cst_82 = arith.constant 6.400000e+01 : f32
    %131 = vector.broadcast %cst_82 : f32 to vector<16x1xf32>
    %132 = arith.divf %130, %131 : vector<16x1xf32>
    %133 = vector.broadcast %125 : vector<16x1xf32> to vector<16x64xf32>
    %134 = arith.subf %117, %133 : vector<16x64xf32>
    %cst_83 = arith.constant 9.99999974E-6 : f32
    %135 = vector.broadcast %cst_83 : f32 to vector<16x1xf32>
    %136 = arith.addf %132, %135 : vector<16x1xf32>
    %137 = math.rsqrt %136 : vector<16x1xf32>
    %138 = vector.broadcast %137 : vector<16x1xf32> to vector<16x64xf32>
    %139 = arith.mulf %134, %138 : vector<16x64xf32>
    %140 = vector.broadcast %119 : vector<1x64xf32> to vector<16x64xf32>
    %141 = arith.mulf %139, %140 : vector<16x64xf32>
    %142 = vector.broadcast %121 : vector<1x64xf32> to vector<16x64xf32>
    %143 = arith.addf %141, %142 : vector<16x64xf32>
    %c0_84 = arith.constant 0 : index
    %c0_85 = arith.constant 0 : index
    %c0_86 = arith.constant 0 : index
    %144 = vector.load %arg7[%c0_84, %c0_85, %c0_86] : memref<2x64x128xf32, #tpu.memory_space<vmem>>, vector<1x64x128xf32>
    %145 = vector.shape_cast %144 : vector<1x64x128xf32> to vector<64x128xf32>
    %cst_87 = arith.constant dense<0.000000e+00> : vector<16x128xf32>
    %146 = tpu.matmul %143, %145, %cst_87 {dimension_numbers = #tpu.dot_dimension_numbers<[1], [0], [0], [1], [0, 0, 1, 1], [], []>} : vector<16x64xf32>, vector<64x128xf32>, vector<16x128xf32> -> vector<16x128xf32>
    %c0_88 = arith.constant 0 : index
    %c4 = arith.constant 4 : index
    %c0_89 = arith.constant 0 : index
    %147 = vector.load %arg9[%c0_88, %c4, %c0_89] : memref<2x8x192xf32, #tpu.memory_space<vmem>>, vector<1x1x128xf32>
    %148 = vector.shape_cast %147 : vector<1x1x128xf32> to vector<1x128xf32>
    %149 = vector.broadcast %148 : vector<1x128xf32> to vector<16x128xf32>
    %150 = arith.addf %146, %149 : vector<16x128xf32>
    %cst_90 = arith.constant 0.000000e+00 : f32
    %151 = vector.broadcast %cst_90 : f32 to vector<16x128xf32>
    %152 = arith.maximumf %150, %151 : vector<16x128xf32>
    %c0_91 = arith.constant 0 : index
    %c0_92 = arith.constant 0 : index
    %c0_93 = arith.constant 0 : index
    %153 = vector.load %arg8[%c0_91, %c0_92, %c0_93] : memref<2x128x64xf32, #tpu.memory_space<vmem>>, vector<1x128x64xf32>
    %154 = vector.shape_cast %153 : vector<1x128x64xf32> to vector<128x64xf32>
    %cst_94 = arith.constant dense<0.000000e+00> : vector<16x64xf32>
    %155 = tpu.matmul %152, %154, %cst_94 {dimension_numbers = #tpu.dot_dimension_numbers<[1], [0], [0], [1], [0, 0, 1, 1], [], []>} : vector<16x128xf32>, vector<128x64xf32>, vector<16x64xf32> -> vector<16x64xf32>
    %c0_95 = arith.constant 0 : index
    %c5 = arith.constant 5 : index
    %c0_96 = arith.constant 0 : index
    %156 = vector.load %arg9[%c0_95, %c5, %c0_96] : memref<2x8x192xf32, #tpu.memory_space<vmem>>, vector<1x1x64xf32>
    %157 = vector.shape_cast %156 : vector<1x1x64xf32> to vector<1x64xf32>
    %158 = vector.broadcast %157 : vector<1x64xf32> to vector<16x64xf32>
    %159 = arith.addf %155, %158 : vector<16x64xf32>
    %160 = arith.addf %143, %159 : vector<16x64xf32>
    %c0_97 = arith.constant 0 : index
    %c6 = arith.constant 6 : index
    %c0_98 = arith.constant 0 : index
    %161 = vector.load %arg9[%c0_97, %c6, %c0_98] : memref<2x8x192xf32, #tpu.memory_space<vmem>>, vector<1x1x64xf32>
    %162 = vector.shape_cast %161 : vector<1x1x64xf32> to vector<1x64xf32>
    %c0_99 = arith.constant 0 : index
    %c7_100 = arith.constant 7 : index
    %c0_101 = arith.constant 0 : index
    %163 = vector.load %arg9[%c0_99, %c7_100, %c0_101] : memref<2x8x192xf32, #tpu.memory_space<vmem>>, vector<1x1x64xf32>
    %164 = vector.shape_cast %163 : vector<1x1x64xf32> to vector<1x64xf32>
    %cst_102 = arith.constant dense<0.000000e+00> : vector<16xf32>
    %165 = vector.multi_reduction <add>, %160, %cst_102 [1] : vector<16x64xf32> to vector<16xf32>
    %166 = vector.shape_cast %165 : vector<16xf32> to vector<16x1xf32>
    %cst_103 = arith.constant 6.400000e+01 : f32
    %167 = vector.broadcast %cst_103 : f32 to vector<16x1xf32>
    %168 = arith.divf %166, %167 : vector<16x1xf32>
    %169 = vector.broadcast %168 : vector<16x1xf32> to vector<16x64xf32>
    %170 = arith.subf %160, %169 : vector<16x64xf32>
    %171 = arith.mulf %170, %170 : vector<16x64xf32>
    %cst_104 = arith.constant dense<0.000000e+00> : vector<16xf32>
    %172 = vector.multi_reduction <add>, %171, %cst_104 [1] : vector<16x64xf32> to vector<16xf32>
    %173 = vector.shape_cast %172 : vector<16xf32> to vector<16x1xf32>
    %cst_105 = arith.constant 6.400000e+01 : f32
    %174 = vector.broadcast %cst_105 : f32 to vector<16x1xf32>
    %175 = arith.divf %173, %174 : vector<16x1xf32>
    %176 = vector.broadcast %168 : vector<16x1xf32> to vector<16x64xf32>
    %177 = arith.subf %160, %176 : vector<16x64xf32>
    %cst_106 = arith.constant 9.99999974E-6 : f32
    %178 = vector.broadcast %cst_106 : f32 to vector<16x1xf32>
    %179 = arith.addf %175, %178 : vector<16x1xf32>
    %180 = math.rsqrt %179 : vector<16x1xf32>
    %181 = vector.broadcast %180 : vector<16x1xf32> to vector<16x64xf32>
    %182 = arith.mulf %177, %181 : vector<16x64xf32>
    %183 = vector.broadcast %162 : vector<1x64xf32> to vector<16x64xf32>
    %184 = arith.mulf %182, %183 : vector<16x64xf32>
    %185 = vector.broadcast %164 : vector<1x64xf32> to vector<16x64xf32>
    %186 = arith.addf %184, %185 : vector<16x64xf32>
    %c1_107 = arith.constant 1 : index
    %c0_108 = arith.constant 0 : index
    %c0_109 = arith.constant 0 : index
    %187 = vector.load %arg5[%c1_107, %c0_108, %c0_109] : memref<2x64x192xf32, #tpu.memory_space<vmem>>, vector<1x64x192xf32>
    %188 = vector.shape_cast %187 : vector<1x64x192xf32> to vector<64x192xf32>
    %cst_110 = arith.constant dense<0.000000e+00> : vector<16x192xf32>
    %189 = tpu.matmul %186, %188, %cst_110 {dimension_numbers = #tpu.dot_dimension_numbers<[1], [0], [0], [1], [0, 0, 1, 1], [], []>} : vector<16x64xf32>, vector<64x192xf32>, vector<16x192xf32> -> vector<16x192xf32>
    %c1_111 = arith.constant 1 : index
    %c0_112 = arith.constant 0 : index
    %c0_113 = arith.constant 0 : index
    %190 = vector.load %arg9[%c1_111, %c0_112, %c0_113] : memref<2x8x192xf32, #tpu.memory_space<vmem>>, vector<1x1x192xf32>
    %191 = vector.shape_cast %190 : vector<1x1x192xf32> to vector<1x192xf32>
    %192 = vector.broadcast %191 : vector<1x192xf32> to vector<16x192xf32>
    %193 = arith.addf %189, %192 : vector<16x192xf32>
    %c0_114 = arith.constant 0 : index
    %c0_115 = arith.constant 0 : index
    %194 = vector.load %arg12[%c0_114, %c0_115] : memref<16x192xf32, #tpu.memory_space<vmem>>, vector<16x192xf32>
    tpu.vector_store %arg12[%c0_114, %c0_115], %193 {strides = array<i32>} : memref<16x192xf32, #tpu.memory_space<vmem>>, vector<16x192xf32>,
    %c1_116 = arith.constant 1 : index
    %c1_117 = arith.constant 1 : index
    %c0_118 = arith.constant 0 : index
    %195 = vector.load %arg9[%c1_116, %c1_117, %c0_118] : memref<2x8x192xf32, #tpu.memory_space<vmem>>, vector<1x1x64xf32>
    %196 = vector.shape_cast %195 : vector<1x1x64xf32> to vector<1x64xf32>
    %197 = vector.broadcast %196 : vector<1x64xf32> to vector<16x64xf32>
    %198 = arith.addf %186, %197 : vector<16x64xf32>
    %c0_119 = arith.constant 0 : index
    %c0_120 = arith.constant 0 : index
    %199 = vector.load %arg12[%c0_119, %c0_120] : memref<16x192xf32, #tpu.memory_space<vmem>>, vector<16x16xf32>
    %c0_121 = arith.constant 0 : index
    %c64_122 = arith.constant 64 : index
    %200 = vector.load %arg12[%c0_121, %c64_122] : memref<16x192xf32, #tpu.memory_space<vmem>>, vector<16x16xf32>
    %c0_123 = arith.constant 0 : index
    %c128_124 = arith.constant 128 : index
    %201 = vector.load %arg12[%c0_123, %c128_124] : memref<16x192xf32, #tpu.memory_space<vmem>>, vector<16x16xf32>
    %cst_125 = arith.constant dense<0.000000e+00> : vector<16x16xf32>
    %202 = tpu.matmul %199, %200, %cst_125 {dimension_numbers = #tpu.dot_dimension_numbers<[1], [1], [0], [0], [0, 0, 1, 0], [], []>} : vector<16x16xf32>, vector<16x16xf32>, vector<16x16xf32> -> vector<16x16xf32>
    %cst_126 = arith.constant 2.500000e-01 : f32
    %203 = vector.broadcast %cst_126 : f32 to vector<16x16xf32>
    %204 = arith.mulf %202, %203 : vector<16x16xf32>
    %c0_127 = arith.constant 0 : index
    %c0_128 = arith.constant 0 : index
    %205 = vector.load %arg2[%c0_127, %c0_128] : memref<16x16xf32, #tpu.memory_space<vmem>>, vector<16x16xf32>
    %206 = arith.addf %204, %205 : vector<16x16xf32>
    %cst_129 = arith.constant dense<0xFF800000> : vector<16xf32>
    %207 = vector.multi_reduction <maximumf>, %206, %cst_129 [1] : vector<16x16xf32> to vector<16xf32>
    %208 = vector.shape_cast %207 : vector<16xf32> to vector<16x1xf32>
    %209 = vector.broadcast %208 : vector<16x1xf32> to vector<16x16xf32>
    %210 = arith.subf %206, %209 : vector<16x16xf32>
    %211 = math.exp %210 : vector<16x16xf32>
    %cst_130 = arith.constant dense<0.000000e+00> : vector<16xf32>
    %212 = vector.multi_reduction <add>, %211, %cst_130 [1] : vector<16x16xf32> to vector<16xf32>
    %213 = vector.shape_cast %212 : vector<16xf32> to vector<16x1xf32>
    %214 = tpu.reciprocal %213 {approx = true} : vector<16x1xf32> -> vector<16x1xf32>
    %215 = vector.broadcast %214 : vector<16x1xf32> to vector<16x16xf32>
    %216 = arith.mulf %211, %215 : vector<16x16xf32>
    %cst_131 = arith.constant dense<0.000000e+00> : vector<16x16xf32>
    %217 = tpu.matmul %216, %201, %cst_131 {dimension_numbers = #tpu.dot_dimension_numbers<[1], [0], [0], [1], [0, 0, 1, 1], [], []>} : vector<16x16xf32>, vector<16x16xf32>, vector<16x16xf32> -> vector<16x16xf32>
    %c1_132 = arith.constant 1 : index
    %c0_133 = arith.constant 0 : index
    %c0_134 = arith.constant 0 : index
    %218 = vector.load %arg6[%c1_132, %c0_133, %c0_134] : memref<2x64x64xf32, #tpu.memory_space<vmem>>, vector<1x16x64xf32>
    %219 = vector.shape_cast %218 : vector<1x16x64xf32> to vector<16x64xf32>
    %cst_135 = arith.constant dense<0.000000e+00> : vector<16x64xf32>
    %220 = tpu.matmul %217, %219, %cst_135 {dimension_numbers = #tpu.dot_dimension_numbers<[1], [0], [0], [1], [0, 0, 1, 1], [], []>} : vector<16x16xf32>, vector<16x64xf32>, vector<16x64xf32> -> vector<16x64xf32>
    %221 = arith.addf %198, %220 : vector<16x64xf32>
    %c0_136 = arith.constant 0 : index
    %c16_137 = arith.constant 16 : index
    %222 = vector.load %arg12[%c0_136, %c16_137] : memref<16x192xf32, #tpu.memory_space<vmem>>, vector<16x16xf32>
    %c0_138 = arith.constant 0 : index
    %c80_139 = arith.constant 80 : index
    %223 = vector.load %arg12[%c0_138, %c80_139] : memref<16x192xf32, #tpu.memory_space<vmem>>, vector<16x16xf32>
    %c0_140 = arith.constant 0 : index
    %c144_141 = arith.constant 144 : index
    %224 = vector.load %arg12[%c0_140, %c144_141] : memref<16x192xf32, #tpu.memory_space<vmem>>, vector<16x16xf32>
    %cst_142 = arith.constant dense<0.000000e+00> : vector<16x16xf32>
    %225 = tpu.matmul %222, %223, %cst_142 {dimension_numbers = #tpu.dot_dimension_numbers<[1], [1], [0], [0], [0, 0, 1, 0], [], []>} : vector<16x16xf32>, vector<16x16xf32>, vector<16x16xf32> -> vector<16x16xf32>
    %cst_143 = arith.constant 2.500000e-01 : f32
    %226 = vector.broadcast %cst_143 : f32 to vector<16x16xf32>
    %227 = arith.mulf %225, %226 : vector<16x16xf32>
    %c0_144 = arith.constant 0 : index
    %c0_145 = arith.constant 0 : index
    %228 = vector.load %arg2[%c0_144, %c0_145] : memref<16x16xf32, #tpu.memory_space<vmem>>, vector<16x16xf32>
    %229 = arith.addf %227, %228 : vector<16x16xf32>
    %cst_146 = arith.constant dense<0xFF800000> : vector<16xf32>
    %230 = vector.multi_reduction <maximumf>, %229, %cst_146 [1] : vector<16x16xf32> to vector<16xf32>
    %231 = vector.shape_cast %230 : vector<16xf32> to vector<16x1xf32>
    %232 = vector.broadcast %231 : vector<16x1xf32> to vector<16x16xf32>
    %233 = arith.subf %229, %232 : vector<16x16xf32>
    %234 = math.exp %233 : vector<16x16xf32>
    %cst_147 = arith.constant dense<0.000000e+00> : vector<16xf32>
    %235 = vector.multi_reduction <add>, %234, %cst_147 [1] : vector<16x16xf32> to vector<16xf32>
    %236 = vector.shape_cast %235 : vector<16xf32> to vector<16x1xf32>
    %237 = tpu.reciprocal %236 {approx = true} : vector<16x1xf32> -> vector<16x1xf32>
    %238 = vector.broadcast %237 : vector<16x1xf32> to vector<16x16xf32>
    %239 = arith.mulf %234, %238 : vector<16x16xf32>
    %cst_148 = arith.constant dense<0.000000e+00> : vector<16x16xf32>
    %240 = tpu.matmul %239, %224, %cst_148 {dimension_numbers = #tpu.dot_dimension_numbers<[1], [0], [0], [1], [0, 0, 1, 1], [], []>} : vector<16x16xf32>, vector<16x16xf32>, vector<16x16xf32> -> vector<16x16xf32>
    %c1_149 = arith.constant 1 : index
    %c16_150 = arith.constant 16 : index
    %c0_151 = arith.constant 0 : index
    %241 = vector.load %arg6[%c1_149, %c16_150, %c0_151] : memref<2x64x64xf32, #tpu.memory_space<vmem>>, vector<1x16x64xf32>
    %242 = vector.shape_cast %241 : vector<1x16x64xf32> to vector<16x64xf32>
    %cst_152 = arith.constant dense<0.000000e+00> : vector<16x64xf32>
    %243 = tpu.matmul %240, %242, %cst_152 {dimension_numbers = #tpu.dot_dimension_numbers<[1], [0], [0], [1], [0, 0, 1, 1], [], []>} : vector<16x16xf32>, vector<16x64xf32>, vector<16x64xf32> -> vector<16x64xf32>
    %244 = arith.addf %221, %243 : vector<16x64xf32>
    %c0_153 = arith.constant 0 : index
    %c32_154 = arith.constant 32 : index
    %245 = vector.load %arg12[%c0_153, %c32_154] : memref<16x192xf32, #tpu.memory_space<vmem>>, vector<16x16xf32>
    %c0_155 = arith.constant 0 : index
    %c96_156 = arith.constant 96 : index
    %246 = vector.load %arg12[%c0_155, %c96_156] : memref<16x192xf32, #tpu.memory_space<vmem>>, vector<16x16xf32>
    %c0_157 = arith.constant 0 : index
    %c160_158 = arith.constant 160 : index
    %247 = vector.load %arg12[%c0_157, %c160_158] : memref<16x192xf32, #tpu.memory_space<vmem>>, vector<16x16xf32>
    %cst_159 = arith.constant dense<0.000000e+00> : vector<16x16xf32>
    %248 = tpu.matmul %245, %246, %cst_159 {dimension_numbers = #tpu.dot_dimension_numbers<[1], [1], [0], [0], [0, 0, 1, 0], [], []>} : vector<16x16xf32>, vector<16x16xf32>, vector<16x16xf32> -> vector<16x16xf32>
    %cst_160 = arith.constant 2.500000e-01 : f32
    %249 = vector.broadcast %cst_160 : f32 to vector<16x16xf32>
    %250 = arith.mulf %248, %249 : vector<16x16xf32>
    %c0_161 = arith.constant 0 : index
    %c0_162 = arith.constant 0 : index
    %251 = vector.load %arg2[%c0_161, %c0_162] : memref<16x16xf32, #tpu.memory_space<vmem>>, vector<16x16xf32>
    %252 = arith.addf %250, %251 : vector<16x16xf32>
    %cst_163 = arith.constant dense<0xFF800000> : vector<16xf32>
    %253 = vector.multi_reduction <maximumf>, %252, %cst_163 [1] : vector<16x16xf32> to vector<16xf32>
    %254 = vector.shape_cast %253 : vector<16xf32> to vector<16x1xf32>
    %255 = vector.broadcast %254 : vector<16x1xf32> to vector<16x16xf32>
    %256 = arith.subf %252, %255 : vector<16x16xf32>
    %257 = math.exp %256 : vector<16x16xf32>
    %cst_164 = arith.constant dense<0.000000e+00> : vector<16xf32>
    %258 = vector.multi_reduction <add>, %257, %cst_164 [1] : vector<16x16xf32> to vector<16xf32>
    %259 = vector.shape_cast %258 : vector<16xf32> to vector<16x1xf32>
    %260 = tpu.reciprocal %259 {approx = true} : vector<16x1xf32> -> vector<16x1xf32>
    %261 = vector.broadcast %260 : vector<16x1xf32> to vector<16x16xf32>
    %262 = arith.mulf %257, %261 : vector<16x16xf32>
    %cst_165 = arith.constant dense<0.000000e+00> : vector<16x16xf32>
    %263 = tpu.matmul %262, %247, %cst_165 {dimension_numbers = #tpu.dot_dimension_numbers<[1], [0], [0], [1], [0, 0, 1, 1], [], []>} : vector<16x16xf32>, vector<16x16xf32>, vector<16x16xf32> -> vector<16x16xf32>
    %c1_166 = arith.constant 1 : index
    %c32_167 = arith.constant 32 : index
    %c0_168 = arith.constant 0 : index
    %264 = vector.load %arg6[%c1_166, %c32_167, %c0_168] : memref<2x64x64xf32, #tpu.memory_space<vmem>>, vector<1x16x64xf32>
    %265 = vector.shape_cast %264 : vector<1x16x64xf32> to vector<16x64xf32>
    %cst_169 = arith.constant dense<0.000000e+00> : vector<16x64xf32>
    %266 = tpu.matmul %263, %265, %cst_169 {dimension_numbers = #tpu.dot_dimension_numbers<[1], [0], [0], [1], [0, 0, 1, 1], [], []>} : vector<16x16xf32>, vector<16x64xf32>, vector<16x64xf32> -> vector<16x64xf32>
    %267 = arith.addf %244, %266 : vector<16x64xf32>
    %c0_170 = arith.constant 0 : index
    %c48_171 = arith.constant 48 : index
    %268 = vector.load %arg12[%c0_170, %c48_171] : memref<16x192xf32, #tpu.memory_space<vmem>>, vector<16x16xf32>
    %c0_172 = arith.constant 0 : index
    %c112_173 = arith.constant 112 : index
    %269 = vector.load %arg12[%c0_172, %c112_173] : memref<16x192xf32, #tpu.memory_space<vmem>>, vector<16x16xf32>
    %c0_174 = arith.constant 0 : index
    %c176_175 = arith.constant 176 : index
    %270 = vector.load %arg12[%c0_174, %c176_175] : memref<16x192xf32, #tpu.memory_space<vmem>>, vector<16x16xf32>
    %cst_176 = arith.constant dense<0.000000e+00> : vector<16x16xf32>
    %271 = tpu.matmul %268, %269, %cst_176 {dimension_numbers = #tpu.dot_dimension_numbers<[1], [1], [0], [0], [0, 0, 1, 0], [], []>} : vector<16x16xf32>, vector<16x16xf32>, vector<16x16xf32> -> vector<16x16xf32>
    %cst_177 = arith.constant 2.500000e-01 : f32
    %272 = vector.broadcast %cst_177 : f32 to vector<16x16xf32>
    %273 = arith.mulf %271, %272 : vector<16x16xf32>
    %c0_178 = arith.constant 0 : index
    %c0_179 = arith.constant 0 : index
    %274 = vector.load %arg2[%c0_178, %c0_179] : memref<16x16xf32, #tpu.memory_space<vmem>>, vector<16x16xf32>
    %275 = arith.addf %273, %274 : vector<16x16xf32>
    %cst_180 = arith.constant dense<0xFF800000> : vector<16xf32>
    %276 = vector.multi_reduction <maximumf>, %275, %cst_180 [1] : vector<16x16xf32> to vector<16xf32>
    %277 = vector.shape_cast %276 : vector<16xf32> to vector<16x1xf32>
    %278 = vector.broadcast %277 : vector<16x1xf32> to vector<16x16xf32>
    %279 = arith.subf %275, %278 : vector<16x16xf32>
    %280 = math.exp %279 : vector<16x16xf32>
    %cst_181 = arith.constant dense<0.000000e+00> : vector<16xf32>
    %281 = vector.multi_reduction <add>, %280, %cst_181 [1] : vector<16x16xf32> to vector<16xf32>
    %282 = vector.shape_cast %281 : vector<16xf32> to vector<16x1xf32>
    %283 = tpu.reciprocal %282 {approx = true} : vector<16x1xf32> -> vector<16x1xf32>
    %284 = vector.broadcast %283 : vector<16x1xf32> to vector<16x16xf32>
    %285 = arith.mulf %280, %284 : vector<16x16xf32>
    %cst_182 = arith.constant dense<0.000000e+00> : vector<16x16xf32>
    %286 = tpu.matmul %285, %270, %cst_182 {dimension_numbers = #tpu.dot_dimension_numbers<[1], [0], [0], [1], [0, 0, 1, 1], [], []>} : vector<16x16xf32>, vector<16x16xf32>, vector<16x16xf32> -> vector<16x16xf32>
    %c1_183 = arith.constant 1 : index
    %c48_184 = arith.constant 48 : index
    %c0_185 = arith.constant 0 : index
    %287 = vector.load %arg6[%c1_183, %c48_184, %c0_185] : memref<2x64x64xf32, #tpu.memory_space<vmem>>, vector<1x16x64xf32>
    %288 = vector.shape_cast %287 : vector<1x16x64xf32> to vector<16x64xf32>
    %cst_186 = arith.constant dense<0.000000e+00> : vector<16x64xf32>
    %289 = tpu.matmul %286, %288, %cst_186 {dimension_numbers = #tpu.dot_dimension_numbers<[1], [0], [0], [1], [0, 0, 1, 1], [], []>} : vector<16x16xf32>, vector<16x64xf32>, vector<16x64xf32> -> vector<16x64xf32>
    %290 = arith.addf %267, %289 : vector<16x64xf32>
    %c1_187 = arith.constant 1 : index
    %c2_188 = arith.constant 2 : index
    %c0_189 = arith.constant 0 : index
    %291 = vector.load %arg9[%c1_187, %c2_188, %c0_189] : memref<2x8x192xf32, #tpu.memory_space<vmem>>, vector<1x1x64xf32>
    %292 = vector.shape_cast %291 : vector<1x1x64xf32> to vector<1x64xf32>
    %c1_190 = arith.constant 1 : index
    %c3_191 = arith.constant 3 : index
    %c0_192 = arith.constant 0 : index
    %293 = vector.load %arg9[%c1_190, %c3_191, %c0_192] : memref<2x8x192xf32, #tpu.memory_space<vmem>>, vector<1x1x64xf32>
    %294 = vector.shape_cast %293 : vector<1x1x64xf32> to vector<1x64xf32>
    %cst_193 = arith.constant dense<0.000000e+00> : vector<16xf32>
    %295 = vector.multi_reduction <add>, %290, %cst_193 [1] : vector<16x64xf32> to vector<16xf32>
    %296 = vector.shape_cast %295 : vector<16xf32> to vector<16x1xf32>
    %cst_194 = arith.constant 6.400000e+01 : f32
    %297 = vector.broadcast %cst_194 : f32 to vector<16x1xf32>
    %298 = arith.divf %296, %297 : vector<16x1xf32>
    %299 = vector.broadcast %298 : vector<16x1xf32> to vector<16x64xf32>
    %300 = arith.subf %290, %299 : vector<16x64xf32>
    %301 = arith.mulf %300, %300 : vector<16x64xf32>
    %cst_195 = arith.constant dense<0.000000e+00> : vector<16xf32>
    %302 = vector.multi_reduction <add>, %301, %cst_195 [1] : vector<16x64xf32> to vector<16xf32>
    %303 = vector.shape_cast %302 : vector<16xf32> to vector<16x1xf32>
    %cst_196 = arith.constant 6.400000e+01 : f32
    %304 = vector.broadcast %cst_196 : f32 to vector<16x1xf32>
    %305 = arith.divf %303, %304 : vector<16x1xf32>
    %306 = vector.broadcast %298 : vector<16x1xf32> to vector<16x64xf32>
    %307 = arith.subf %290, %306 : vector<16x64xf32>
    %cst_197 = arith.constant 9.99999974E-6 : f32
    %308 = vector.broadcast %cst_197 : f32 to vector<16x1xf32>
    %309 = arith.addf %305, %308 : vector<16x1xf32>
    %310 = math.rsqrt %309 : vector<16x1xf32>
    %311 = vector.broadcast %310 : vector<16x1xf32> to vector<16x64xf32>
    %312 = arith.mulf %307, %311 : vector<16x64xf32>
    %313 = vector.broadcast %292 : vector<1x64xf32> to vector<16x64xf32>
    %314 = arith.mulf %312, %313 : vector<16x64xf32>
    %315 = vector.broadcast %294 : vector<1x64xf32> to vector<16x64xf32>
    %316 = arith.addf %314, %315 : vector<16x64xf32>
    %c1_198 = arith.constant 1 : index
    %c0_199 = arith.constant 0 : index
    %c0_200 = arith.constant 0 : index
    %317 = vector.load %arg7[%c1_198, %c0_199, %c0_200] : memref<2x64x128xf32, #tpu.memory_space<vmem>>, vector<1x64x128xf32>
    %318 = vector.shape_cast %317 : vector<1x64x128xf32> to vector<64x128xf32>
    %cst_201 = arith.constant dense<0.000000e+00> : vector<16x128xf32>
    %319 = tpu.matmul %316, %318, %cst_201 {dimension_numbers = #tpu.dot_dimension_numbers<[1], [0], [0], [1], [0, 0, 1, 1], [], []>} : vector<16x64xf32>, vector<64x128xf32>, vector<16x128xf32> -> vector<16x128xf32>
    %c1_202 = arith.constant 1 : index
    %c4_203 = arith.constant 4 : index
    %c0_204 = arith.constant 0 : index
    %320 = vector.load %arg9[%c1_202, %c4_203, %c0_204] : memref<2x8x192xf32, #tpu.memory_space<vmem>>, vector<1x1x128xf32>
    %321 = vector.shape_cast %320 : vector<1x1x128xf32> to vector<1x128xf32>
    %322 = vector.broadcast %321 : vector<1x128xf32> to vector<16x128xf32>
    %323 = arith.addf %319, %322 : vector<16x128xf32>
    %cst_205 = arith.constant 0.000000e+00 : f32
    %324 = vector.broadcast %cst_205 : f32 to vector<16x128xf32>
    %325 = arith.maximumf %323, %324 : vector<16x128xf32>
    %c1_206 = arith.constant 1 : index
    %c0_207 = arith.constant 0 : index
    %c0_208 = arith.constant 0 : index
    %326 = vector.load %arg8[%c1_206, %c0_207, %c0_208] : memref<2x128x64xf32, #tpu.memory_space<vmem>>, vector<1x128x64xf32>
    %327 = vector.shape_cast %326 : vector<1x128x64xf32> to vector<128x64xf32>
    %cst_209 = arith.constant dense<0.000000e+00> : vector<16x64xf32>
    %328 = tpu.matmul %325, %327, %cst_209 {dimension_numbers = #tpu.dot_dimension_numbers<[1], [0], [0], [1], [0, 0, 1, 1], [], []>} : vector<16x128xf32>, vector<128x64xf32>, vector<16x64xf32> -> vector<16x64xf32>
    %c1_210 = arith.constant 1 : index
    %c5_211 = arith.constant 5 : index
    %c0_212 = arith.constant 0 : index
    %329 = vector.load %arg9[%c1_210, %c5_211, %c0_212] : memref<2x8x192xf32, #tpu.memory_space<vmem>>, vector<1x1x64xf32>
    %330 = vector.shape_cast %329 : vector<1x1x64xf32> to vector<1x64xf32>
    %331 = vector.broadcast %330 : vector<1x64xf32> to vector<16x64xf32>
    %332 = arith.addf %328, %331 : vector<16x64xf32>
    %333 = arith.addf %316, %332 : vector<16x64xf32>
    %c1_213 = arith.constant 1 : index
    %c6_214 = arith.constant 6 : index
    %c0_215 = arith.constant 0 : index
    %334 = vector.load %arg9[%c1_213, %c6_214, %c0_215] : memref<2x8x192xf32, #tpu.memory_space<vmem>>, vector<1x1x64xf32>
    %335 = vector.shape_cast %334 : vector<1x1x64xf32> to vector<1x64xf32>
    %c1_216 = arith.constant 1 : index
    %c7_217 = arith.constant 7 : index
    %c0_218 = arith.constant 0 : index
    %336 = vector.load %arg9[%c1_216, %c7_217, %c0_218] : memref<2x8x192xf32, #tpu.memory_space<vmem>>, vector<1x1x64xf32>
    %337 = vector.shape_cast %336 : vector<1x1x64xf32> to vector<1x64xf32>
    %cst_219 = arith.constant dense<0.000000e+00> : vector<16xf32>
    %338 = vector.multi_reduction <add>, %333, %cst_219 [1] : vector<16x64xf32> to vector<16xf32>
    %339 = vector.shape_cast %338 : vector<16xf32> to vector<16x1xf32>
    %cst_220 = arith.constant 6.400000e+01 : f32
    %340 = vector.broadcast %cst_220 : f32 to vector<16x1xf32>
    %341 = arith.divf %339, %340 : vector<16x1xf32>
    %342 = vector.broadcast %341 : vector<16x1xf32> to vector<16x64xf32>
    %343 = arith.subf %333, %342 : vector<16x64xf32>
    %344 = arith.mulf %343, %343 : vector<16x64xf32>
    %cst_221 = arith.constant dense<0.000000e+00> : vector<16xf32>
    %345 = vector.multi_reduction <add>, %344, %cst_221 [1] : vector<16x64xf32> to vector<16xf32>
    %346 = vector.shape_cast %345 : vector<16xf32> to vector<16x1xf32>
    %cst_222 = arith.constant 6.400000e+01 : f32
    %347 = vector.broadcast %cst_222 : f32 to vector<16x1xf32>
    %348 = arith.divf %346, %347 : vector<16x1xf32>
    %349 = vector.broadcast %341 : vector<16x1xf32> to vector<16x64xf32>
    %350 = arith.subf %333, %349 : vector<16x64xf32>
    %cst_223 = arith.constant 9.99999974E-6 : f32
    %351 = vector.broadcast %cst_223 : f32 to vector<16x1xf32>
    %352 = arith.addf %348, %351 : vector<16x1xf32>
    %353 = math.rsqrt %352 : vector<16x1xf32>
    %354 = vector.broadcast %353 : vector<16x1xf32> to vector<16x64xf32>
    %355 = arith.mulf %350, %354 : vector<16x64xf32>
    %356 = vector.broadcast %335 : vector<1x64xf32> to vector<16x64xf32>
    %357 = arith.mulf %355, %356 : vector<16x64xf32>
    %358 = vector.broadcast %337 : vector<1x64xf32> to vector<16x64xf32>
    %359 = arith.addf %357, %358 : vector<16x64xf32>
    %c0_224 = arith.constant 0 : index
    %c0_225 = arith.constant 0 : index
    %360 = vector.load %arg3[%c0_224, %c0_225] : memref<2x16xf32, #tpu.memory_space<vmem>>, vector<2x16xf32>
    %cst_226 = arith.constant dense<0.000000e+00> : vector<2x64xf32>
    %361 = tpu.matmul %360, %359, %cst_226 {dimension_numbers = #tpu.dot_dimension_numbers<[1], [0], [0], [1], [0, 0, 1, 1], [], []>} : vector<2x16xf32>, vector<16x64xf32>, vector<2x64xf32> -> vector<2x64xf32>
    %c0_227 = arith.constant 0 : index
    %c0_228 = arith.constant 0 : index
    %362 = vector.load %arg10[%c0_227, %c0_228] : memref<72x128xf32, #tpu.memory_space<vmem>>, vector<64x128xf32>
    %cst_229 = arith.constant dense<0.000000e+00> : vector<2x128xf32>
    %363 = tpu.matmul %361, %362, %cst_229 {dimension_numbers = #tpu.dot_dimension_numbers<[1], [0], [0], [1], [0, 0, 1, 1], [], []>} : vector<2x64xf32>, vector<64x128xf32>, vector<2x128xf32> -> vector<2x128xf32>
    %c64_230 = arith.constant 64 : index
    %c0_231 = arith.constant 0 : index
    %364 = vector.load %arg10[%c64_230, %c0_231] : memref<72x128xf32, #tpu.memory_space<vmem>>, vector<1x128xf32>
    %365 = vector.broadcast %364 : vector<1x128xf32> to vector<2x128xf32>
    %366 = arith.addf %363, %365 : vector<2x128xf32>
    %c0_232 = arith.constant 0 : index
    %c0_233 = arith.constant 0 : index
    %367 = vector.load %arg11[%c0_232, %c0_233] : memref<2x128xf32, #tpu.memory_space<vmem>>, vector<2x128xf32>
    tpu.vector_store %arg11[%c0_232, %c0_233], %366 {strides = array<i32>} : memref<2x128xf32, #tpu.memory_space<vmem>>, vector<2x128xf32>,
    return
  }
  func.func @transform_0(%arg0: i32) -> (i32, i32) {
    %c0_i32 = arith.constant 0 : i32
    %c0_i32_0 = arith.constant 0 : i32
    return %arg0, %c0_i32 : i32, i32
  }
  func.func @transform_1(%arg0: i32) -> (i32, i32) {
    %c0_i32 = arith.constant 0 : i32
    %c0_i32_0 = arith.constant 0 : i32
    %c0_i32_1 = arith.constant 0 : i32
    return %c0_i32, %c0_i32_0 : i32, i32
  }
  func.func @transform_2(%arg0: i32) -> (i32, i32) {
    %c0_i32 = arith.constant 0 : i32
    %c0_i32_0 = arith.constant 0 : i32
    %c0_i32_1 = arith.constant 0 : i32
    return %c0_i32, %c0_i32_0 : i32, i32
  }
  func.func @transform_3(%arg0: i32) -> (i32, i32) {
    %c0_i32 = arith.constant 0 : i32
    %c0_i32_0 = arith.constant 0 : i32
    %c0_i32_1 = arith.constant 0 : i32
    return %c0_i32, %c0_i32_0 : i32, i32
  }
  func.func @transform_4(%arg0: i32) -> (i32, i32, i32) {
    %c0_i32 = arith.constant 0 : i32
    %c0_i32_0 = arith.constant 0 : i32
    %c0_i32_1 = arith.constant 0 : i32
    %c0_i32_2 = arith.constant 0 : i32
    return %c0_i32, %c0_i32_0, %c0_i32_1 : i32, i32, i32
  }
  func.func @transform_5(%arg0: i32) -> (i32, i32, i32) {
    %c0_i32 = arith.constant 0 : i32
    %c0_i32_0 = arith.constant 0 : i32
    %c0_i32_1 = arith.constant 0 : i32
    %c0_i32_2 = arith.constant 0 : i32
    return %c0_i32, %c0_i32_0, %c0_i32_1 : i32, i32, i32
  }
  func.func @transform_6(%arg0: i32) -> (i32, i32, i32) {
    %c0_i32 = arith.constant 0 : i32
    %c0_i32_0 = arith.constant 0 : i32
    %c0_i32_1 = arith.constant 0 : i32
    %c0_i32_2 = arith.constant 0 : i32
    return %c0_i32, %c0_i32_0, %c0_i32_1 : i32, i32, i32
  }
  func.func @transform_7(%arg0: i32) -> (i32, i32, i32) {
    %c0_i32 = arith.constant 0 : i32
    %c0_i32_0 = arith.constant 0 : i32
    %c0_i32_1 = arith.constant 0 : i32
    %c0_i32_2 = arith.constant 0 : i32
    return %c0_i32, %c0_i32_0, %c0_i32_1 : i32, i32, i32
  }
  func.func @transform_8(%arg0: i32) -> (i32, i32, i32) {
    %c0_i32 = arith.constant 0 : i32
    %c0_i32_0 = arith.constant 0 : i32
    %c0_i32_1 = arith.constant 0 : i32
    %c0_i32_2 = arith.constant 0 : i32
    return %c0_i32, %c0_i32_0, %c0_i32_1 : i32, i32, i32
  }
  func.func @transform_9(%arg0: i32) -> (i32, i32) {
    %c0_i32 = arith.constant 0 : i32
    %c0_i32_0 = arith.constant 0 : i32
    %c0_i32_1 = arith.constant 0 : i32
    return %c0_i32, %c0_i32_0 : i32, i32
  }
  func.func @transform_10(%arg0: i32) -> (i32, i32) {
    %c0_i32 = arith.constant 0 : i32
    %c0_i32_0 = arith.constant 0 : i32
    return %arg0, %c0_i32 : i32, i32
  }
}

</mosaic_0001>

<bundles_post_ra>
// kernel: tpu_custom_call.1
= control target key start
LH: loop header
LB: loop body
LE: loop exit
PB: predicated region body
PF: predicated region fallthrough
CT: control target
= control target key end

     0   :  { %15 = vsyncpa [#allocation4], 0  ;;  %s5706_s0 = inlined_call_operand.vmem [shape: f32[16,4], index: 0, kind: input, shape index: {}]   ;;  %s5707_s1 = inlined_call_operand.hbm [shape: f32[16,16], index: 1, kind: input, shape index: {}]   ;;  %s5708_s2 = inlined_call_operand.vmem [shape: f32[2,16], index: 2, kind: input, shape index: {}]   ;;  %s5709_s3 = inlined_call_operand.hbm [shape: f32[8,64], index: 3, kind: input, shape index: {}]   ;;  %s5710_s4 = inlined_call_operand.vmem [shape: f32[2,64,192], index: 4, kind: input, shape index: {}]   ;;  %s5711_s5 = inlined_call_operand.vmem [shape: f32[2,64,64], index: 5, kind: input, shape index: {}]   ;;  %s5712_s6 = inlined_call_operand.hbm [shape: f32[2,64,128], index: 6, kind: input, shape index: {}]   ;;  %s5713_s7 = inlined_call_operand.vmem [shape: f32[2,128,64], index: 7, kind: input, shape index: {}]   ;;  %s5714_s8 = inlined_call_operand.vmem [shape: f32[2,8,192], index: 8, kind: input, shape index: {}]   ;;  %s5715_s9 = inlined_call_operand.hbm [shape: f32[72,128], index: 9, kind: input, shape index: {}]   ;;  %s5716_s10 = inlined_call_operand.hbm [shape: f32[2,128], index: 10, kind: output, shape index: {}]  }
   0x1   :  { %16 = vsyncpa [#allocation7], 0 }
   0x2   :  { %17 = vsyncpa [#allocation10], 0 }
   0x3   :  { %18 = vsyncpa [#allocation5], 0  ;;  %s4850_s13 = smov [#allocation6]   ;;  %s4851_s15 = smov [#allocation3]  }
   0x4   :  { %s41_s14 = sshll.u32 %s4850_s13, 4  ;;  %s26_s16 = sshll.u32 %s4851_s15, 4  ;;  %s42_s14 = int_to_ptr.vmem [resolvable:$true] %s41_s14  ;;  %s4931_s16 = int_to_ptr.vmem [resolvable:$true] %s26_s16 }
   0x5   :  { %s4732_s19 = scalar_lea.hbm %s5709_s3, 128 }
   0x6   :  { %p4733_p0 = scmp.ne.s32.totalorder %s5709_s3, %s4732_s19  ;;  %p4736_p1 = scmp.lt.u32.totalorder %s4732_s19, %s5709_s3 }
   0x8   :  { %p4738_p2 = pnand %p4736_p1, %p4733_p0 }
   0xa   :  { %4741 = shalt.err (!%p4738_p2)
}
   0xb   :  { %s4742_s24 = scalar_lea.vmem %s42_s14, 128  ;;  %p4747_p4 = scmp.lt.s32.totalorder %s42_s14, %s42_s14 }
   0xc   :  { %p4743_p3 = scmp.ne.s32.totalorder %s42_s14, %s4742_s24  ;;  %p4748_p5 = scmp.lt.s32.totalorder %s4742_s24, %s4742_s24 }
   0xe   :  { %p4749_p6 = por %p4748_p5, %p4747_p4 }
  0x10   :  { %p4750_p7 = pnand %p4749_p6, %p4743_p3 }
  0x12   :  { %4753 = shalt.err (!%p4750_p7)
}
  0x13   :  { %44 = dma.hbm_to_vmem [thread:$0]  %s5709_s3, 128, %s42_s14, [#allocation7]  }
  0x14   :  { %s4754_s29 = scalar_lea.hbm %s5707_s1, 256 }
  0x15   :  { %p4755_p8 = scmp.ne.s32.totalorder %s5707_s1, %s4754_s29  ;;  %p4758_p9 = scmp.lt.u32.totalorder %s4754_s29, %s5707_s1 }
  0x17   :  { %p4760_p10 = pnand %p4758_p9, %p4755_p8 }
  0x19   :  { %4763 = shalt.err (!%p4760_p10)
}
  0x1a   :  { %s4764_s15 = scalar_lea.vmem %s4931_s16, 256  ;;  %p4769_p12 = scmp.lt.s32.totalorder %s4931_s16, %s4931_s16 }
  0x1b   :  { %p4765_p11 = scmp.ne.s32.totalorder %s4931_s16, %s4764_s15  ;;  %p4770_p13 = scmp.lt.s32.totalorder %s4764_s15, %s4764_s15 }
  0x1d   :  { %p4771_p0 = por %p4770_p13, %p4769_p12 }
  0x1f   :  { %p4772_p1 = pnand %p4771_p0, %p4765_p11 }
  0x21   :  { %4775 = shalt.err (!%p4772_p1)
}
  0x22   :  { %s4852_s3 = smov 128   ;;  %s4853_s14 = smov 8  }
  0x23   :  { %32 = dma.hbm_to_vmem [thread:$0]  %s5707_s1, 256, %s4931_s16, [#allocation4], %s4852_s3, %s4852_s3, %s4853_s14  }
  0x24   :  { %s4854_s19 = smov [#allocation8]   ;;  %s4855_s21 = smov [#allocation9]  }
  0x25   :  { %s54_s20 = sshll.u32 %s4854_s19, 4  ;;  %s70_s22 = sshll.u32 %s4855_s21, 4  ;;  %s55_s20 = int_to_ptr.vmem [resolvable:$true] %s54_s20  ;;  %s4965_s22 = int_to_ptr.vmem [resolvable:$true] %s70_s22 }
  0x26   :  { %s4776_s25 = scalar_lea.hbm %s5712_s6, 2048 }
  0x27   :  { %p4777_p2 = scmp.ne.s32.totalorder %s5712_s6, %s4776_s25  ;;  %p4780_p3 = scmp.lt.u32.totalorder %s4776_s25, %s5712_s6 }
  0x29   :  { %p4782_p4 = pnand %p4780_p3, %p4777_p2 }
  0x2b   :  { %4785 = shalt.err (!%p4782_p4)
}
  0x2c   :  { %s4786_s1 = scalar_lea.vmem %s55_s20, 2048  ;;  %p4791_p6 = scmp.lt.s32.totalorder %s55_s20, %s55_s20 }
  0x2d   :  { %p4787_p5 = scmp.ne.s32.totalorder %s55_s20, %s4786_s1  ;;  %p4792_p7 = scmp.lt.s32.totalorder %s4786_s1, %s4786_s1 }
  0x2f   :  { %p4793_p8 = por %p4792_p7, %p4791_p6 }
  0x31   :  { %p4794_p9 = pnand %p4793_p8, %p4787_p5 }
  0x33   :  { %4797 = shalt.err (!%p4794_p9)
}
  0x34   :  { %60 = dma.hbm_to_vmem [thread:$0]  %s5712_s6, 2048, %s55_s20, [#allocation7], %s4852_s3, %s4852_s3, %s4853_s14  }
  0x35   :  { %s4798_s13 = scalar_lea.hbm %s5715_s9, 1152 }
  0x36   :  { %p4799_p10 = scmp.ne.s32.totalorder %s5715_s9, %s4798_s13  ;;  %p4802_p11 = scmp.lt.u32.totalorder %s4798_s13, %s5715_s9 }
  0x38   :  { %p4804_p12 = pnand %p4802_p11, %p4799_p10 }
  0x3a   :  { %4807 = shalt.err (!%p4804_p12)
}
  0x3b   :  { %s4808_s21 = scalar_lea.vmem %s4965_s22, 1152  ;;  %p4813_p0 = scmp.lt.s32.totalorder %s4965_s22, %s4965_s22 }
  0x3c   :  { %p4809_p13 = scmp.ne.s32.totalorder %s4965_s22, %s4808_s21  ;;  %p4814_p1 = scmp.lt.s32.totalorder %s4808_s21, %s4808_s21 }
  0x3e   :  { %p4815_p2 = por %p4814_p1, %p4813_p0 }
  0x40   :  { %p4816_p3 = pnand %p4815_p2, %p4809_p13 }
  0x42   :  { %4819 = shalt.err (!%p4816_p3)
}
  0x43   :  { %76 = dma.hbm_to_vmem [thread:$0]  %s5715_s9, 1152, %s4965_s22, [#allocation10], %s4852_s3, %s4852_s3, %s4853_s14  }
  0x44   :  { %4842 = dma.done.wait [#allocation4], 256  }
  0x45   :  { %4843 = vsyncadd [#allocation4], 4294967040 }
  0x46   :  { %4844 = dma.done.wait [#allocation7], 2176  }
  0x47   :  { %4845 = vsyncadd [#allocation7], 4294965120 }
  0x48   :  { %4846 = dma.done.wait [#allocation10], 1152  }
  0x49   :  { %4847 = vsyncadd [#allocation10], 4294966144  ;;  %v4856_v0 = vmov 3   ;;  %v5005_v1 = vld [vmem:[%s5706_s0] sm:$0xff]  ;;  %v3657_v2 = vld [vmem:[#allocation6 + $0x7] ss:$0 sm:$0xff] }
  0x4a   :  { %4571 = vset.pattern.permute.xlu0 %v4856_v0  ;;  %s4857_s25 = smov 126   ;;  %v5011_v3 = vld [vmem:[%s5706_s0 + $0x8] sm:$0xff]  ;;  %v4858_v29 = vmov 2102212464   ;;  %v4859_v31 = vmov 920167782  }
  0x4b   :  { %94 = vperm.xlu0 %4571, %v5005_v1   ;;  %109 = vrot.lane.b32.xlu1 %v3657_v2, %s4857_s25  ;;  %v4860_v35 = vmov 1326507024   ;;  %v4861_v39 = vmov 683565275   ;;  %v4862_v41 = vmov 2475754826  }
  0x4c   :  { %v4863_v43 = vmov 2131351028   ;;  %s4864_s0 = smov 4   ;;  %s4866_s11 = smov 48  }
  0x4d   :  { %s4867_s12 = smov 64   ;;  %s4868_s13 = smov 112  }
  0x4e   :  { %s4869_s15 = smov 96   ;;  %s4870_s17 = smov 32  }
  0x4f   :  { %99 = vperm.xlu0 %4571, %v5011_v3   ;;  %s4871_s20 = smov 80   ;;  %s4872_s23 = smov 16  }
  0xbd   :  { %v110_v5 = vpop.permute.xlu1 %109 }
  0xca   :  { %v95_v4 = vpop.permute.xlu0 %94 }
  0xcb   :  { %v106_v6 = vmul.f32 %v3657_v2, %v95_v4 }
  0xcd   :  { %v5014_v7 = vadd.f32 %v110_v5, %v106_v6 }
  0xce   :  { %v100_v8 = vpop.permute.xlu0 %99 }
  0xcf   :  { %v117_v9 = vand.u32 2139095040, %v5014_v7  ;;  %v107_v10 = vmul.f32 %v3657_v2, %v100_v8  ;;  %v114_v11 = vand.u32 2147483647, %v5014_v7  ;;  %vm116_vm14 = vcmp.lt.s32.totalorder %v5014_v7, 0 }
  0xd1   :  { %v118_v12 = vshrl.u32 %v117_v9, 23  ;;  %v5018_v13 = vadd.f32 %v110_v5, %v107_v10  ;;  %v121_v16 = vand.u32 8388607, %v114_v11  ;;  %vm115_vm15 = vcmp.le.f32.partialorder %v114_v11, 0.7853982 }
  0xd3   :  { %v3658_v14 = vadd.s32 4294967169, %v118_v12  ;;  %v221_v15 = vand.u32 2139095040, %v5018_v13  ;;  %v218_v17 = vand.u32 2147483647, %v5018_v13  ;;  %v122_v21 = vor.u32 8388608, %v121_v16 }
  0xd5   :  { %v124_v18 = vadd.s32 1, %v3658_v14  ;;  %v222_v19 = vshrl.u32 %v221_v15, 23  ;;  %v5026_v23 = vand.u32 8388607, %v218_v17  ;;  %v5028_v28 = vshll.u32 %v122_v21, 8 }
  0xd7   :  { %vm125_vm0 = vcmp.gt.s32.totalorder %v124_v18, 0  ;;  %v3662_v20 = vadd.s32 4294967169, %v222_v19  ;;  %v226_v33 = vor.u32 8388608, %v5026_v23 }
  0xd8   :  { %v126_v22 = vsel %vm125_vm0, %v124_v18, 0  ;;  %vm220_vm0 = vcmp.lt.s32.totalorder %v5018_v13, 0 }
  0xd9   :  { %v127_v24 = vshrl.u32 %v126_v22, 5  ;;  %v128_v25 = vand.u32 31, %v126_v22  ;;  %v228_v26 = vadd.s32 1, %v3662_v20 }
  0xdb   :  { %v129_v27 = vsub.s32 32, %v128_v25  ;;  %v140_v30 = vshll.u32 %v4858_v29, %v128_v25  ;;  %v143_v32 = vshll.u32 %v4859_v31, %v128_v25  ;;  %vm229_vm1 = vcmp.gt.s32.totalorder %v228_v26, 0 }
  0xdc   :  { %vm149_vm2 = vcmp.lt.s32.totalorder %v127_v24, 4  ;;  %v230_v37 = vsel %vm229_vm1, %v228_v26, 0  ;;  %v131_v40 = vshll.u32 %v4861_v39, %v128_v25  ;;  %v134_v47 = vshll.u32 %v4862_v41, %v128_v25 }
  0xdd   :  { %v141_v34 = vshrl.u32 %v4859_v31, %v129_v27  ;;  %v144_v36 = vshrl.u32 %v4860_v35, %v129_v27  ;;  %v232_v38 = vand.u32 31, %v230_v37  ;;  %v132_v42 = vshrl.u32 %v4862_v41, %v129_v27 }
  0xde   :  { %v135_v44 = vshrl.u32 %v4863_v43, %v129_v27  ;;  %v138_v48 = vshrl.u32 %v4858_v29, %v129_v27  ;;  %v5032_v49 = vshrl.u32 %v230_v37, 5  ;;  %v137_v51 = vshll.u32 %v4863_v43, %v128_v25 }
  0xdf   :  { %v142_v45 = vor.u32 %v141_v34, %v140_v30  ;;  %v145_v46 = vor.u32 %v144_v36, %v143_v32  ;;  %v233_v50 = vsub.s32 32, %v232_v38  ;;  %vm146_vm3 = vcmp.lt.s32.totalorder %v127_v24, 1 }
  0xe0   :  { %v247_v53 = vshll.u32 %v4859_v31, %v232_v38  ;;  %v133_v54 = vor.u32 %v132_v42, %v131_v40  ;;  %v136_v55 = vor.u32 %v135_v44, %v134_v47  ;;  %v139_v59 = vor.u32 %v138_v48, %v137_v51 }
  0xe1   :  { %v155_v52 = vsel %vm149_vm2, %v142_v45, 920167782  ;;  %v159_v56 = vsel %vm149_vm2, %v145_v46, 1326507024  ;;  %v245_v57 = vshrl.u32 %v4859_v31, %v233_v50  ;;  %v248_v58 = vshrl.u32 %v4860_v35, %v233_v50 }
  0xe2   :  { %v244_v60 = vshll.u32 %v4858_v29, %v232_v38  ;;  %v130_v61 = vshrl.u32 %v4861_v39, %v129_v27  ;;  %vm148_vm4 = vcmp.lt.s32.totalorder %v127_v24, 3  ;;  %v154_v62 = vsel %vm146_vm3, %v133_v54, %v136_v55 }
  0xe3   :  { %v249_v63 = vor.u32 %v248_v58, %v247_v53  ;;  %vm147_vm5 = vcmp.lt.s32.totalorder %v127_v24, 2  ;;  %v151_v0 = vsel %vm149_vm2, %v139_v59, 2102212464  ;;  %v156_v2 = vsel %vm148_vm4, %v139_v59, %v155_v52 }
  0xe4   :  { %vm253_vm6 = vcmp.lt.s32.totalorder %v5032_v49, 4  ;;  %v157_v4 = vsel %vm147_vm5, %v154_v62, %v156_v2  ;;  %v158_v5 = vsel %vm146_vm3, %v136_v55, %v139_v59  ;;  %v160_v6 = vsel %vm148_vm4, %v142_v45, %v159_v56 }
  0xe5   :  { %v246_v8 = vor.u32 %v245_v57, %v244_v60  ;;  %v150_v9 = vsel %vm146_vm3, %v130_v61, %v133_v54  ;;  %v152_v10 = vsel %vm148_vm4, %v136_v55, %v151_v0  ;;  %v161_v12 = vsel %vm147_vm5, %v158_v5, %v160_v6 }
  0xe6   :  { %v5045_v14 = vmul.u32.u64.low %v5028_v28, %v161_v12  ;;  %v5046_v15 = vmul.u32.u64.high %v5028_v28, %v161_v12, %v5045_v14  ;;  %v5049_v16 = vmul.u32.u64.low %v5028_v28, %v157_v4  ;;  %v5050_v18 = vmul.u32.u64.high %v5028_v28, %v157_v4, %v5049_v16 }
  0xe7   :  { %v263_v19 = vsel %vm253_vm6, %v249_v63, 1326507024  ;;  %v235_v20 = vshll.u32 %v4861_v39, %v232_v38  ;;  %v236_v21 = vshrl.u32 %v4862_v41, %v233_v50  ;;  %v153_v22 = vsel %vm147_vm5, %v150_v9, %v152_v10 }
  0xe8   :  { %v238_v23 = vshll.u32 %v4862_v41, %v232_v38  ;;  %v239_v25 = vshrl.u32 %v4863_v43, %v233_v50  ;;  %v242_v26 = vshrl.u32 %v4858_v29, %v233_v50  ;;  %v259_v27 = vsel %vm253_vm6, %v246_v8, 920167782 }
  0xe9   :  { %v237_v30 = vor.u32 %v236_v21, %v235_v20  ;;  %v241_v31 = vshll.u32 %v4863_v43, %v232_v38  ;;  %v266_v32 = vshll.u32 %v226_v33, 8  ;;  %vm171_vm7 = vc.u32 %v5046_v15, %v5049_v16 }
  0xea   :  { %v172_v34 = vadd.s32 1, %v5050_v18  ;;  %v240_v35 = vor.u32 %v239_v25, %v238_v23  ;;  %vm252_vm8 = vcmp.lt.s32.totalorder %v5032_v49, 3  ;;  %v169_v36 = vmul.u32 %v5028_v28, %v153_v22 }
  0xeb   :  { %v243_v24 = vor.u32 %v242_v26, %v241_v31  ;;  %vm250_vm9 = vcmp.lt.s32.totalorder %v5032_v49, 1  ;;  %v264_v29 = vsel %vm252_vm8, %v246_v8, %v263_v19  ;;  %v234_v38 = vshrl.u32 %v4861_v39, %v233_v50 }
  0xec   :  { %v173_v37 = vsel %vm171_vm7, %v172_v34, %v5050_v18  ;;  %vm251_vm10 = vcmp.lt.s32.totalorder %v5032_v49, 2  ;;  %v258_v33 = vsel %vm250_vm9, %v237_v30, %v240_v35  ;;  %v170_v6 = vadd.s32 %v5049_v16, %v5046_v15 }
  0xed   :  { %v174_v40 = vadd.s32 %v173_v37, %v169_v36  ;;  %v255_v41 = vsel %vm253_vm6, %v243_v24, 2102212464  ;;  %v260_v28 = vsel %vm252_vm8, %v243_v24, %v259_v27  ;;  %v262_v42 = vsel %vm250_vm9, %v240_v35, %v243_v24 }
  0xee   :  { %v254_v43 = vsel %vm250_vm9, %v234_v38, %v237_v30  ;;  %v261_v44 = vsel %vm251_vm10, %v258_v33, %v260_v28  ;;  %v265_v45 = vsel %vm251_vm10, %v262_v42, %v264_v29  ;;  %v256_v47 = vsel %vm252_vm8, %v240_v35, %v255_v41 }
  0xef   :  { %v175_v46 = vadd.s32 536870912, %v174_v40  ;;  %v5074_v48 = vmul.u32.u64.low %v266_v32, %v265_v45  ;;  %v5075_v39 = vmul.u32.u64.high %v266_v32, %v265_v45, %v5074_v48  ;;  %v257_v53 = vsel %vm251_vm10, %v254_v43, %v256_v47 }
  0xf0   :  { %v5077_v50 = vmul.u32.u64.low %v266_v32, %v261_v44  ;;  %v5078_v51 = vmul.u32.u64.high %v266_v32, %v261_v44, %v5077_v50  ;;  %v273_v57 = vmul.u32 %v266_v32, %v257_v53  ;;  %vm5092_vm1 = vcmp.le.f32.partialorder %v218_v17, 0.7853982 }
  0xf1   :  { %v176_v52 = vshrl.u32 %v175_v46, 30  ;;  %vm344_vm5 = vcmask 1046528   ;;  %vm206_vm6 = vweird.f32 %v5014_v7  ;;  %vm310_vm10 = vweird.f32 %v5018_v13 }
  0xf2   :  { %vm275_vm11 = vc.u32 %v5075_v39, %v5077_v50  ;;  %v276_v55 = vadd.s32 1, %v5078_v51  ;;  %v274_v15 = vadd.s32 %v5077_v50, %v5075_v39 }
  0xf3   :  { %v177_v54 = vshll.u32 %v176_v52, 30  ;;  %v200_v31 = vsub.s32 4, %v176_v52 }
  0xf4   :  { %v277_v58 = vsel %vm275_vm11, %v276_v55, %v5078_v51  ;;  %vm330_vm11 = vcmask 31744  }
  0xf5   :  { %v178_v56 = vsub.s32 %v174_v40, %v177_v54  ;;  %v278_v49 = vadd.s32 %v277_v58, %v273_v57  ;;  %v201_v38 = vsel %vm116_vm14, %v200_v31, %v176_v52  ;;  %v438_v31 = vld [vmem:[%s5710_s4 + $0x78] sm:$0xff] }
  0xf6   :  { %v203_v28 = vsel %vm115_vm15, 0, %v201_v38 }
  0xf7   :  { %v180_v59 = vsub.s32 0, %v178_v56  ;;  %v279_v61 = vadd.s32 536870912, %v278_v49  ;;  %v207_v45 = vadd.s32 3, %v203_v28 }
  0xf9   :  { %v3659_v60 = vmin.u32 %v180_v59, %v178_v56  ;;  %v280_v63 = vshrl.u32 %v279_v61, 30  ;;  %v208_v39 = vand.u32 3, %v207_v45  ;;  %v336_v59 = vld [vmem:[#allocation6] sm:$0x7f] }
  0xfa   :  { %3959 = vmatprep.subr.msk.mxu0 %vm344_vm5, %v336_v59 }
  0xfb   :  { %v182_v62 = vclz %v3659_v60  ;;  %v281_v2 = vshll.u32 %v280_v63, 30  ;;  %v304_v47 = vsub.s32 4, %v280_v63  ;;  %vm213_vm2 = vcmp.eq.s32.totalorder %v208_v39, 2  ;;  %3960 = vmatpush3.msk.msra.mxu0 %vm344_vm5, %v336_v59 }
  0xfc   :  { %vm210_vm3 = vcmp.eq.s32.totalorder %v208_v39, 0  ;;  %vm209_vm4 = vcmp.lt.s32.totalorder %v208_v39, 2 }
  0xfd   :  { %v3660_v0 = vadd.s32 4294967294, %v182_v62  ;;  %v282_v5 = vsub.s32 %v278_v49, %v281_v2  ;;  %v305_v51 = vsel %vm220_vm0, %v304_v47, %v280_v63  ;;  %v424_v62 = vld [vmem:[%s5710_s4 + $0x8] sm:$0xff]  ;;  %v426_v63 = vld [vmem:[%s5710_s4 + $0x18] sm:$0xff]  ;;  %v425_v2 = vld [vmem:[%s5710_s4 + $0x10] sm:$0xff] }
  0xfe   :  { %v307_v57 = vsel %vm5092_vm1, 0, %v305_v51 }
  0xff   :  { %vm3661_vm12 = vcmp.lt.s32.totalorder %v3660_v0, 0  ;;  %v284_v10 = vsub.s32 0, %v282_v5  ;;  %v311_v60 = vadd.s32 3, %v307_v57 }
 0x100   :  { %v185_v4 = vsel %vm3661_vm12, 0, %v3660_v0  ;;  %v4266_v0 = vpack.c.bf16 %v426_v63, %v424_v62  ;;  %vm333_vm12 = vcmask 48128  }
 0x101   :  { %v186_v8 = vsub.s32 32, %v185_v4  ;;  %v190_v9 = vsub.s32 4294967266, %v185_v4  ;;  %v187_v12 = vshll.u32 %v178_v56, %v185_v4  ;;  %v3663_v19 = vmin.u32 %v284_v10, %v282_v5  ;;  %v428_v4 = vld [vmem:[%s5710_s4 + $0x28] sm:$0xff]  ;;  %v427_v10 = vld [vmem:[%s5710_s4 + $0x20] sm:$0xff] }
 0x102   :  { %4267 = vmatprep.subr.bf16.mxu1 %v4266_v0 }
 0x103   :  { %v188_v14 = vshrl.u32 %v170_v6, %v186_v8  ;;  %v191_v18 = vadd.s32 127, %v190_v9  ;;  %v286_v22 = vclz %v3663_v19  ;;  %v312_v6 = vand.u32 3, %v311_v60 }
 0x105   :  { %v189_v20 = vor.u32 %v188_v14, %v187_v12  ;;  %v192_v21 = vshll.u32 %v191_v18, 23  ;;  %v3664_v25 = vadd.s32 4294967294, %v286_v22  ;;  %v429_v12 = vld [vmem:[%s5710_s4 + $0x30] sm:$0xff]  ;;  %v432_v14 = vld [vmem:[%s5710_s4 + $0x48] sm:$0xff]  ;;  %v434_v18 = vld [vmem:[%s5710_s4 + $0x58] sm:$0xff]  ;;  %vm317_vm7 = vcmp.eq.s32.totalorder %v312_v6, 2 }
 0x106   :  { %vm314_vm8 = vcmp.eq.s32.totalorder %v312_v6, 0  ;;  %vm313_vm9 = vcmp.lt.s32.totalorder %v312_v6, 2 }
 0x107   :  { %v193_v23 = vor.u32 4788187, %v192_v21  ;;  %v196_v27 = vcvt.s32.f32 %v189_v20  ;;  %vm3665_vm13 = vcmp.lt.s32.totalorder %v3664_v25, 0  ;;  %v4272_v20 = vpack.c.bf16 %v429_v12, %v427_v10 }
 0x108   :  { %v289_v32 = vsel %vm3665_vm13, 0, %v3664_v25  ;;  %v431_v25 = vld [vmem:[%s5710_s4 + $0x40] sm:$0xff]  ;;  %vm337_vm13 = vcmask 56320  }
 0x109   :  { %v194_v26 = vand.u32 2147483647, %v193_v23  ;;  %v290_v16 = vsub.s32 32, %v289_v32  ;;  %v294_v34 = vsub.s32 4294967266, %v289_v32  ;;  %v291_v36 = vshll.u32 %v282_v5, %v289_v32  ;;  %v430_v5 = vld [vmem:[%s5710_s4 + $0x38] sm:$0xff] }
 0x10a   :  { %v4270_v9 = vpack.c.bf16 %v430_v5, %v428_v4  ;;  %v4274_v23 = vpack.c.bf16 %v434_v18, %v432_v14  ;;  %v5216_v18 = vld [vmem:[#allocation3] sm:$0xff] }
 0x10b   :  { %v197_v30 = vmul.f32 %v196_v27, %v194_v26  ;;  %v292_v24 = vshrl.u32 %v274_v15, %v290_v16  ;;  %v295_v29 = vadd.s32 127, %v294_v34  ;;  %v433_v26 = vld [vmem:[%s5710_s4 + $0x50] sm:$0xff] }
 0x10c   :  { %v4276_v16 = vpack.c.bf16 %v433_v26, %v431_v25 }
 0x10d   :  { %v198_v35 = vxor.u32 2147483648, %v197_v30  ;;  %v293_v40 = vor.u32 %v292_v24, %v291_v36  ;;  %v296_v41 = vshll.u32 %v295_v29, 23  ;;  %v435_v36 = vld [vmem:[%s5710_s4 + $0x60] sm:$0xff]  ;;  %v437_v24 = vld [vmem:[%s5710_s4 + $0x70] sm:$0xff] }
 0x10f   :  { %v199_v37 = vsel %vm116_vm14, %v198_v35, %v197_v30  ;;  %v297_v42 = vor.u32 4788187, %v296_v41  ;;  %v300_v44 = vcvt.s32.f32 %v293_v40  ;;  %v436_v30 = vld [vmem:[%s5710_s4 + $0x68] sm:$0xff]  ;;  %vm451_vm14 = vcmask 523264  }
 0x110   :  { %v202_v33 = vsel %vm115_vm15, %v5014_v7, %v199_v37  ;;  %v423_v7 = vld [vmem:[%s5710_s4] sm:$0xff]  ;;  %v4278_v35 = vpack.c.bf16 %v438_v31, %v436_v30  ;;  %v4280_v37 = vpack.c.bf16 %v437_v24, %v435_v36  ;;  %vm552_vm15 = vcmask 130048  }
 0x111   :  { %4642 = vcosq.f32 %v202_v33  ;;  %v298_v43 = vand.u32 2147483647, %v297_v42  ;;  %v4268_v8 = vpack.c.bf16 %v425_v2, %v423_v7  ;;  %v4865_v42 = vmov 0.0  }
 0x112   :  { %4644 = vsinq.f32 %v202_v33  ;;  %522 = vmatprep.mubr.f32.mxu1 %v4865_v42 }
 0x113   :  { %v301_v46 = vmul.f32 %v300_v44, %v298_v43  ;;  %4269 = vmatpush1.bf16.msra.mxu1 %v4268_v8 }
 0x114   :  { %4271 = vmatprep.subr.bf16.mxu1 %v4270_v9  ;;  %v5214_v9 = vld [vmem:[#allocation3 + $0x8] sm:$0xff] }
 0x115   :  { %v302_v48 = vxor.u32 2147483648, %v301_v46 }
 0x117   :  { %v303_v50 = vsel %vm220_vm0, %v302_v48, %v301_v46  ;;  %4273 = vmatpush1.bf16.msra.mxu1 %v4272_v20  ;;  %v439_v46 = vld [vmem:[%s5714_s8] ss:$8 sm:$0x3]  ;;  %vm5198_vm0 = vmpackc.low %vm552_vm15, %vm552_vm15 }
 0x118   :  { %v306_v53 = vsel %vm5092_vm1, %v5018_v13, %v303_v50  ;;  %4275 = vmatprep.subr.bf16.mxu1 %v4274_v23  ;;  %vm4874_vm1 = vmmov 0  }
 0x119   :  { %4646 = vcosq.f32 %v306_v53 }
 0x11a   :  { %4648 = vsinq.f32 %v306_v53 }
 0x11b   :  { %v4643_v52 = vpop.eup %4642  ;;  %4277 = vmatpush1.bf16.msra.mxu1 %v4276_v16 }
 0x11c   :  { %v4645_v54 = vpop.eup %4644  ;;  %v214_v55 = vxor.u32 2147483648, %v4643_v52  ;;  %4279 = vmatprep.subr.bf16.mxu1 %v4278_v35 }
 0x11d   :  { %v211_v56 = vxor.u32 2147483648, %v4645_v54 }
 0x11e   :  { %v215_v17 = vsel %vm213_vm2, %v214_v55, %v4645_v54 }
 0x11f   :  { %v212_v58 = vsel %vm210_vm3, %v4643_v52, %v211_v56  ;;  %4281 = vmatpush1.bf16.msra.mxu1 %v4280_v37 }
 0x120   :  { %v216_v49 = vsel %vm209_vm4, %v212_v58, %v215_v17 }
 0x121   :  { %v217_v61 = vsel %vm206_vm6, nan, %v216_v49 }
 0x122   :  { %324 = vrot.lane.b32.xlu1 %v217_v61, %s4864_s0 }
 0x123   :  { %v4647_v19 = vpop.eup %4646 }
 0x124   :  { %v4649_v21 = vpop.eup %4648  ;;  %v318_v22 = vxor.u32 2147483648, %v4647_v19 }
 0x125   :  { %v315_v27 = vxor.u32 2147483648, %v4649_v21 }
 0x126   :  { %v319_v32 = vsel %vm317_vm7, %v318_v22, %v4649_v21 }
 0x127   :  { %v316_v15 = vsel %vm314_vm8, %v4647_v19, %v315_v27 }
 0x128   :  { %v320_v34 = vsel %vm313_vm9, %v316_v15, %v319_v32 }
 0x129   :  { %v321_v29 = vsel %vm310_vm10, nan, %v320_v34 }
 0x12a   :  { %326 = vrot.lane.b32.xlu0 %v321_v29, %s4864_s0 }
 0x194   :  { %v325_v13 = vpop.permute.xlu1 %324 }
 0x195   :  { %v331_v38 = vsel %vm330_vm11, %v5005_v1, %v325_v13  ;;  %v441_v1 = vlaneseq }
 0x196   :  { %v334_v33 = vsel %vm333_vm12, %v331_v38, 1.0 }
 0x197   :  { %3961 = vmatprep.mubr.msk.f32.mxu0 %vm337_vm13, %v334_v33 }
 0x19c   :  { %v327_v40 = vpop.permute.xlu0 %326 }
 0x19d   :  { %v332_v41 = vsel %vm330_vm11, %v5011_v3, %v327_v40  ;;  %v5165_v3 = vshrl.u32 %v441_v1, 7 }
 0x19e   :  { %v335_v28 = vsel %vm333_vm12, %v332_v41, 1.0  ;;  %v745_v41 = vld [vmem:[%s5711_s5] sm:$0xff] }
 0x19f   :  { %3962 = vmatmul.mubr.msk.f32.vlgmr.msra.gmra.mrb[0].mxu0 %vm337_vm13, %v335_v28  ;;  %v443_v45 = vsub.s32 0, %v5165_v3  ;;  %v447_v47 = vsub.s32 1, %v5165_v3  ;;  %v746_v28 = vld [vmem:[%s5711_s5 + $0x8] sm:$0xff] }
 0x1a0   :  { %v4292_v1 = vpack.c.bf16 %v746_v28, %v745_v41 }
 0x1a1   :  { %v444_v48 = vrot.slane %v439_v46, %v443_v45  ;;  %v448_v39 = vrot.slane %v439_v46, %v447_v47 }
 0x272   :  { %v5156_v43 = vpop.f32.mrb[0].mxu0 }
 0x273   :  { %v5158_v44 = vpop.f32.mrb[1].mxu0 }
 0x274   :  { %3669 = vmatmul.mubr.msk.f32.vlgmr.msra.gmra.mrb[0].mxu1 %vm451_vm14, %v5158_v44 }
 0x275   :  { %528 = vmatprep.mubr.f32.mxu1 %v4865_v42 }
 0x278   :  { %3670 = vmatmul.mubr.msk.f32.gmra.mrb[2].mxu1 %vm451_vm14, %v5156_v43 }
 0x347   :  { %v524_v11 = vpop.f32.mrb[0].mxu1 }
 0x348   :  { %v5176_v50 = vadd.f32 %v524_v11, %v444_v48  ;;  %v526_v51 = vpop.f32.mrb[1].mxu1 }
 0x349   :  { %v527_v52 = vadd.f32 %v526_v51, %v448_v39 }
 0x34a   :  { %3968 = vmatprep.mubr.msk.f32.mxu0 %vm552_vm15, %v5176_v50 }
 0x34b   :  { %536 = vst.msk [vmem:[#allocation2 + $0x8] sm:$0xff] %vm451_vm14, %v527_v52  ;;  %v530_v53 = vpop.f32.mrb[2].mxu1 }
 0x34c   :  { %v5181_v54 = vadd.f32 %v530_v53, %v444_v48  ;;  %v532_v55 = vpop.f32.mrb[3].mxu1 }
 0x34d   :  { %v533_v56 = vadd.f32 %v532_v55, %v448_v39 }
 0x34e   :  { %v5185_v57 = vpack.i.bf16 %v5181_v54, %v5176_v50 }
 0x34f   :  { %538 = vst.msk [vmem:[#allocation2 + $0x18] sm:$0xff] %vm451_vm14, %v533_v56 }
 0x350   :  { %4578 = vrot.lane.b32.xlu0 %v5185_v57, %s4866_s11  ;;  %4573 = vrot.lane.b32.xlu1 %v5185_v57, %s4867_s12 }
 0x352   :  { %v544_v4 = vld [vmem:[#allocation2 + $0x8] sm:$0xff] }
 0x354   :  { %832 = vrot.lane.b32.xlu0 %v5181_v54, %s4868_s13  ;;  %830 = vrot.lane.b32.xlu1 %v5176_v50, %s4868_s13 }
 0x356   :  { %v545_v63 = vld [vmem:[#allocation2 + $0x18] sm:$0xff] }
 0x357   :  { %v4288_v5 = vpack.c.bf16 %v545_v63, %v544_v4  ;;  %v5234_v40 = vpack.i.bf16 %v545_v63, %v544_v4 }
 0x3c2   :  { %v4579_v17 = vpop.permute.xlu0 %4578  ;;  %v4574_v58 = vpop.permute.xlu1 %4573 }
 0x3c3   :  { %v4581_v59 = vunpack.i.h.bf16 %v4579_v17  ;;  %v4580_v49 = vunpack.i.l.bf16 %v4579_v17  ;;  %v4576_v60 = vunpack.i.h.bf16 %v4574_v58  ;;  %v4575_v61 = vunpack.i.l.bf16 %v4574_v58 }
 0x3c5   :  { %v4296_v7 = vpack.c.bf16 %v4581_v59, %v4580_v49  ;;  %v4282_v0 = vpack.c.bf16 %v4576_v60, %v4575_v61 }
 0x3c6   :  { %v831_v2 = vpop.permute.xlu1 %830  ;;  %v833_v6 = vpop.permute.xlu0 %832 }
 0x3c7   :  { %4284 = vmatprep.subr.msk.bf16.mxu0 %vm5198_vm0, %v4282_v0  ;;  %4298 = vmatprep.subr.msk.bf16.mxu1 %vm5198_vm0, %v4296_v7 }
 0x3c8   :  { %3989 = vmatprep.mubr.msk.f32.mxu1 %vm552_vm15, %v831_v2  ;;  %4287 = vmatpush3.bf16.xpose.msk.msra.mxu0 %vm5198_vm0, %v4282_v0 }
 0x3c9   :  { %4301 = vmatpush3.bf16.xpose.msk.msra.mxu1 %vm5198_vm0, %v4296_v7  ;;  %4289 = vmatprep.subr.bf16.mxu0 %v4288_v5 }
 0x3cf   :  { %3969 = vmatmul.mubr.msk.f32.vlgmr.msra.gmra.mrb[2].mxu0 %vm552_vm15, %v5181_v54 }
 0x3d0   :  { %3990 = vmatmul.mubr.msk.f32.vlgmr.msra.gmra.mrb[4].mxu1 %vm552_vm15, %v833_v6  ;;  %4291 = vmatpush3.bf16.msra.mxu0 %v4288_v5 }
 0x3d1   :  { %4293 = vmatprep.subr.bf16.mxu0 %v4292_v1 }
 0x4a2   :  { %v3970_v8 = vpop.f32.mrb[2].mxu0 }
 0x4a3   :  { %v637_v10 = vmul.f32 0.25, %v3970_v8  ;;  %v3991_v12 = vpop.f32.mrb[4].mxu1  ;;  %v627_v14 = vpop.f32.mrb[3].mxu0 }
 0x4a4   :  { %v636_v19 = vmul.f32 0.25, %v627_v14  ;;  %v912_v20 = vpop.f32.mrb[5].mxu1  ;;  %v922_v29 = vmul.f32 0.25, %v3991_v12 }
 0x4a5   :  { %v641_v21 = vadd.f32 %v5214_v9, %v637_v10  ;;  %v921_v24 = vmul.f32 0.25, %v912_v20 }
 0x4a6   :  { %v640_v22 = vadd.f32 %v5216_v18, %v636_v19  ;;  %v924_v13 = vadd.f32 %v922_v29, %v5214_v9 }
 0x4a7   :  { %v645_v23 = vsel %vm552_vm15, %v641_v21, -inf  ;;  %v923_v37 = vadd.f32 %v921_v24, %v5216_v18 }
 0x4a8   :  { %646 = vmax.xlane.f32.xlu0 %v645_v23  ;;  %v642_v25 = vsel %vm552_vm15, %v640_v22, -inf  ;;  %v928_v33 = vsel %vm552_vm15, %v924_v13, -inf }
 0x4a9   :  { %643 = vmax.xlane.f32.xlu1 %v642_v25  ;;  %v925_v38 = vsel %vm552_vm15, %v923_v37, -inf }
 0x535   :  { %v647_v26 = vpop.xlane.xlu0 %646 }
 0x536   :  { %v649_v27 = vsub.f32 %v641_v21, %v647_v26  ;;  %v644_v30 = vpop.xlane.xlu1 %643 }
 0x537   :  { %v648_v31 = vsub.f32 %v640_v22, %v644_v30 }
 0x538   :  { %v652_v32 = vmul.f32 1.442695, %v649_v27 }
 0x539   :  { %v650_v15 = vmul.f32 1.442695, %v648_v31 }
 0x53a   :  { %4650 = vpow2.f32 %v652_v32 }
 0x53b   :  { %4652 = vpow2.f32 %v650_v15 }
 0x544   :  { %v4651_v16 = vpop.eup %4650 }
 0x545   :  { %v4653_v34 = vpop.eup %4652  ;;  %v657_v35 = vsel %vm552_vm15, %v4651_v16, 0.0 }
 0x546   :  { %658 = vadd.xlane.f32.xlu1 %v657_v35  ;;  %v654_v36 = vsel %vm552_vm15, %v4653_v34, 0.0 }
 0x547   :  { %655 = vadd.xlane.f32.xlu0 %v654_v36 }
 0x557   :  { %1121 = vrot.lane.b32.xlu1 %v5176_v50, %s4869_s15 }
 0x55b   :  { %1123 = vrot.lane.b32.xlu1 %v5181_v54, %s4869_s15 }
 0x55d   :  { %4583 = vrot.lane.b32.xlu0 %v5185_v57, %s4870_s17 }
 0x57c   :  { %926 = vmax.xlane.f32.xlu0 %v925_v38  ;;  %v1037_v38 = vld [vmem:[%s5711_s5 + $0x18] sm:$0xff] }
 0x57f   :  { %929 = vmax.xlane.f32.xlu1 %v928_v33 }
 0x590   :  { %4588 = vrot.lane.b32.xlu1 %v5234_v40, %s4868_s13 }
 0x594   :  { %1410 = vrot.lane.b32.xlu1 %v5176_v50, %s4871_s20 }
 0x598   :  { %1412 = vrot.lane.b32.xlu1 %v5181_v54, %s4871_s20 }
 0x5d3   :  { %v659_v46 = vpop.xlane.xlu1 %658 }
 0x5d4   :  { %4654 = vrcp.f32 %v659_v46  ;;  %v656_v48 = vpop.xlane.xlu0 %655 }
 0x5d5   :  { %4656 = vrcp.f32 %v656_v48 }
 0x5d7   :  { %v1122_v39 = vpop.permute.xlu1 %1121 }
 0x5d8   :  { %v4584_v11 = vpop.permute.xlu0 %4583  ;;  %4010 = vmatprep.mubr.msk.f32.mxu1 %vm552_vm15, %v1122_v39 }
 0x5d9   :  { %v4586_v51 = vunpack.i.h.bf16 %v4584_v11  ;;  %v4585_v52 = vunpack.i.l.bf16 %v4584_v11 }
 0x5db   :  { %v4310_v53 = vpack.c.bf16 %v4586_v51, %v4585_v52  ;;  %v1124_v17 = vpop.permute.xlu1 %1123 }
 0x5dd   :  { %4312 = vmatprep.subr.msk.bf16.mxu1 %vm5198_vm0, %v4310_v53 }
 0x5de   :  { %v4655_v55 = vpop.eup %4654  ;;  %4315 = vmatpush3.bf16.xpose.msk.msra.mxu1 %vm5198_vm0, %v4310_v53 }
 0x5df   :  { %v4657_v50 = vpop.eup %4656  ;;  %v663_v56 = vmul.f32 %v4655_v55, %v4651_v16 }
 0x5e0   :  { %v662_v54 = vmul.f32 %v4657_v50, %v4653_v34 }
 0x5e2   :  { %3975 = vmatprep.mubr.msk.f32.mxu0 %vm552_vm15, %v662_v54 }
 0x5e3   :  { %3976 = vmatmul.mubr.msk.f32.vlgmr.msra.gmra.mrb[4].mxu0 %vm552_vm15, %v663_v56  ;;  %v1325_v56 = vld [vmem:[%s5711_s5 + $0x20] sm:$0xff] }
 0x5e4   :  { %4295 = vmatpush3.bf16.msra.mxu0 %v4292_v1 }
 0x5e5   :  { %4011 = vmatmul.mubr.msk.f32.vlgmr.msra.gmra.mrb[6].mxu1 %vm552_vm15, %v1124_v17  ;;  %v1326_v17 = vld [vmem:[%s5711_s5 + $0x28] sm:$0xff] }
 0x609   :  { %v927_v58 = vpop.xlane.xlu0 %926 }
 0x60a   :  { %v931_v59 = vsub.f32 %v923_v37, %v927_v58 }
 0x60c   :  { %v933_v49 = vmul.f32 1.442695, %v931_v59  ;;  %v930_v60 = vpop.xlane.xlu1 %929 }
 0x60d   :  { %v932_v61 = vsub.f32 %v924_v13, %v930_v60  ;;  %v1036_v13 = vld [vmem:[%s5711_s5 + $0x10] sm:$0xff] }
 0x60e   :  { %4658 = vpow2.f32 %v933_v49  ;;  %v4306_v33 = vpack.c.bf16 %v1037_v38, %v1036_v13 }
 0x60f   :  { %v935_v63 = vmul.f32 1.442695, %v932_v61 }
 0x610   :  { %v4589_v7 = vpop.permute.xlu1 %4588 }
 0x611   :  { %4660 = vpow2.f32 %v935_v63  ;;  %v4591_v0 = vunpack.i.h.bf16 %v4589_v7  ;;  %v4590_v2 = vunpack.i.l.bf16 %v4589_v7  ;;  %v4320_v7 = vpack.c.bf16 %v1326_v17, %v1325_v56 }
 0x613   :  { %v4302_v4 = vpack.c.bf16 %v4591_v0, %v4590_v2 }
 0x614   :  { %v1411_v5 = vpop.permute.xlu1 %1410 }
 0x615   :  { %4303 = vmatprep.subr.bf16.mxu0 %v4302_v4  ;;  %4031 = vmatprep.mubr.msk.f32.mxu1 %vm552_vm15, %v1411_v5 }
 0x618   :  { %v4659_v6 = vpop.eup %4658  ;;  %v1413_v34 = vpop.permute.xlu1 %1412 }
 0x619   :  { %v937_v8 = vsel %vm552_vm15, %v4659_v6, 0.0 }
 0x61a   :  { %938 = vadd.xlane.f32.xlu0 %v937_v8 }
 0x61b   :  { %v4661_v10 = vpop.eup %4660 }
 0x61c   :  { %v940_v12 = vsel %vm552_vm15, %v4661_v10, 0.0 }
 0x61e   :  { %941 = vadd.xlane.f32.xlu0 %v940_v12 }
 0x634   :  { %4593 = vrot.lane.b32.xlu0 %v5185_v57, %s4872_s23 }
 0x6a7   :  { %v939_v14 = vpop.xlane.xlu0 %938 }
 0x6a8   :  { %4662 = vrcp.f32 %v939_v14 }
 0x6ab   :  { %v942_v19 = vpop.xlane.xlu0 %941 }
 0x6ac   :  { %4664 = vrcp.f32 %v942_v19 }
 0x6af   :  { %v4594_v20 = vpop.permute.xlu0 %4593 }
 0x6b0   :  { %v4596_v21 = vunpack.i.h.bf16 %v4594_v20  ;;  %v4595_v22 = vunpack.i.l.bf16 %v4594_v20 }
 0x6b2   :  { %v4324_v23 = vpack.c.bf16 %v4596_v21, %v4595_v22  ;;  %v4663_v25 = vpop.eup %4662 }
 0x6b3   :  { %v945_v31 = vmul.f32 %v4663_v25, %v4659_v6 }
 0x6b4   :  { %4326 = vmatprep.subr.msk.bf16.mxu1 %vm5198_vm0, %v4324_v23 }
 0x6b5   :  { %4329 = vmatpush3.bf16.xpose.msk.msra.mxu1 %vm5198_vm0, %v4324_v23 }
 0x6b6   :  { %v3977_v26 = vpop.f32.mrb[4].mxu0  ;;  %v4665_v30 = vpop.eup %4664 }
 0x6b7   :  { %v736_v27 = vpop.f32.mrb[5].mxu0  ;;  %v946_v35 = vmul.f32 %v4665_v30, %v4661_v10 }
 0x6b8   :  { %3982 = vmatprep.mubr.msk.f32.mxu0 %vm552_vm15, %v736_v27  ;;  %v4012_v57 = vpop.f32.mrb[6].mxu1 }
 0x6b9   :  { %v1213_v32 = vmul.f32 0.25, %v4012_v57  ;;  %3983 = vmatmul.mubr.msk.f32.vlgmr.msra.gmra.mrb[6].mxu0 %vm552_vm15, %v3977_v26  ;;  %v1203_v15 = vpop.f32.mrb[7].mxu1 }
 0x6ba   :  { %4305 = vmatpush3.bf16.msra.mxu0 %v4302_v4  ;;  %v1212_v16 = vmul.f32 0.25, %v1203_v15  ;;  %3996 = vmatprep.mubr.msk.f32.mxu0 %vm552_vm15, %v945_v31 }
 0x6bb   :  { %v1215_v36 = vadd.f32 %v1213_v32, %v5214_v9  ;;  %4307 = vmatprep.subr.bf16.mxu0 %v4306_v33 }
 0x6bc   :  { %4032 = vmatmul.mubr.msk.f32.vlgmr.msra.gmra.mrb[8].mxu1 %vm552_vm15, %v1413_v34  ;;  %v1214_v24 = vadd.f32 %v1212_v16, %v5216_v18 }
 0x6bd   :  { %3997 = vmatmul.mubr.msk.f32.vlgmr.msra.gmra.mrb[8].mxu0 %vm552_vm15, %v946_v35  ;;  %v1219_v29 = vsel %vm552_vm15, %v1215_v36, -inf }
 0x6be   :  { %1220 = vmax.xlane.f32.xlu1 %v1219_v29  ;;  %v1216_v37 = vsel %vm552_vm15, %v1214_v24, -inf  ;;  %4309 = vmatpush3.bf16.msra.mxu0 %v4306_v33  ;;  %v1615_v29 = vld [vmem:[%s5711_s5 + $0x38] sm:$0xff] }
 0x6bf   :  { %1217 = vmax.xlane.f32.xlu0 %v1216_v37 }
 0x6cf   :  { %4598 = vrot.lane.b32.xlu1 %v5234_v40, %s4869_s15 }
 0x6d3   :  { %4603 = vrot.lane.b32.xlu1 %v5234_v40, %s4871_s20 }
 0x74b   :  { %v1221_v41 = vpop.xlane.xlu1 %1220 }
 0x74c   :  { %v1223_v28 = vsub.f32 %v1215_v36, %v1221_v41  ;;  %v1218_v1 = vpop.xlane.xlu0 %1217 }
 0x74d   :  { %v1222_v46 = vsub.f32 %v1214_v24, %v1218_v1  ;;  %v1614_v24 = vld [vmem:[%s5711_s5 + $0x30] sm:$0xff] }
 0x74e   :  { %v1226_v48 = vmul.f32 1.442695, %v1223_v28  ;;  %v4334_v33 = vpack.c.bf16 %v1615_v29, %v1614_v24  ;;  %v1834_v24 = vld [vmem:[%s5713_s7 + $0x50] sm:$0xff]  ;;  %v1835_v29 = vld [vmem:[%s5713_s7 + $0x58] sm:$0xff] }
 0x74f   :  { %v1224_v39 = vmul.f32 1.442695, %v1222_v46  ;;  %v4599_v11 = vpop.permute.xlu1 %4598 }
 0x750   :  { %v4601_v51 = vunpack.i.h.bf16 %v4599_v11  ;;  %v4600_v52 = vunpack.i.l.bf16 %v4599_v11 }
 0x751   :  { %4666 = vpow2.f32 %v1224_v39  ;;  %v539_v39 = vld [vmem:[%s5714_s8 + $0x1] ss:$0 sm:$0xff] }
 0x752   :  { %v4316_v53 = vpack.c.bf16 %v4601_v51, %v4600_v52  ;;  %4668 = vpow2.f32 %v1226_v48  ;;  %v541_v11 = vadd.f32 %v5156_v43, %v539_v39  ;;  %v540_v51 = vadd.f32 %v539_v39, %v5158_v44 }
 0x753   :  { %v4604_v12 = vpop.permute.xlu1 %4603 }
 0x754   :  { %4317 = vmatprep.subr.bf16.mxu0 %v4316_v53  ;;  %v4606_v19 = vunpack.i.h.bf16 %v4604_v12  ;;  %v4605_v20 = vunpack.i.l.bf16 %v4604_v12 }
 0x756   :  { %v4330_v23 = vpack.c.bf16 %v4606_v19, %v4605_v20  ;;  %v1739_v19 = vld [vmem:[#allocation8 + $0x38] sm:$0xff] }
 0x75b   :  { %v4667_v55 = vpop.eup %4666 }
 0x75c   :  { %v1228_v50 = vsel %vm552_vm15, %v4667_v55, 0.0  ;;  %v4669_v54 = vpop.eup %4668 }
 0x75d   :  { %1229 = vadd.xlane.f32.xlu0 %v1228_v50  ;;  %v1231_v40 = vsel %vm552_vm15, %v4669_v54, 0.0 }
 0x761   :  { %1232 = vadd.xlane.f32.xlu0 %v1231_v40 }
 0x78f   :  { %v4033_v58 = vpop.f32.mrb[8].mxu1 }
 0x790   :  { %v3998_v59 = vpop.f32.mrb[8].mxu0  ;;  %v1492_v49 = vpop.f32.mrb[9].mxu1  ;;  %v1502_v60 = vmul.f32 0.25, %v4033_v58 }
 0x791   :  { %v1501_v61 = vmul.f32 0.25, %v1492_v49  ;;  %v1027_v63 = vpop.f32.mrb[9].mxu0 }
 0x792   :  { %4003 = vmatprep.mubr.msk.f32.mxu0 %vm552_vm15, %v1027_v63  ;;  %v1504_v4 = vadd.f32 %v1502_v60, %v5214_v9 }
 0x793   :  { %4004 = vmatmul.mubr.msk.f32.vlgmr.msra.gmra.mrb[6].mxu0 %vm552_vm15, %v3998_v59  ;;  %v1503_v0 = vadd.f32 %v1501_v61, %v5216_v18 }
 0x794   :  { %4319 = vmatpush3.bf16.msra.mxu0 %v4316_v53  ;;  %v1508_v5 = vsel %vm552_vm15, %v1504_v4, -inf }
 0x795   :  { %v1505_v2 = vsel %vm552_vm15, %v1503_v0, -inf  ;;  %4321 = vmatprep.subr.bf16.mxu0 %v4320_v7 }
 0x796   :  { %1506 = vmax.xlane.f32.xlu0 %v1505_v2 }
 0x79a   :  { %1509 = vmax.xlane.f32.xlu0 %v1508_v5  ;;  %v1735_v5 = vld [vmem:[#allocation8 + $0x18] sm:$0xff] }
 0x7ea   :  { %v1230_v6 = vpop.xlane.xlu0 %1229 }
 0x7eb   :  { %4670 = vrcp.f32 %v1230_v6 }
 0x7ee   :  { %v1233_v8 = vpop.xlane.xlu0 %1232 }
 0x7ef   :  { %4672 = vrcp.f32 %v1233_v8  ;;  %v1736_v8 = vld [vmem:[#allocation8 + $0x20] sm:$0xff] }
 0x7f5   :  { %v4671_v10 = vpop.eup %4670 }
 0x7f6   :  { %v1236_v14 = vmul.f32 %v4671_v10, %v4667_v55  ;;  %v1737_v10 = vld [vmem:[#allocation8 + $0x28] sm:$0xff] }
 0x7f7   :  { %v4346_v12 = vpack.c.bf16 %v1737_v10, %v1736_v8 }
 0x7f8   :  { %4017 = vmatprep.mubr.msk.f32.mxu0 %vm552_vm15, %v1236_v14  ;;  %v1738_v14 = vld [vmem:[#allocation8 + $0x30] sm:$0xff] }
 0x7f9   :  { %v4673_v21 = vpop.eup %4672  ;;  %v4350_v20 = vpack.c.bf16 %v1739_v19, %v1738_v14 }
 0x7fa   :  { %v1237_v22 = vmul.f32 %v4673_v21, %v4669_v54  ;;  %v1824_v21 = vld [vmem:[%s5713_s7] sm:$0xff] }
 0x7fc   :  { %4018 = vmatmul.mubr.msk.f32.vlgmr.msra.gmra.mrb[10].mxu0 %vm552_vm15, %v1237_v22  ;;  %v1825_v22 = vld [vmem:[%s5713_s7 + $0x8] sm:$0xff] }
 0x7fd   :  { %4323 = vmatpush3.bf16.msra.mxu0 %v4320_v7  ;;  %v1732_v7 = vld [vmem:[#allocation8] sm:$0xff] }
 0x7fe   :  { %4331 = vmatprep.subr.bf16.mxu0 %v4330_v23 }
 0x823   :  { %v1507_v25 = vpop.xlane.xlu0 %1506 }
 0x824   :  { %v1511_v26 = vsub.f32 %v1503_v0, %v1507_v25  ;;  %v1733_v0 = vld [vmem:[#allocation8 + $0x8] sm:$0xff]  ;;  %v4354_v25 = vpack.c.bf16 %v1825_v22, %v1824_v21 }
 0x825   :  { %v4338_v2 = vpack.c.bf16 %v1733_v0, %v1732_v7 }
 0x826   :  { %v1513_v27 = vmul.f32 1.442695, %v1511_v26  ;;  %v1827_v26 = vld [vmem:[%s5713_s7 + $0x18] sm:$0xff] }
 0x827   :  { %v1510_v30 = vpop.xlane.xlu0 %1509  ;;  %4339 = vmatprep.subr.bf16.mxu1 %v4338_v2 }
 0x828   :  { %4674 = vpow2.f32 %v1513_v27  ;;  %v1512_v57 = vsub.f32 %v1504_v4, %v1510_v30  ;;  %4341 = vmatpush3.bf16.msra.mxu1 %v4338_v2  ;;  %v1734_v4 = vld [vmem:[#allocation8 + $0x10] sm:$0xff]  ;;  %v1828_v30 = vld [vmem:[%s5713_s7 + $0x20] sm:$0xff] }
 0x829   :  { %v4342_v6 = vpack.c.bf16 %v1735_v5, %v1734_v4  ;;  %v1840_v2 = vld [vmem:[%s5714_s8 + $0x5] ss:$0 sm:$0xff] }
 0x82a   :  { %v1515_v31 = vmul.f32 1.442695, %v1512_v57  ;;  %v1829_v57 = vld [vmem:[%s5713_s7 + $0x28] sm:$0xff] }
 0x82b   :  { %4343 = vmatprep.subr.bf16.mxu1 %v4342_v6 }
 0x82c   :  { %4676 = vpow2.f32 %v1515_v31  ;;  %4345 = vmatpush3.bf16.msra.mxu1 %v4342_v6  ;;  %v4362_v31 = vpack.c.bf16 %v1829_v57, %v1828_v30 }
 0x82d   :  { %4347 = vmatprep.subr.bf16.mxu1 %v4346_v12 }
 0x830   :  { %4349 = vmatpush3.bf16.msra.mxu1 %v4346_v12 }
 0x831   :  { %4351 = vmatprep.subr.bf16.mxu1 %v4350_v20 }
 0x832   :  { %v4675_v32 = vpop.eup %4674 }
 0x833   :  { %v1517_v15 = vsel %vm552_vm15, %v4675_v32, 0.0 }
 0x834   :  { %1518 = vadd.xlane.f32.xlu0 %v1517_v15  ;;  %4353 = vmatpush3.bf16.msra.mxu1 %v4350_v20  ;;  %v1831_v15 = vld [vmem:[%s5713_s7 + $0x38] sm:$0xff] }
 0x836   :  { %v4677_v16 = vpop.eup %4676 }
 0x837   :  { %v1520_v34 = vsel %vm552_vm15, %v4677_v16, 0.0 }
 0x838   :  { %1521 = vadd.xlane.f32.xlu0 %v1520_v34  ;;  %v1832_v34 = vld [vmem:[%s5713_s7 + $0x40] sm:$0xff] }
 0x8c1   :  { %v1519_v35 = vpop.xlane.xlu0 %1518 }
 0x8c2   :  { %4678 = vrcp.f32 %v1519_v35  ;;  %v1833_v35 = vld [vmem:[%s5713_s7 + $0x48] sm:$0xff] }
 0x8c5   :  { %v1522_v36 = vpop.xlane.xlu0 %1521 }
 0x8c6   :  { %4680 = vrcp.f32 %v1522_v36  ;;  %v4370_v36 = vpack.c.bf16 %v1833_v35, %v1832_v34  ;;  %v3705_v34 = vld [vmem:[%s5710_s4 + $0x80] sm:$0xff]  ;;  %v3707_v35 = vld [vmem:[%s5710_s4 + $0x90] sm:$0xff] }
 0x8cc   :  { %v4679_v37 = vpop.eup %4678 }
 0x8cd   :  { %v1525_v28 = vmul.f32 %v4679_v37, %v4675_v32  ;;  %v1830_v32 = vld [vmem:[%s5713_s7 + $0x30] sm:$0xff]  ;;  %v4374_v37 = vpack.c.bf16 %v1835_v29, %v1834_v24  ;;  %v3710_v24 = vld [vmem:[%s5710_s4 + $0xa8] sm:$0xff]  ;;  %v3712_v29 = vld [vmem:[%s5710_s4 + $0xb8] sm:$0xff] }
 0x8cf   :  { %v4019_v13 = vpop.f32.mrb[10].mxu0 }
 0x8d0   :  { %v1316_v38 = vpop.f32.mrb[11].mxu0  ;;  %v4681_v41 = vpop.eup %4680 }
 0x8d1   :  { %4024 = vmatprep.mubr.msk.f32.mxu0 %vm552_vm15, %v1316_v38  ;;  %v1526_v1 = vmul.f32 %v4681_v41, %v4677_v16  ;;  %v4366_v16 = vpack.c.bf16 %v1831_v15, %v1830_v32  ;;  %v1837_v38 = vld [vmem:[%s5713_s7 + $0x68] sm:$0xff]  ;;  %v3708_v15 = vld [vmem:[%s5710_s4 + $0x98] sm:$0xff] }
 0x8d2   :  { %4025 = vmatmul.mubr.msk.f32.vlgmr.msra.gmra.mrb[6].mxu0 %vm552_vm15, %v4019_v13  ;;  %v1836_v13 = vld [vmem:[%s5713_s7 + $0x60] sm:$0xff]  ;;  %v3706_v32 = vld [vmem:[%s5710_s4 + $0x88] sm:$0xff] }
 0x8d3   :  { %4333 = vmatpush3.bf16.msra.mxu0 %v4330_v23  ;;  %4038 = vmatprep.mubr.msk.f32.mxu0 %vm552_vm15, %v1525_v28  ;;  %v1826_v23 = vld [vmem:[%s5713_s7 + $0x10] sm:$0xff] }
 0x8d4   :  { %4335 = vmatprep.subr.bf16.mxu0 %v4334_v33  ;;  %v4358_v27 = vpack.c.bf16 %v1827_v26, %v1826_v23 }
 0x8d6   :  { %4039 = vmatmul.mubr.msk.f32.vlgmr.msra.gmra.mrb[12].mxu0 %vm552_vm15, %v1526_v1 }
 0x8d7   :  { %4337 = vmatpush3.bf16.msra.mxu0 %v4334_v33  ;;  %v4378_v33 = vpack.c.bf16 %v1837_v38, %v1836_v13  ;;  %v3709_v13 = vld [vmem:[%s5710_s4 + $0xa0] sm:$0xff]  ;;  %v3711_v38 = vld [vmem:[%s5710_s4 + $0xb0] sm:$0xff] }
 0x8d8   :  { %4355 = vmatprep.subr.bf16.mxu0 %v4354_v25 }
 0x9a9   :  { %v4040_v46 = vpop.f32.mrb[12].mxu0 }
 0x9aa   :  { %v1605_v48 = vpop.f32.mrb[13].mxu0 }
 0x9ab   :  { %4045 = vmatprep.mubr.msk.f32.mxu0 %vm552_vm15, %v1605_v48 }
 0x9ac   :  { %4046 = vmatmul.mubr.msk.f32.vlgmr.msra.gmra.mrb[6].mxu0 %vm552_vm15, %v4040_v46 }
 0x9ad   :  { %4357 = vmatpush3.bf16.msra.mxu0 %v4354_v25 }
 0x9ae   :  { %4359 = vmatprep.subr.bf16.mxu0 %v4358_v27 }
 0x9b1   :  { %4361 = vmatpush3.bf16.msra.mxu0 %v4358_v27 }
 0x9b2   :  { %4363 = vmatprep.subr.bf16.mxu0 %v4362_v31 }
 0x9b5   :  { %4365 = vmatpush3.bf16.msra.mxu0 %v4362_v31 }
 0x9b6   :  { %4367 = vmatprep.subr.bf16.mxu0 %v4366_v16 }
 0x9b9   :  { %4369 = vmatpush3.bf16.msra.mxu0 %v4366_v16  ;;  %v4386_v16 = vpack.c.bf16 %v3708_v15, %v3706_v32 }
 0x9ba   :  { %4371 = vmatprep.subr.bf16.mxu0 %v4370_v36 }
 0x9bb   :  { %4387 = vmatprep.subr.bf16.mxu1 %v4386_v16 }
 0x9bd   :  { %4373 = vmatpush3.bf16.msra.mxu0 %v4370_v36  ;;  %v4388_v36 = vpack.c.bf16 %v3707_v35, %v3705_v34 }
 0x9be   :  { %4375 = vmatprep.subr.bf16.mxu0 %v4374_v37 }
 0x9c1   :  { %4377 = vmatpush3.bf16.msra.mxu0 %v4374_v37  ;;  %v4390_v37 = vpack.c.bf16 %v3712_v29, %v3710_v24 }
 0x9c2   :  { %4379 = vmatprep.subr.bf16.mxu0 %v4378_v33 }
 0x9c5   :  { %4381 = vmatpush3.bf16.msra.mxu0 %v4378_v33  ;;  %v4392_v33 = vpack.c.bf16 %v3711_v38, %v3709_v13 }
 0xa7f   :  { %v4047_v52 = vpop.f32.mrb[6].mxu0 }
 0xa80   :  { %v4521_v53 = vadd.f32 %v4047_v52, %v541_v11  ;;  %v1688_v55 = vpop.f32.mrb[7].mxu0 }
 0xa81   :  { %v4522_v50 = vadd.f32 %v1688_v55, %v540_v51  ;;  %v1699_v51 = vld [vmem:[%s5714_s8 + $0x2] ss:$0 sm:$0xff] }
 0xa82   :  { %v1704_v54 = vsel %vm451_vm14, %v4521_v53, 0.0 }
 0xa83   :  { %1705 = vadd.xlane.f32.xlu1 %v1704_v54  ;;  %v1701_v40 = vsel %vm451_vm14, %v4522_v50, 0.0 }
 0xa84   :  { %1702 = vadd.xlane.f32.xlu0 %v1701_v40 }
 0xb10   :  { %v1706_v56 = vpop.xlane.xlu1 %1705 }
 0xb11   :  { %v1709_v17 = vmul.f32 0.015625, %v1706_v56  ;;  %v1703_v58 = vpop.xlane.xlu0 %1702 }
 0xb12   :  { %v1708_v59 = vmul.f32 0.015625, %v1703_v58  ;;  %v1838_v58 = vld [vmem:[%s5713_s7 + $0x70] sm:$0xff] }
 0xb13   :  { %v5321_v49 = vsub.f32 %v4521_v53, %v1709_v17  ;;  %v1700_v53 = vld [vmem:[%s5714_s8 + $0x3] ss:$0 sm:$0xff] }
 0xb14   :  { %v5323_v60 = vsub.f32 %v4522_v50, %v1708_v59  ;;  %v1839_v59 = vld [vmem:[%s5713_s7 + $0x78] sm:$0xff] }
 0xb15   :  { %v1713_v61 = vmul.f32 %v5321_v49, %v5321_v49 }
 0xb16   :  { %v1712_v43 = vmul.f32 %v5323_v60, %v5323_v60 }
 0xb17   :  { %v1717_v63 = vsel %vm451_vm14, %v1713_v61, 0.0 }
 0xb18   :  { %v1714_v44 = vsel %vm451_vm14, %v1712_v43, 0.0 }
 0xb19   :  { %1715 = vadd.xlane.f32.xlu0 %v1714_v44 }
 0xb1d   :  { %1718 = vadd.xlane.f32.xlu0 %v1717_v63 }
 0xba6   :  { %v1716_v41 = vpop.xlane.xlu0 %1715 }
 0xba7   :  { %v1720_v28 = vmul.f32 0.015625, %v1716_v41  ;;  %v3714_v41 = vld [vmem:[%s5710_s4 + $0xc8] sm:$0xff] }
 0xba9   :  { %v1722_v1 = vadd.f32 1e-05, %v1720_v28  ;;  %v3716_v28 = vld [vmem:[%s5710_s4 + $0xd8] sm:$0xff] }
 0xbaa   :  { %v1719_v46 = vpop.xlane.xlu0 %1718 }
 0xbab   :  { %4682 = vrsqrt.f32 %v1722_v1  ;;  %v1721_v48 = vmul.f32 0.015625, %v1719_v46  ;;  %v4394_v1 = vpack.c.bf16 %v3716_v28, %v3714_v41  ;;  %v3713_v46 = vld [vmem:[%s5710_s4 + $0xc0] sm:$0xff] }
 0xbad   :  { %v1723_v39 = vadd.f32 1e-05, %v1721_v48  ;;  %v3715_v48 = vld [vmem:[%s5710_s4 + $0xd0] sm:$0xff] }
 0xbaf   :  { %4684 = vrsqrt.f32 %v1723_v39  ;;  %v4396_v39 = vpack.c.bf16 %v3715_v48, %v3713_v46 }
 0xbb5   :  { %v4683_v11 = vpop.eup %4682 }
 0xbb6   :  { %v1726_v52 = vmul.f32 %v4683_v11, %v5323_v60  ;;  %v4382_v60 = vpack.c.bf16 %v1839_v59, %v1838_v58  ;;  %v3718_v11 = vld [vmem:[%s5710_s4 + $0xe8] sm:$0xff] }
 0xbb8   :  { %v1728_v55 = vmul.f32 %v1726_v52, %v1699_v51  ;;  %4383 = vmatprep.subr.bf16.mxu0 %v4382_v60  ;;  %v3717_v52 = vld [vmem:[%s5710_s4 + $0xe0] sm:$0xff] }
 0xbb9   :  { %v4685_v50 = vpop.eup %4684  ;;  %4385 = vmatpush3.bf16.msra.mxu0 %v4382_v60 }
 0xbba   :  { %v1727_v54 = vmul.f32 %v4685_v50, %v5321_v49  ;;  %v1730_v40 = vadd.f32 %v1728_v55, %v1700_v53  ;;  %v1740_v49 = vld [vmem:[%s5714_s8 + $0x4] ss:$0 sm:$0xff]  ;;  %v3719_v55 = vld [vmem:[%s5710_s4 + $0xf0] sm:$0xff] }
 0xbbb   :  { %v4400_v50 = vpack.c.bf16 %v3719_v55, %v3717_v52 }
 0xbbc   :  { %v1729_v56 = vmul.f32 %v1727_v54, %v1699_v51  ;;  %4064 = vmatprep.mubr.msk.f32.mxu1 %vm451_vm14, %v1730_v40  ;;  %v3720_v51 = vld [vmem:[%s5710_s4 + $0xf8] sm:$0xff] }
 0xbbe   :  { %v1731_v17 = vadd.f32 %v1729_v56, %v1700_v53  ;;  %v4398_v53 = vpack.c.bf16 %v3720_v51, %v3718_v11 }
 0xbc0   :  { %4065 = vmatmul.mubr.msk.f32.vlgmr.msra.gmra.mrb[10].mxu1 %vm451_vm14, %v1731_v17 }
 0xbc1   :  { %2050 = vmatprep.mubr.f32.mxu1 %v4865_v42  ;;  %4389 = vmatpush1.bf16.msra.mxu1 %v4388_v36 }
 0xbc2   :  { %4391 = vmatprep.subr.bf16.mxu1 %v4390_v37 }
 0xbc5   :  { %4393 = vmatpush1.bf16.msra.mxu1 %v4392_v33 }
 0xbc6   :  { %4395 = vmatprep.subr.bf16.mxu1 %v4394_v1 }
 0xbc9   :  { %4397 = vmatpush1.bf16.msra.mxu1 %v4396_v39 }
 0xbca   :  { %4399 = vmatprep.subr.bf16.mxu1 %v4398_v53 }
 0xbcd   :  { %4401 = vmatpush1.bf16.msra.mxu1 %v4400_v50 }
 0xc93   :  { %v4066_v43 = vpop.f32.mrb[10].mxu1 }
 0xc94   :  { %v1819_v44 = vadd.f32 %v4066_v43, %v1740_v49  ;;  %v1813_v61 = vpop.f32.mrb[11].mxu1 }
 0xc95   :  { %v1814_v63 = vadd.f32 %v1813_v61, %v1740_v49  ;;  %v1918_v49 = vld [vmem:[%s5714_s8 + $0x6] ss:$0 sm:$0xff] }
 0xc96   :  { %v1823_v0 = vmax.f32 %v1819_v44, 0.0  ;;  %v1919_v44 = vld [vmem:[%s5714_s8 + $0x7] ss:$0 sm:$0xff] }
 0xc97   :  { %v1822_v7 = vmax.f32 %v1814_v63, 0.0 }
 0xc99   :  { %4099 = vmatprep.mubr.f32.mxu0 %v1822_v7 }
 0xc9a   :  { %4100 = vmatmul.mubr.f32.vlgmr.msra.gmra.mrb[14].mxu0 %v1823_v0 }
 0xd6d   :  { %v4101_v4 = vpop.f32.mrb[14].mxu0 }
 0xd6e   :  { %v1907_v5 = vpop.f32.mrb[15].mxu0  ;;  %v1913_v6 = vadd.f32 %v4101_v4, %v1840_v2 }
 0xd6f   :  { %v1908_v8 = vadd.f32 %v1907_v5, %v1840_v2  ;;  %v3721_v5 = vld [vmem:[%s5714_s8 + $0x10] ss:$8 sm:$0x3] }
 0xd70   :  { %v1917_v14 = vadd.f32 %v1913_v6, %v1731_v17  ;;  %v1973_v6 = vrot.slane %v3721_v5, %v443_v45 }
 0xd71   :  { %v1916_v10 = vadd.f32 %v1908_v8, %v1730_v40  ;;  %v1977_v8 = vrot.slane %v3721_v5, %v447_v47 }
 0xd72   :  { %v1923_v19 = vsel %vm451_vm14, %v1917_v14, 0.0 }
 0xd73   :  { %v1920_v12 = vsel %vm451_vm14, %v1916_v10, 0.0 }
 0xd74   :  { %1921 = vadd.xlane.f32.xlu0 %v1920_v12 }
 0xd78   :  { %1924 = vadd.xlane.f32.xlu0 %v1923_v19 }
 0xe01   :  { %v1922_v20 = vpop.xlane.xlu0 %1921 }
 0xe02   :  { %v1926_v21 = vmul.f32 0.015625, %v1922_v20 }
 0xe04   :  { %v1928_v22 = vsub.f32 %v1916_v10, %v1926_v21 }
 0xe05   :  { %v1925_v23 = vpop.xlane.xlu0 %1924 }
 0xe06   :  { %v1927_v25 = vmul.f32 0.015625, %v1925_v23  ;;  %v1930_v26 = vmul.f32 %v1928_v22, %v1928_v22 }
 0xe08   :  { %v1929_v27 = vsub.f32 %v1917_v14, %v1927_v25  ;;  %v1932_v30 = vsel %vm451_vm14, %v1930_v26, 0.0 }
 0xe09   :  { %1933 = vadd.xlane.f32.xlu0 %v1932_v30 }
 0xe0a   :  { %v1931_v57 = vmul.f32 %v1929_v27, %v1929_v27 }
 0xe0c   :  { %v1935_v31 = vsel %vm451_vm14, %v1931_v57, 0.0 }
 0xe0d   :  { %1936 = vadd.xlane.f32.xlu0 %v1935_v31 }
 0xe96   :  { %v1934_v54 = vpop.xlane.xlu0 %1933 }
 0xe97   :  { %v1938_v40 = vmul.f32 0.015625, %v1934_v54 }
 0xe99   :  { %v1940_v56 = vadd.f32 1e-05, %v1938_v40 }
 0xe9a   :  { %v1937_v17 = vpop.xlane.xlu0 %1936 }
 0xe9b   :  { %4686 = vrsqrt.f32 %v1940_v56  ;;  %v1939_v58 = vmul.f32 0.015625, %v1937_v17 }
 0xe9d   :  { %v1941_v59 = vadd.f32 1e-05, %v1939_v58 }
 0xe9f   :  { %4688 = vrsqrt.f32 %v1941_v59 }
 0xea5   :  { %v4687_v60 = vpop.eup %4686 }
 0xea6   :  { %v1944_v43 = vmul.f32 %v4687_v60, %v1928_v22 }
 0xea8   :  { %v1946_v61 = vmul.f32 %v1944_v43, %v1918_v49  ;;  %v3731_v43 = vld [vmem:[%s5711_s5 + $0x40] sm:$0xff] }
 0xea9   :  { %v4689_v63 = vpop.eup %4688 }
 0xeaa   :  { %v5454_v7 = vadd.f32 %v1946_v61, %v1919_v44  ;;  %v1945_v0 = vmul.f32 %v4689_v63, %v1929_v27 }
 0xeac   :  { %3722 = vmatmul.mubr.msk.f32.vlgmr.msra.gmra.mrb[12].mxu1 %vm451_vm14, %v5454_v7  ;;  %v1947_v2 = vmul.f32 %v1945_v0, %v1918_v49 }
 0xead   :  { %2056 = vmatprep.mubr.f32.mxu1 %v4865_v42 }
 0xeae   :  { %v5459_v4 = vadd.f32 %v1947_v2, %v1919_v44  ;;  %v3732_v44 = vld [vmem:[%s5711_s5 + $0x48] sm:$0xff] }
 0xeb0   :  { %3723 = vmatmul.mubr.msk.f32.gmra.mrb[14].mxu1 %vm451_vm14, %v5459_v4 }
 0xf7f   :  { %v2052_v10 = vpop.f32.mrb[12].mxu1 }
 0xf80   :  { %v5470_v12 = vadd.f32 %v2052_v10, %v1973_v6  ;;  %v2054_v14 = vpop.f32.mrb[13].mxu1 }
 0xf81   :  { %v2055_v19 = vadd.f32 %v2054_v14, %v1977_v8 }
 0xf82   :  { %4106 = vmatprep.mubr.msk.f32.mxu1 %vm552_vm15, %v5470_v12 }
 0xf83   :  { %2064 = vst.msk [vmem:[#allocation2 + $0x8] sm:$0xff] %vm451_vm14, %v2055_v19  ;;  %v2058_v20 = vpop.f32.mrb[14].mxu1 }
 0xf84   :  { %v5475_v21 = vadd.f32 %v2058_v20, %v1973_v6  ;;  %v2060_v22 = vpop.f32.mrb[15].mxu1 }
 0xf85   :  { %v2061_v23 = vadd.f32 %v2060_v22, %v1977_v8 }
 0xf86   :  { %v5479_v45 = vpack.i.bf16 %v5475_v21, %v5470_v12 }
 0xf87   :  { %2066 = vst.msk [vmem:[#allocation2 + $0x18] sm:$0xff] %vm451_vm14, %v2061_v23 }
 0xf88   :  { %4613 = vrot.lane.b32.xlu1 %v5479_v45, %s4866_s11  ;;  %4608 = vrot.lane.b32.xlu0 %v5479_v45, %s4867_s12 }
 0xf8a   :  { %v2072_v3 = vld [vmem:[#allocation2 + $0x8] sm:$0xff] }
 0xf8c   :  { %2358 = vrot.lane.b32.xlu0 %v5470_v12, %s4868_s13 }
 0xf8e   :  { %v2073_v47 = vld [vmem:[#allocation2 + $0x18] sm:$0xff] }
 0xf8f   :  { %v4408_v25 = vpack.c.bf16 %v2073_v47, %v2072_v3  ;;  %v5488_v26 = vpack.i.bf16 %v2073_v47, %v2072_v3 }
 0xf90   :  { %2360 = vrot.lane.b32.xlu0 %v5475_v21, %s4868_s13 }
 0xf91   :  { %4409 = vmatprep.subr.bf16.mxu0 %v4408_v25 }
 0xf92   :  { %4411 = vmatpush3.bf16.msra.mxu0 %v4408_v25 }
 0xffa   :  { %v4614_v27 = vpop.permute.xlu1 %4613  ;;  %v4609_v30 = vpop.permute.xlu0 %4608 }
 0xffb   :  { %v4616_v57 = vunpack.i.h.bf16 %v4614_v27  ;;  %v4615_v31 = vunpack.i.l.bf16 %v4614_v27  ;;  %v4611_v32 = vunpack.i.h.bf16 %v4609_v30  ;;  %v4610_v15 = vunpack.i.l.bf16 %v4609_v30 }
 0xffd   :  { %v4402_v16 = vpack.c.bf16 %v4611_v32, %v4610_v15  ;;  %v4416_v34 = vpack.c.bf16 %v4616_v57, %v4615_v31 }
 0xffe   :  { %v2359_v35 = vpop.permute.xlu0 %2358 }
 0xfff   :  { %4404 = vmatprep.subr.msk.bf16.mxu1 %vm5198_vm0, %v4402_v16 }
0x1000   :  { %4407 = vmatpush3.bf16.xpose.msk.msra.mxu1 %vm5198_vm0, %v4402_v16 }
0x1001   :  { %4418 = vmatprep.subr.msk.bf16.mxu1 %vm5198_vm0, %v4416_v34 }
0x1002   :  { %v2361_v36 = vpop.permute.xlu0 %2360 }
0x1007   :  { %4107 = vmatmul.mubr.msk.f32.vlgmr.msra.gmra.mrb[16].mxu1 %vm552_vm15, %v5475_v21 }
0x1008   :  { %4421 = vmatpush3.bf16.xpose.msk.msra.mxu1 %vm5198_vm0, %v4416_v34  ;;  %4127 = vmatprep.mubr.msk.f32.mxu1 %vm552_vm15, %v2359_v35 }
0x100f   :  { %4128 = vmatmul.mubr.msk.f32.vlgmr.msra.gmra.mrb[18].mxu1 %vm552_vm15, %v2361_v36 }
0x10da   :  { %v4108_v24 = vpop.f32.mrb[16].mxu1 }
0x10db   :  { %v2164_v29 = vmul.f32 0.25, %v4108_v24  ;;  %v2154_v37 = vpop.f32.mrb[17].mxu1 }
0x10dc   :  { %v2163_v13 = vmul.f32 0.25, %v2154_v37 }
0x10dd   :  { %v2168_v38 = vadd.f32 %v2164_v29, %v5214_v9 }
0x10de   :  { %v2167_v33 = vadd.f32 %v2163_v13, %v5216_v18 }
0x10df   :  { %v2172_v41 = vsel %vm552_vm15, %v2168_v38, -inf }
0x10e0   :  { %2173 = vmax.xlane.f32.xlu0 %v2172_v41  ;;  %v2169_v28 = vsel %vm552_vm15, %v2167_v33, -inf }
0x10e1   :  { %2170 = vmax.xlane.f32.xlu1 %v2169_v28 }
0x10e2   :  { %v4129_v1 = vpop.f32.mrb[18].mxu1 }
0x10e3   :  { %v2440_v46 = vpop.f32.mrb[19].mxu1  ;;  %v2450_v17 = vmul.f32 0.25, %v4129_v1 }
0x10e4   :  { %v2449_v56 = vmul.f32 0.25, %v2440_v46 }
0x10e5   :  { %v2452_v59 = vadd.f32 %v2450_v17, %v5214_v9 }
0x10e6   :  { %v2451_v58 = vadd.f32 %v2449_v56, %v5216_v18  ;;  %v4412_v18 = vpack.c.bf16 %v3732_v44, %v3731_v43  ;;  %v3742_v56 = vld [vmem:[%s5711_s5 + $0x58] sm:$0xff] }
0x10e7   :  { %v2456_v49 = vsel %vm552_vm15, %v2452_v59, -inf }
0x10e8   :  { %v2453_v60 = vsel %vm552_vm15, %v2451_v58, -inf  ;;  %4413 = vmatprep.subr.bf16.mxu0 %v4412_v18 }
0x116d   :  { %v2174_v48 = vpop.xlane.xlu0 %2173 }
0x116e   :  { %v2176_v39 = vsub.f32 %v2168_v38, %v2174_v48  ;;  %v2171_v11 = vpop.xlane.xlu1 %2170 }
0x116f   :  { %v2175_v51 = vsub.f32 %v2167_v33, %v2171_v11 }
0x1170   :  { %v2179_v52 = vmul.f32 1.442695, %v2176_v39 }
0x1171   :  { %v2177_v53 = vmul.f32 1.442695, %v2175_v51 }
0x1172   :  { %4690 = vpow2.f32 %v2179_v52  ;;  %v4730_v52 = vld [vmem:[#allocation3 + $0x8] sm:$0xff] }
0x1173   :  { %4692 = vpow2.f32 %v2177_v53  ;;  %v4731_v53 = vld [vmem:[#allocation3] sm:$0xff] }
0x117c   :  { %v4691_v55 = vpop.eup %4690 }
0x117d   :  { %v4693_v50 = vpop.eup %4692  ;;  %v2184_v54 = vsel %vm552_vm15, %v4691_v55, 0.0 }
0x117e   :  { %2185 = vadd.xlane.f32.xlu1 %v2184_v54  ;;  %v2181_v40 = vsel %vm552_vm15, %v4693_v50, 0.0 }
0x117f   :  { %2182 = vadd.xlane.f32.xlu0 %v2181_v40  ;;  %v3741_v40 = vld [vmem:[%s5711_s5 + $0x50] sm:$0xff] }
0x1180   :  { %v4426_v17 = vpack.c.bf16 %v3742_v56, %v3741_v40 }
0x118f   :  { %2649 = vrot.lane.b32.xlu1 %v5470_v12, %s4869_s15 }
0x1193   :  { %2651 = vrot.lane.b32.xlu1 %v5475_v21, %s4869_s15 }
0x1195   :  { %4618 = vrot.lane.b32.xlu0 %v5479_v45, %s4870_s17 }
0x11b4   :  { %2454 = vmax.xlane.f32.xlu0 %v2453_v60 }
0x11b7   :  { %2457 = vmax.xlane.f32.xlu1 %v2456_v49 }
0x11c8   :  { %4623 = vrot.lane.b32.xlu1 %v5488_v26, %s4868_s13 }
0x11cc   :  { %2938 = vrot.lane.b32.xlu1 %v5470_v12, %s4871_s20 }
0x11d0   :  { %2940 = vrot.lane.b32.xlu1 %v5475_v21, %s4871_s20 }
0x120b   :  { %v2186_v9 = vpop.xlane.xlu1 %2185 }
0x120c   :  { %4694 = vrcp.f32 %v2186_v9  ;;  %v2183_v61 = vpop.xlane.xlu0 %2182 }
0x120d   :  { %4696 = vrcp.f32 %v2183_v61 }
0x120f   :  { %v2650_v63 = vpop.permute.xlu1 %2649 }
0x1210   :  { %v4619_v0 = vpop.permute.xlu0 %4618  ;;  %4148 = vmatprep.mubr.msk.f32.mxu1 %vm552_vm15, %v2650_v63 }
0x1211   :  { %v4621_v2 = vunpack.i.h.bf16 %v4619_v0  ;;  %v4620_v5 = vunpack.i.l.bf16 %v4619_v0 }
0x1213   :  { %v4430_v6 = vpack.c.bf16 %v4621_v2, %v4620_v5  ;;  %v2652_v19 = vpop.permute.xlu1 %2651 }
0x1215   :  { %4432 = vmatprep.subr.msk.bf16.mxu1 %vm5198_vm0, %v4430_v6 }
0x1216   :  { %v4695_v8 = vpop.eup %4694  ;;  %4435 = vmatpush3.bf16.xpose.msk.msra.mxu1 %vm5198_vm0, %v4430_v6  ;;  %v3751_v6 = vld [vmem:[%s5711_s5 + $0x60] sm:$0xff] }
0x1217   :  { %v4697_v10 = vpop.eup %4696  ;;  %v2190_v14 = vmul.f32 %v4695_v8, %v4691_v55  ;;  %v3752_v8 = vld [vmem:[%s5711_s5 + $0x68] sm:$0xff] }
0x1218   :  { %v2189_v12 = vmul.f32 %v4697_v10, %v4693_v50 }
0x121a   :  { %4113 = vmatprep.mubr.msk.f32.mxu0 %vm552_vm15, %v2189_v12 }
0x121b   :  { %4114 = vmatmul.mubr.msk.f32.vlgmr.msra.gmra.mrb[16].mxu0 %vm552_vm15, %v2190_v14 }
0x121c   :  { %4415 = vmatpush3.bf16.msra.mxu0 %v4412_v18 }
0x121d   :  { %4149 = vmatmul.mubr.msk.f32.vlgmr.msra.gmra.mrb[20].mxu1 %vm552_vm15, %v2652_v19 }
0x1241   :  { %v2455_v20 = vpop.xlane.xlu0 %2454 }
0x1242   :  { %v2459_v21 = vsub.f32 %v2451_v58, %v2455_v20 }
0x1244   :  { %v2461_v22 = vmul.f32 1.442695, %v2459_v21  ;;  %v2458_v23 = vpop.xlane.xlu1 %2457 }
0x1245   :  { %v2460_v3 = vsub.f32 %v2452_v59, %v2458_v23 }
0x1246   :  { %4698 = vpow2.f32 %v2461_v22  ;;  %v4440_v22 = vpack.c.bf16 %v3752_v8, %v3751_v6 }
0x1247   :  { %v2463_v47 = vmul.f32 1.442695, %v2460_v3 }
0x1248   :  { %v4624_v25 = vpop.permute.xlu1 %4623 }
0x1249   :  { %4700 = vpow2.f32 %v2463_v47  ;;  %v4626_v27 = vunpack.i.h.bf16 %v4624_v25  ;;  %v4625_v30 = vunpack.i.l.bf16 %v4624_v25 }
0x124b   :  { %v4422_v57 = vpack.c.bf16 %v4626_v27, %v4625_v30 }
0x124c   :  { %v2939_v31 = vpop.permute.xlu1 %2938 }
0x124d   :  { %4423 = vmatprep.subr.bf16.mxu0 %v4422_v57  ;;  %4169 = vmatprep.mubr.msk.f32.mxu1 %vm552_vm15, %v2939_v31 }
0x1250   :  { %v4699_v32 = vpop.eup %4698  ;;  %v2941_v11 = vpop.permute.xlu1 %2940 }
0x1251   :  { %v2465_v15 = vsel %vm552_vm15, %v4699_v32, 0.0 }
0x1252   :  { %2466 = vadd.xlane.f32.xlu0 %v2465_v15 }
0x1253   :  { %v4701_v16 = vpop.eup %4700 }
0x1254   :  { %v2468_v34 = vsel %vm552_vm15, %v4701_v16, 0.0 }
0x1256   :  { %2469 = vadd.xlane.f32.xlu0 %v2468_v34 }
0x126c   :  { %4628 = vrot.lane.b32.xlu0 %v5479_v45, %s4872_s23 }
0x12df   :  { %v2467_v35 = vpop.xlane.xlu0 %2466 }
0x12e0   :  { %4702 = vrcp.f32 %v2467_v35 }
0x12e3   :  { %v2470_v36 = vpop.xlane.xlu0 %2469 }
0x12e4   :  { %4704 = vrcp.f32 %v2470_v36 }
0x12e7   :  { %v4629_v24 = vpop.permute.xlu0 %4628 }
0x12e8   :  { %v4631_v29 = vunpack.i.h.bf16 %v4629_v24  ;;  %v4630_v37 = vunpack.i.l.bf16 %v4629_v24 }
0x12ea   :  { %v4444_v13 = vpack.c.bf16 %v4631_v29, %v4630_v37  ;;  %v4703_v38 = vpop.eup %4702 }
0x12eb   :  { %v2473_v1 = vmul.f32 %v4703_v38, %v4699_v32 }
0x12ec   :  { %4446 = vmatprep.subr.msk.bf16.mxu1 %vm5198_vm0, %v4444_v13 }
0x12ed   :  { %4449 = vmatpush3.bf16.xpose.msk.msra.mxu1 %vm5198_vm0, %v4444_v13 }
0x12ee   :  { %v4115_v33 = vpop.f32.mrb[16].mxu0  ;;  %v4705_v28 = vpop.eup %4704 }
0x12ef   :  { %v2263_v41 = vpop.f32.mrb[17].mxu0  ;;  %v2474_v51 = vmul.f32 %v4705_v28, %v4701_v16 }
0x12f0   :  { %4120 = vmatprep.mubr.msk.f32.mxu0 %vm552_vm15, %v2263_v41  ;;  %v4150_v45 = vpop.f32.mrb[20].mxu1 }
0x12f1   :  { %v2741_v46 = vmul.f32 0.25, %v4150_v45  ;;  %4121 = vmatmul.mubr.msk.f32.vlgmr.msra.gmra.mrb[18].mxu0 %vm552_vm15, %v4115_v33  ;;  %v2731_v48 = vpop.f32.mrb[21].mxu1 }
0x12f2   :  { %4425 = vmatpush3.bf16.msra.mxu0 %v4422_v57  ;;  %v2740_v39 = vmul.f32 0.25, %v2731_v48  ;;  %4134 = vmatprep.mubr.msk.f32.mxu0 %vm552_vm15, %v2473_v1 }
0x12f3   :  { %v2743_v62 = vadd.f32 %v4730_v52, %v2741_v46  ;;  %4427 = vmatprep.subr.bf16.mxu0 %v4426_v17 }
0x12f4   :  { %4170 = vmatmul.mubr.msk.f32.vlgmr.msra.gmra.mrb[22].mxu1 %vm552_vm15, %v2941_v11  ;;  %v2742_v55 = vadd.f32 %v4731_v53, %v2740_v39  ;;  %v3761_v39 = vld [vmem:[%s5711_s5 + $0x70] sm:$0xff]  ;;  %v3762_v11 = vld [vmem:[%s5711_s5 + $0x78] sm:$0xff] }
0x12f5   :  { %4135 = vmatmul.mubr.msk.f32.vlgmr.msra.gmra.mrb[20].mxu0 %vm552_vm15, %v2474_v51  ;;  %v2747_v50 = vsel %vm552_vm15, %v2743_v62, -inf }
0x12f6   :  { %2748 = vmax.xlane.f32.xlu1 %v2747_v50  ;;  %v2744_v54 = vsel %vm552_vm15, %v2742_v55, -inf  ;;  %4429 = vmatpush3.bf16.msra.mxu0 %v4426_v17  ;;  %v3724_v17 = vld [vmem:[%s5714_s8 + $0x11] ss:$0 sm:$0xff] }
0x12f7   :  { %2745 = vmax.xlane.f32.xlu0 %v2744_v54 }
0x1307   :  { %4633 = vrot.lane.b32.xlu1 %v5488_v26, %s4869_s15 }
0x130b   :  { %4638 = vrot.lane.b32.xlu1 %v5488_v26, %s4871_s20 }
0x1383   :  { %v2749_v58 = vpop.xlane.xlu1 %2748 }
0x1384   :  { %v2751_v59 = vsub.f32 %v2743_v62, %v2749_v58  ;;  %v2746_v60 = vpop.xlane.xlu0 %2745  ;;  %v2069_v58 = vadd.f32 %v3724_v17, %v5459_v4 }
0x1385   :  { %v2750_v49 = vsub.f32 %v2742_v55, %v2746_v60  ;;  %v2068_v60 = vadd.f32 %v3724_v17, %v5454_v7 }
0x1386   :  { %v2754_v43 = vmul.f32 1.442695, %v2751_v59 }
0x1387   :  { %v2752_v44 = vmul.f32 1.442695, %v2750_v49  ;;  %v4634_v18 = vpop.permute.xlu1 %4633 }
0x1388   :  { %v4636_v9 = vunpack.i.h.bf16 %v4634_v18  ;;  %v4635_v61 = vunpack.i.l.bf16 %v4634_v18 }
0x1389   :  { %4706 = vpow2.f32 %v2752_v44 }
0x138a   :  { %v4436_v63 = vpack.c.bf16 %v4636_v9, %v4635_v61  ;;  %4708 = vpow2.f32 %v2754_v43 }
0x138b   :  { %v4639_v31 = vpop.permute.xlu1 %4638 }
0x138c   :  { %4437 = vmatprep.subr.bf16.mxu0 %v4436_v63  ;;  %v4641_v15 = vunpack.i.h.bf16 %v4639_v31  ;;  %v4640_v16 = vunpack.i.l.bf16 %v4639_v31  ;;  %v3772_v31 = vld [vmem:[%s5713_s7 + $0x90] sm:$0xff] }
0x138e   :  { %v4450_v36 = vpack.c.bf16 %v4641_v15, %v4640_v16  ;;  %v3773_v15 = vld [vmem:[%s5713_s7 + $0x98] sm:$0xff] }
0x138f   :  { %v4478_v16 = vpack.c.bf16 %v3773_v15, %v3772_v31 }
0x1393   :  { %v4707_v0 = vpop.eup %4706 }
0x1394   :  { %v2756_v2 = vsel %vm552_vm15, %v4707_v0, 0.0  ;;  %v4709_v5 = vpop.eup %4708 }
0x1395   :  { %2757 = vadd.xlane.f32.xlu0 %v2756_v2  ;;  %v2759_v26 = vsel %vm552_vm15, %v4709_v5, 0.0 }
0x1399   :  { %2760 = vadd.xlane.f32.xlu0 %v2759_v26 }
0x13c7   :  { %v4171_v10 = vpop.f32.mrb[22].mxu1 }
0x13c8   :  { %v4136_v12 = vpop.f32.mrb[20].mxu0  ;;  %v3020_v14 = vpop.f32.mrb[23].mxu1  ;;  %v3030_v19 = vmul.f32 0.25, %v4171_v10  ;;  %v3260_v10 = vld [vmem:[#allocation8 + $0x40] sm:$0xff] }
0x13c9   :  { %v3029_v20 = vmul.f32 0.25, %v3020_v14  ;;  %v2555_v21 = vpop.f32.mrb[21].mxu0 }
0x13ca   :  { %4141 = vmatprep.mubr.msk.f32.mxu0 %vm552_vm15, %v2555_v21  ;;  %v3032_v47 = vadd.f32 %v4730_v52, %v3030_v19  ;;  %v3262_v19 = vld [vmem:[#allocation8 + $0x50] sm:$0xff] }
0x13cb   :  { %4142 = vmatmul.mubr.msk.f32.vlgmr.msra.gmra.mrb[18].mxu0 %vm552_vm15, %v4136_v12  ;;  %v3031_v23 = vadd.f32 %v4731_v53, %v3029_v20  ;;  %v4454_v53 = vpack.c.bf16 %v3762_v11, %v3761_v39  ;;  %v3261_v12 = vld [vmem:[#allocation8 + $0x48] sm:$0xff]  ;;  %v3263_v20 = vld [vmem:[#allocation8 + $0x58] sm:$0xff] }
0x13cc   :  { %4439 = vmatpush3.bf16.msra.mxu0 %v4436_v63  ;;  %v3036_v25 = vsel %vm552_vm15, %v3032_v47, -inf  ;;  %v4458_v14 = vpack.c.bf16 %v3261_v12, %v3260_v10  ;;  %v4462_v21 = vpack.c.bf16 %v3263_v20, %v3262_v19 }
0x13cd   :  { %v3033_v3 = vsel %vm552_vm15, %v3031_v23, -inf  ;;  %4441 = vmatprep.subr.bf16.mxu0 %v4440_v22 }
0x13ce   :  { %3034 = vmax.xlane.f32.xlu0 %v3033_v3  ;;  %4459 = vmatprep.subr.bf16.mxu1 %v4458_v14 }
0x13cf   :  { %4461 = vmatpush3.bf16.msra.mxu1 %v4458_v14 }
0x13d0   :  { %4463 = vmatprep.subr.bf16.mxu1 %v4462_v21 }
0x13d2   :  { %3037 = vmax.xlane.f32.xlu0 %v3036_v25  ;;  %v3267_v25 = vld [vmem:[#allocation8 + $0x78] sm:$0xff] }
0x13d3   :  { %4465 = vmatpush3.bf16.msra.mxu1 %v4462_v21 }
0x1422   :  { %v2758_v27 = vpop.xlane.xlu0 %2757 }
0x1423   :  { %4710 = vrcp.f32 %v2758_v27 }
0x1426   :  { %v2761_v30 = vpop.xlane.xlu0 %2760 }
0x1427   :  { %4712 = vrcp.f32 %v2761_v30  ;;  %v3770_v30 = vld [vmem:[%s5713_s7 + $0x80] sm:$0xff] }
0x142d   :  { %v4711_v57 = vpop.eup %4710 }
0x142e   :  { %v2764_v32 = vmul.f32 %v4711_v57, %v4707_v0  ;;  %v3771_v57 = vld [vmem:[%s5713_s7 + $0x88] sm:$0xff] }
0x1430   :  { %4155 = vmatprep.mubr.msk.f32.mxu0 %vm552_vm15, %v2764_v32  ;;  %v4474_v32 = vpack.c.bf16 %v3771_v57, %v3770_v30 }
0x1431   :  { %v4713_v34 = vpop.eup %4712 }
0x1432   :  { %v2765_v35 = vmul.f32 %v4713_v34, %v4709_v5  ;;  %v3774_v34 = vld [vmem:[%s5713_s7 + $0xa0] sm:$0xff] }
0x1434   :  { %4156 = vmatmul.mubr.msk.f32.vlgmr.msra.gmra.mrb[22].mxu0 %vm552_vm15, %v2765_v35  ;;  %v3775_v35 = vld [vmem:[%s5713_s7 + $0xa8] sm:$0xff] }
0x1435   :  { %4443 = vmatpush3.bf16.msra.mxu0 %v4440_v22  ;;  %v3264_v22 = vld [vmem:[#allocation8 + $0x60] sm:$0xff] }
0x1436   :  { %4451 = vmatprep.subr.bf16.mxu0 %v4450_v36 }
0x145b   :  { %v3035_v24 = vpop.xlane.xlu0 %3034 }
0x145c   :  { %v3039_v29 = vsub.f32 %v3031_v23, %v3035_v24  ;;  %v3265_v23 = vld [vmem:[#allocation8 + $0x68] sm:$0xff]  ;;  %v3776_v24 = vld [vmem:[%s5713_s7 + $0xb0] sm:$0xff] }
0x145d   :  { %v4466_v3 = vpack.c.bf16 %v3265_v23, %v3264_v22 }
0x145e   :  { %v3041_v37 = vmul.f32 1.442695, %v3039_v29  ;;  %v3777_v29 = vld [vmem:[%s5713_s7 + $0xb8] sm:$0xff] }
0x145f   :  { %v3038_v13 = vpop.xlane.xlu0 %3037  ;;  %4467 = vmatprep.subr.bf16.mxu1 %v4466_v3 }
0x1460   :  { %4714 = vpow2.f32 %v3041_v37  ;;  %v3040_v38 = vsub.f32 %v3032_v47, %v3038_v13  ;;  %4469 = vmatpush3.bf16.msra.mxu1 %v4466_v3  ;;  %v3266_v47 = vld [vmem:[#allocation8 + $0x70] sm:$0xff]  ;;  %v4486_v37 = vpack.c.bf16 %v3777_v29, %v3776_v24  ;;  %v3778_v13 = vld [vmem:[%s5713_s7 + $0xc0] sm:$0xff] }
0x1461   :  { %v4470_v27 = vpack.c.bf16 %v3267_v25, %v3266_v47 }
0x1462   :  { %v3043_v33 = vmul.f32 1.442695, %v3040_v38  ;;  %v3779_v38 = vld [vmem:[%s5713_s7 + $0xc8] sm:$0xff] }
0x1463   :  { %4471 = vmatprep.subr.bf16.mxu1 %v4470_v27 }
0x1464   :  { %4716 = vpow2.f32 %v3043_v33  ;;  %4473 = vmatpush3.bf16.msra.mxu1 %v4470_v27  ;;  %v4490_v33 = vpack.c.bf16 %v3779_v38, %v3778_v13  ;;  %v3787_v13 = vld [vmem:[%s5714_s8 + $0x16] ss:$0 sm:$0xff] }
0x146a   :  { %v4715_v41 = vpop.eup %4714 }
0x146b   :  { %v3045_v28 = vsel %vm552_vm15, %v4715_v41, 0.0 }
0x146c   :  { %3046 = vadd.xlane.f32.xlu0 %v3045_v28  ;;  %v3781_v28 = vld [vmem:[%s5713_s7 + $0xd8] sm:$0xff] }
0x146e   :  { %v4717_v45 = vpop.eup %4716 }
0x146f   :  { %v3048_v1 = vsel %vm552_vm15, %v4717_v45, 0.0 }
0x1470   :  { %3049 = vadd.xlane.f32.xlu0 %v3048_v1  ;;  %v3782_v1 = vld [vmem:[%s5713_s7 + $0xe0] sm:$0xff] }
0x14f9   :  { %v3047_v46 = vpop.xlane.xlu0 %3046 }
0x14fa   :  { %4718 = vrcp.f32 %v3047_v46  ;;  %v3783_v46 = vld [vmem:[%s5713_s7 + $0xe8] sm:$0xff] }
0x14fd   :  { %v3050_v48 = vpop.xlane.xlu0 %3049 }
0x14fe   :  { %4720 = vrcp.f32 %v3050_v48  ;;  %v4498_v48 = vpack.c.bf16 %v3783_v46, %v3782_v1 }
0x1504   :  { %v4719_v51 = vpop.eup %4718 }
0x1505   :  { %v3053_v50 = vmul.f32 %v4719_v51, %v4715_v41  ;;  %v3780_v41 = vld [vmem:[%s5713_s7 + $0xd0] sm:$0xff] }
0x1507   :  { %v4157_v52 = vpop.f32.mrb[22].mxu0 }
0x1508   :  { %v2844_v62 = vpop.f32.mrb[23].mxu0  ;;  %v4721_v55 = vpop.eup %4720 }
0x1509   :  { %4162 = vmatprep.mubr.msk.f32.mxu0 %vm552_vm15, %v2844_v62  ;;  %v3054_v54 = vmul.f32 %v4721_v55, %v4717_v45  ;;  %v4494_v45 = vpack.c.bf16 %v3781_v28, %v3780_v41  ;;  %v3788_v28 = vld [vmem:[%s5714_s8 + $0x17] ss:$0 sm:$0xff] }
0x150a   :  { %4163 = vmatmul.mubr.msk.f32.vlgmr.msra.gmra.mrb[18].mxu0 %vm552_vm15, %v4157_v52 }
0x150b   :  { %4453 = vmatpush3.bf16.msra.mxu0 %v4450_v36  ;;  %4176 = vmatprep.mubr.msk.f32.mxu0 %vm552_vm15, %v3053_v50  ;;  %v4482_v36 = vpack.c.bf16 %v3775_v35, %v3774_v34  ;;  %v3765_v50 = vld [vmem:[%s5714_s8 + $0x12] ss:$0 sm:$0xff] }
0x150c   :  { %4455 = vmatprep.subr.bf16.mxu0 %v4454_v53 }
0x150e   :  { %4177 = vmatmul.mubr.msk.f32.vlgmr.msra.gmra.mrb[24].mxu0 %vm552_vm15, %v3054_v54 }
0x150f   :  { %4457 = vmatpush3.bf16.msra.mxu0 %v4454_v53 }
0x1510   :  { %4475 = vmatprep.subr.bf16.mxu0 %v4474_v32 }
0x15e1   :  { %v4178_v40 = vpop.f32.mrb[24].mxu0 }
0x15e2   :  { %v3133_v56 = vpop.f32.mrb[25].mxu0 }
0x15e3   :  { %4183 = vmatprep.mubr.msk.f32.mxu0 %vm552_vm15, %v3133_v56 }
0x15e4   :  { %4184 = vmatmul.mubr.msk.f32.vlgmr.msra.gmra.mrb[18].mxu0 %vm552_vm15, %v4178_v40  ;;  %v3766_v40 = vld [vmem:[%s5714_s8 + $0x13] ss:$0 sm:$0xff] }
0x15e5   :  { %4477 = vmatpush3.bf16.msra.mxu0 %v4474_v32  ;;  %v4873_v32 = vmov 0.0|0.0  }
0x15e6   :  { %4479 = vmatprep.subr.bf16.mxu0 %v4478_v16  ;;  %4506 = vmatprep.subr.bf16.mxu1 %v4873_v32 }
0x15e9   :  { %4481 = vmatpush3.bf16.msra.mxu0 %v4478_v16 }
0x15ea   :  { %4483 = vmatprep.subr.bf16.mxu0 %v4482_v36 }
0x15ed   :  { %4485 = vmatpush3.bf16.msra.mxu0 %v4482_v36 }
0x15ee   :  { %4487 = vmatprep.subr.bf16.mxu0 %v4486_v37 }
0x15f1   :  { %4489 = vmatpush3.bf16.msra.mxu0 %v4486_v37 }
0x15f2   :  { %4491 = vmatprep.subr.bf16.mxu0 %v4490_v33 }
0x15f5   :  { %4493 = vmatpush3.bf16.msra.mxu0 %v4490_v33 }
0x15f6   :  { %4495 = vmatprep.subr.bf16.mxu0 %v4494_v45 }
0x15f9   :  { %4497 = vmatpush3.bf16.msra.mxu0 %v4494_v45 }
0x15fa   :  { %4499 = vmatprep.subr.bf16.mxu0 %v4498_v48 }
0x15fd   :  { %4501 = vmatpush3.bf16.msra.mxu0 %v4498_v48  ;;  %v3553_v48 = vld [vmem:[#allocation9] sm:$0xff] }
0x16b7   :  { %v4185_v59 = vpop.f32.mrb[18].mxu0 }
0x16b8   :  { %v4523_v49 = vadd.f32 %v4185_v59, %v2069_v58  ;;  %v3216_v43 = vpop.f32.mrb[19].mxu0 }
0x16b9   :  { %v4524_v44 = vadd.f32 %v3216_v43, %v2068_v60  ;;  %v3784_v43 = vld [vmem:[%s5713_s7 + $0xf0] sm:$0xff] }
0x16ba   :  { %v3232_v18 = vsel %vm451_vm14, %v4523_v49, 0.0 }
0x16bb   :  { %3233 = vadd.xlane.f32.xlu1 %v3232_v18  ;;  %v3229_v9 = vsel %vm451_vm14, %v4524_v44, 0.0 }
0x16bc   :  { %3230 = vadd.xlane.f32.xlu0 %v3229_v9  ;;  %v3767_v9 = vld [vmem:[%s5714_s8 + $0x14] ss:$0 sm:$0xff] }
0x1748   :  { %v3234_v61 = vpop.xlane.xlu1 %3233 }
0x1749   :  { %v3236_v63 = vmul.f32 0.015625, %v3234_v61  ;;  %v3231_v0 = vpop.xlane.xlu0 %3230 }
0x174a   :  { %v3235_v2 = vmul.f32 0.015625, %v3231_v0 }
0x174b   :  { %v5601_v5 = vsub.f32 %v4523_v49, %v3236_v63 }
0x174c   :  { %v5603_v26 = vsub.f32 %v4524_v44, %v3235_v2  ;;  %v3785_v44 = vld [vmem:[%s5713_s7 + $0xf8] sm:$0xff] }
0x174d   :  { %v3240_v6 = vmul.f32 %v5601_v5, %v5601_v5  ;;  %v4502_v18 = vpack.c.bf16 %v3785_v44, %v3784_v43 }
0x174e   :  { %v3239_v7 = vmul.f32 %v5603_v26, %v5603_v26 }
0x174f   :  { %v3244_v8 = vsel %vm451_vm14, %v3240_v6, 0.0  ;;  %4503 = vmatprep.subr.bf16.mxu0 %v4502_v18 }
0x1750   :  { %v3241_v4 = vsel %vm451_vm14, %v3239_v7, 0.0  ;;  %4505 = vmatpush3.bf16.msra.mxu0 %v4502_v18  ;;  %v3786_v7 = vld [vmem:[%s5714_s8 + $0x15] ss:$0 sm:$0xff] }
0x1751   :  { %3242 = vadd.xlane.f32.xlu0 %v3241_v4 }
0x1755   :  { %3245 = vadd.xlane.f32.xlu0 %v3244_v8 }
0x17de   :  { %v3243_v39 = vpop.xlane.xlu0 %3242 }
0x17df   :  { %v3247_v11 = vmul.f32 0.015625, %v3243_v39  ;;  %v3554_v39 = vld [vmem:[#allocation9 + $0x8] sm:$0xff] }
0x17e1   :  { %v3249_v51 = vadd.f32 1e-05, %v3247_v11 }
0x17e2   :  { %v3246_v52 = vpop.xlane.xlu0 %3245 }
0x17e3   :  { %4722 = vrsqrt.f32 %v3249_v51  ;;  %v3248_v62 = vmul.f32 0.015625, %v3246_v52  ;;  %v3479_v51 = vld [vmem:[%s5708_s2] sm:$0x3]  ;;  %v4510_v52 = vpack.c.bf16 %v3554_v39, %v3553_v48  ;;  %s4875_s2 = smov [#allocation11]  }
0x17e4   :  { %s3646_s8 = sshll.u32 %s4875_s2, 4  ;;  %s3647_s8 = int_to_ptr.vmem [resolvable:$true] %s3646_s8 }
0x17e5   :  { %v3250_v53 = vadd.f32 1e-05, %v3248_v62  ;;  %v3555_v62 = vld [vmem:[#allocation9 + $0x10] sm:$0xff]  ;;  %s4820_s20 = scalar_lea.vmem %s3647_s8, 32  ;;  %p4825_p5 = scmp.lt.s32.totalorder %s3647_s8, %s3647_s8 }
0x17e6   :  { %p4821_p4 = scmp.ne.s32.totalorder %s3647_s8, %s4820_s20  ;;  %p4826_p6 = scmp.lt.s32.totalorder %s4820_s20, %s4820_s20 }
0x17e7   :  { %4724 = vrsqrt.f32 %v3250_v53  ;;  %v3556_v53 = vld [vmem:[#allocation9 + $0x18] sm:$0xff] }
0x17e8   :  { %p4827_p7 = por %p4826_p6, %p4825_p5 }
0x17ea   :  { %p4828_p8 = pnand %p4827_p7, %p4821_p4 }
0x17ed   :  { %v4723_v55 = vpop.eup %4722 }
0x17ee   :  { %v3253_v54 = vmul.f32 %v4723_v55, %v5603_v26  ;;  %v4513_v55 = vpack.c.bf16 %v3556_v53, %v3555_v62 }
0x17f0   :  { %v3255_v56 = vmul.f32 %v3765_v50, %v3253_v54  ;;  %v3558_v54 = vld [vmem:[#allocation9 + $0x28] sm:$0xff] }
0x17f1   :  { %v4725_v17 = vpop.eup %4724 }
0x17f2   :  { %v3254_v58 = vmul.f32 %v4725_v17, %v5601_v5  ;;  %v3257_v59 = vadd.f32 %v3766_v40, %v3255_v56  ;;  %v3559_v56 = vld [vmem:[#allocation9 + $0x30] sm:$0xff]  ;;  %v3560_v17 = vld [vmem:[#allocation9 + $0x38] sm:$0xff] }
0x17f4   :  { %v3256_v60 = vmul.f32 %v3765_v50, %v3254_v58  ;;  %4202 = vmatprep.mubr.msk.f32.mxu1 %vm451_vm14, %v3257_v59  ;;  %v3557_v50 = vld [vmem:[#allocation9 + $0x20] sm:$0xff]  ;;  %v4519_v58 = vpack.c.bf16 %v3560_v17, %v3559_v56 }
0x17f6   :  { %v3258_v49 = vadd.f32 %v3766_v40, %v3256_v60  ;;  %v4516_v40 = vpack.c.bf16 %v3558_v54, %v3557_v50 }
0x17f8   :  { %4203 = vmatmul.mubr.msk.f32.vlgmr.msra.gmra.mrb[24].mxu1 %vm451_vm14, %v3258_v49 }
0x17f9   :  { %4244 = vmatprep.mubr.msk.f32.mxu1 %vm4874_vm1, %v4865_v42 }
0x18cb   :  { %v4204_v61 = vpop.f32.mrb[24].mxu1 }
0x18cc   :  { %v3347_v63 = vadd.f32 %v4204_v61, %v3767_v9  ;;  %v3341_v0 = vpop.f32.mrb[25].mxu1 }
0x18cd   :  { %v3342_v2 = vadd.f32 %v3767_v9, %v3341_v0 }
0x18ce   :  { %v3351_v26 = vmax.f32 %v3347_v63, 0.0 }
0x18cf   :  { %v3350_v5 = vmax.f32 %v3342_v2, 0.0 }
0x18d1   :  { %4237 = vmatprep.mubr.f32.mxu0 %v3350_v5 }
0x18d2   :  { %4238 = vmatmul.mubr.f32.vlgmr.msra.gmra.mrb[26].mxu0 %v3351_v26 }
0x19a5   :  { %v4239_v4 = vpop.f32.mrb[26].mxu0 }
0x19a6   :  { %v3436_v6 = vpop.f32.mrb[27].mxu0  ;;  %v3442_v8 = vadd.f32 %v4239_v4, %v3786_v7 }
0x19a7   :  { %v3437_v10 = vadd.f32 %v3786_v7, %v3436_v6 }
0x19a8   :  { %v3446_v19 = vadd.f32 %v3442_v8, %v3258_v49  ;;  %v3790_v49 = vld [vmem:[#allocation9 + $0x40] ss:$0 sm:$0xff] }
0x19a9   :  { %v3445_v12 = vadd.f32 %v3437_v10, %v3257_v59 }
0x19aa   :  { %v3452_v20 = vsel %vm451_vm14, %v3446_v19, 0.0 }
0x19ab   :  { %v3449_v14 = vsel %vm451_vm14, %v3445_v12, 0.0 }
0x19ac   :  { %3450 = vadd.xlane.f32.xlu0 %v3449_v14 }
0x19b0   :  { %3453 = vadd.xlane.f32.xlu0 %v3452_v20 }
0x1a39   :  { %v3451_v21 = vpop.xlane.xlu0 %3450 }
0x1a3a   :  { %v3455_v22 = vmul.f32 0.015625, %v3451_v21 }
0x1a3c   :  { %v3457_v23 = vsub.f32 %v3445_v12, %v3455_v22 }
0x1a3d   :  { %v3454_v3 = vpop.xlane.xlu0 %3453 }
0x1a3e   :  { %v3456_v47 = vmul.f32 0.015625, %v3454_v3  ;;  %v3459_v25 = vmul.f32 %v3457_v23, %v3457_v23 }
0x1a40   :  { %v3458_v27 = vsub.f32 %v3446_v19, %v3456_v47  ;;  %v3461_v30 = vsel %vm451_vm14, %v3459_v25, 0.0 }
0x1a41   :  { %3462 = vadd.xlane.f32.xlu0 %v3461_v30 }
0x1a42   :  { %v3460_v57 = vmul.f32 %v3458_v27, %v3458_v27 }
0x1a44   :  { %v3464_v31 = vsel %vm451_vm14, %v3460_v57, 0.0 }
0x1a45   :  { %3465 = vadd.xlane.f32.xlu0 %v3464_v31 }
0x1ace   :  { %v3463_v15 = vpop.xlane.xlu0 %3462 }
0x1acf   :  { %v3467_v16 = vmul.f32 0.015625, %v3463_v15 }
0x1ad1   :  { %v3469_v34 = vadd.f32 1e-05, %v3467_v16 }
0x1ad2   :  { %v3466_v35 = vpop.xlane.xlu0 %3465 }
0x1ad3   :  { %4726 = vrsqrt.f32 %v3469_v34  ;;  %v3468_v36 = vmul.f32 0.015625, %v3466_v35 }
0x1ad5   :  { %v3470_v24 = vadd.f32 1e-05, %v3468_v36 }
0x1ad7   :  { %4728 = vrsqrt.f32 %v3470_v24 }
0x1add   :  { %v4727_v29 = vpop.eup %4726 }
0x1ade   :  { %v3473_v37 = vmul.f32 %v4727_v29, %v3457_v23 }
0x1ae0   :  { %v3475_v41 = vmul.f32 %v3787_v13, %v3473_v37 }
0x1ae1   :  { %v4729_v38 = vpop.eup %4728 }
0x1ae2   :  { %v3474_v33 = vmul.f32 %v4729_v38, %v3458_v27  ;;  %v3477_v1 = vadd.f32 %v3788_v28, %v3475_v41 }
0x1ae4   :  { %v3476_v45 = vmul.f32 %v3787_v13, %v3474_v33 }
0x1ae6   :  { %v3478_v46 = vadd.f32 %v3788_v28, %v3476_v45 }
0x1ae8   :  { %v4507_v11 = vpack.c.bf16 %v3478_v46, %v3477_v1 }
0x1aea   :  { %4508 = vmatpush3.bf16.msra.mxu1 %v4507_v11 }
0x1aeb   :  { %4509 = vmatprep.subr.bf16.mxu1 %v4873_v32 }
0x1aed   :  { %4245 = vmatmul.mubr.msk.f32.vlgmr.msra.gmra.mrb[26].mxu1 %vm552_vm15, %v3479_v51 }
0x1aee   :  { %4511 = vmatpush3.bf16.msra.mxu1 %v4510_v52  ;;  %4263 = vmatprep.mubr.msk.f32.mxu1 %vm4874_vm1, %v4865_v42 }
0x1aef   :  { %4512 = vmatprep.subr.bf16.mxu1 %v4873_v32 }
0x1af2   :  { %4514 = vmatpush3.bf16.msra.mxu1 %v4513_v55 }
0x1af3   :  { %4515 = vmatprep.subr.bf16.mxu1 %v4873_v32 }
0x1af6   :  { %4517 = vmatpush3.bf16.msra.mxu1 %v4516_v40 }
0x1af7   :  { %4518 = vmatprep.subr.bf16.mxu1 %v4873_v32 }
0x1afa   :  { %4520 = vmatpush3.bf16.msra.mxu1 %v4519_v58 }
0x1bc0   :  { %v3549_v59 = vpop.f32.mrb[26].mxu1 }
0x1bc1   :  { %v4246_v60 = vpop.f32.mrb[27].mxu1  ;;  %4264 = vmatmul.mubr.msk.f32.vlgmr.msra.gmra.mrb[28].mxu1 %vm451_vm14, %v3549_v59 }
0x1c94   :  { %v3635_v42 = vpop.f32.mrb[28].mxu1 }
0x1c95   :  { %v3636_v43 = vadd.f32 %v3790_v49, %v3635_v42  ;;  %v4265_v44 = vpop.f32.mrb[29].mxu1 }
0x1c97   :  { %3639 = vst [vmem:[#allocation11] sm:$0x3] %v3636_v43 }
0x1c98   :  { %4831 = shalt.err (!%p4828_p8)
}
0x1c99   :  { %s4832_s22 = scalar_lea.hbm %s5716_s10, 32 }
0x1c9a   :  { %p4833_p9 = scmp.ne.s32.totalorder %s5716_s10, %s4832_s22  ;;  %p4836_p10 = scmp.lt.u32.totalorder %s4832_s22, %s5716_s10 }
0x1c9c   :  { %p4838_p11 = pnand %p4836_p10, %p4833_p9 }
0x1c9e   :  { %4841 = shalt.err (!%p4838_p11)
}
0x1c9f   :  { %3649 = dma.vmem_to_hbm [thread:$0]  %s3647_s8, 32, %s5716_s10, [#allocation5]  }
0x1ca0   :  { %4848 = dma.done.wait [#allocation5], 32  }
0x1ca1   :  { %4849 = vsyncadd [#allocation5], 4294967264 }
0x1ca2   :  { %3653 = vsyncpa [#allocation4], 1 }
0x1ca3   :  { %3654 = vsyncpa [#allocation7], 1 }
0x1ca4   :  { %3655 = vsyncpa [#allocation10], 1 }
0x1ca5   :  { %3656 = vsyncpa [#allocation5], 1 }

</bundles_post_ra>
